<compile_context>
chip_gen: v7x
topology: tpu7x:2x2x1
jax: 0.10.0
libtpu: 0.0.40
codegen_flags: <defaults>
</compile_context>

<pallas_src>
import functools

import jax
import jax.numpy as jnp
from jax.experimental import pallas as pl
from jax.experimental.pallas import tpu as pltpu


# ----------------------------------------------------------------------------
# In-kernel helpers (traced inside the Pallas kernel)
# ----------------------------------------------------------------------------

def _layernorm(x, gamma, beta, eps):
    mu = jnp.mean(x, axis=-1, keepdims=True)
    xc = x - mu
    var = jnp.mean(xc * xc, axis=-1, keepdims=True)
    return xc * jax.lax.rsqrt(var + eps) * gamma + beta


def _leaky_relu(x):
    return jnp.where(x >= 0, x, 0.01 * x)


def _dot(a, b):
    return jnp.dot(a, b, preferred_element_type=jnp.float32)


# ----------------------------------------------------------------------------
# Fully fused model kernel (single invocation, everything in VMEM)
# ----------------------------------------------------------------------------

_N_LAYER_REFS = 12   # wqkv,bqkv,wo,bo,ln1g,ln1b,w1,b1,w2,b2,ln2g,ln2b
_N_CLS_REFS = 10     # w1,b1,g1,be1,w2,b2,g2,be2,w3,b3


def _fused_model_kernel(*refs, B, S, E, H, num_layers, eps):
    tok_ref, mbias_ref, emb_ref = refs[0], refs[1], refs[2]
    lrefs = refs[3:3 + _N_LAYER_REFS * num_layers]
    crefs = refs[3 + _N_LAYER_REFS * num_layers:
                 3 + _N_LAYER_REFS * num_layers + _N_CLS_REFS]
    o_ref = refs[3 + _N_LAYER_REFS * num_layers + _N_CLS_REFS]

    BS = B * S
    Dh = E // H
    scale = 1.0 / (Dh ** 0.5)
    V = emb_ref.shape[0]

    # --- embedding lookup as a one-hot MXU matmul (no XLA gather launch) ---
    tok = tok_ref[...]                                        # (B*S, 1) int32
    eq = jax.lax.broadcasted_iota(jnp.int32, (BS, V), 1) == tok
    onehot = jnp.where(eq, 1.0, 0.0).astype(jnp.bfloat16)     # (B*S, V)
    x = _dot(onehot, emb_ref[...].astype(jnp.bfloat16))       # (B*S, E) f32

    mbias = mbias_ref[...]                                    # (B, S) additive 0 / -1e9

    # --- encoder layers (post-norm), all activations resident ---
    for l in range(num_layers):
        (wqkv, bqkv, wo, bo, ln1g, ln1b,
         w1, b1, w2, b2, ln2g, ln2b) = lrefs[_N_LAYER_REFS * l:
                                             _N_LAYER_REFS * (l + 1)]

        x_bf = x.astype(jnp.bfloat16)
        qkv = _dot(x_bf, wqkv[...]) + bqkv[...]               # (B*S, 3E) f32
        q = qkv[:, :E] * scale                                # fold 1/sqrt(Dh) into q
        k = qkv[:, E:2 * E]
        v = qkv[:, 2 * E:]

        # scores for all (batch, head) pairs stacked along sublanes
        #   -> ONE softmax over a (B*H*S, S) block instead of B*H tiny ones.
        qk_dims = (((1,), (1,)), ((), ()))                    # contract feature dims
        blocks = []
        for b in range(B):
            qb = q[b * S:(b + 1) * S]                         # (S, E)
            kb = k[b * S:(b + 1) * S]
            bias_b = mbias[b:b + 1, :]                        # (1, S) key-padding bias
            for h in range(H):
                qh = qb[:, h * Dh:(h + 1) * Dh]               # (S, Dh)
                kh = kb[:, h * Dh:(h + 1) * Dh]
                sc = jax.lax.dot_general(qh, kh, qk_dims,
                                         preferred_element_type=jnp.float32)
                blocks.append(sc + bias_b)                    # (S, S)
        s = jnp.concatenate(blocks, axis=0)                   # (B*H*S, S)
        s = s - jnp.max(s, axis=-1, keepdims=True)
        p = jnp.exp(s)
        p = p * pl.reciprocal(jnp.sum(p, axis=-1, keepdims=True), approx=True)

        # per-head contexts, lane-concatenated per batch, sublane-concatenated
        # across batches -> one lane-dense (B*S, E) out-projection dot.
        ctx_rows = []
        for b in range(B):
            vb = v[b * S:(b + 1) * S]                         # (S, E)
            heads = []
            for h in range(H):
                base = (b * H + h) * S
                ph = p[base:base + S]                         # (S, S)
                vh = vb[:, h * Dh:(h + 1) * Dh]               # (S, Dh)
                heads.append(_dot(ph, vh))                    # (S, Dh)
            ctx_rows.append(jnp.concatenate(heads, axis=-1))  # (S, E)
        ctx = jnp.concatenate(ctx_rows, axis=0)               # (B*S, E)

        attn = _dot(ctx.astype(jnp.bfloat16), wo[...]) + bo[...]
        h1 = _layernorm(x + attn, ln1g[...], ln1b[...], eps)

        f = _dot(h1.astype(jnp.bfloat16), w1[...]) + b1[...]
        f = jnp.maximum(f, 0.0)                               # ReLU FFN
        f = _dot(f.astype(jnp.bfloat16), w2[...]) + b2[...]
        x = _layernorm(h1 + f, ln2g[...], ln2b[...], eps)

    # --- classifier: mean-pool + Linear -> LN+LeakyReLU -> Linear
    #                 -> LN+LeakyReLU -> Linear, all in VMEM ---
    (cw1, cb1, cg1, cbe1, cw2, cb2, cg2, cbe2, cw3, cb3) = crefs

    pooled = jnp.concatenate(
        [jnp.mean(x[b * S:(b + 1) * S], axis=0, keepdims=True) for b in range(B)],
        axis=0)                                               # (B, E), matches x.mean(dim=1)

    hc = _dot(pooled.astype(jnp.bfloat16), cw1[...]) + cb1[...]
    hc = _leaky_relu(_layernorm(hc, cg1[...], cbe1[...], eps))
    hc = _dot(hc.astype(jnp.bfloat16), cw2[...]) + cb2[...]
    hc = _leaky_relu(_layernorm(hc, cg2[...], cbe2[...], eps))
    o_ref[...] = _dot(hc.astype(jnp.bfloat16), cw3[...]) + cb3[...]


# ----------------------------------------------------------------------------
# Wrapper: one pallas_call for the whole forward pass
# ----------------------------------------------------------------------------

def model_forward(params, tokens, padding_mask, *, num_heads, num_layers, eps=1e-5):
    B, S = tokens.shape
    E = params["embed"].shape[-1]
    C = params["cls_b3"].shape[-1]

    # Tiny XLA-side glue only: flatten token ids and fold the boolean mask into
    # an additive key-padding bias (True == PAD -> -1e9).
    tok2 = tokens.reshape(B * S, 1).astype(jnp.int32)
    mask_bias = padding_mask.astype(jnp.float32) * jnp.float32(-1e9)   # (B, S)

    args = [tok2, mask_bias, params["embed"]]
    for lp in params["layers"]:
        args += [lp["wqkv"], lp["bqkv"], lp["wo"], lp["bo"],
                 lp["ln1_g"], lp["ln1_b"], lp["w1"], lp["b1"],
                 lp["w2"], lp["b2"], lp["ln2_g"], lp["ln2_b"]]
    args += [params["cls_w1"], params["cls_b1"], params["cls_ln1_g"], params["cls_ln1_b"],
             params["cls_w2"], params["cls_b2"], params["cls_ln2_g"], params["cls_ln2_b"],
             params["cls_w3"], params["cls_b3"]]

    vmem = pl.BlockSpec(memory_space=pltpu.MemorySpace.VMEM)
    kernel = functools.partial(_fused_model_kernel, B=B, S=S, E=E,
                               H=num_heads, num_layers=num_layers, eps=eps)
    return pl.pallas_call(
        kernel,
        out_shape=jax.ShapeDtypeStruct((B, C), jnp.float32),
        in_specs=[vmem] * len(args),
        out_specs=vmem,
    )(*args)


# ----------------------------------------------------------------------------
# Parameters
# ----------------------------------------------------------------------------

def _dense_init(key, shape, scale=0.02, dtype=jnp.bfloat16):
    return (scale * jax.random.normal(key, shape)).astype(dtype)


def init_params(key, vocab_size, embed_dim, num_heads, num_classes, num_layers):
    E = embed_dim
    ffn_dim = 4 * E
    keys = jax.random.split(key, 2 + num_layers)

    params = {"embed": (0.02 * jax.random.normal(keys[0], (vocab_size, E))
                        ).astype(jnp.float32)}

    layers = []
    for i in range(num_layers):
        lk = jax.random.split(keys[1 + i], 4)
        layers.append({
            # fused, lane-dense QKV projection: (E, 3E) bf16, bias (1, 3E) f32
            "wqkv": _dense_init(lk[0], (E, 3 * E)),
            "bqkv": jnp.zeros((1, 3 * E), jnp.float32),
            # merged output projection: (E, E) bf16
            "wo": _dense_init(lk[1], (E, E)),
            "bo": jnp.zeros((1, E), jnp.float32),
            "ln1_g": jnp.ones((1, E), jnp.float32),
            "ln1_b": jnp.zeros((1, E), jnp.float32),
            "w1": _dense_init(lk[2], (E, ffn_dim)),
            "b1": jnp.zeros((1, ffn_dim), jnp.float32),
            "w2": _dense_init(lk[3], (ffn_dim, E)),
            "b2": jnp.zeros((1, E), jnp.float32),
            "ln2_g": jnp.ones((1, E), jnp.float32),
            "ln2_b": jnp.zeros((1, E), jnp.float32),
        })
    params["layers"] = layers

    ck = jax.random.split(keys[1 + num_layers], 3)
    d1, d2 = E * 22, E * 16
    params.update({
        "cls_w1": _dense_init(ck[0], (E, d1)),
        "cls_b1": jnp.zeros((1, d1), jnp.float32),
        "cls_ln1_g": jnp.ones((1, d1), jnp.float32),
        "cls_ln1_b": jnp.zeros((1, d1), jnp.float32),
        "cls_w2": _dense_init(ck[1], (d1, d2)),
        "cls_b2": jnp.zeros((1, d2), jnp.float32),
        "cls_ln2_g": jnp.ones((1, d2), jnp.float32),
        "cls_ln2_b": jnp.zeros((1, d2), jnp.float32),
        "cls_w3": _dense_init(ck[2], (d2, num_classes)),
        "cls_b3": jnp.zeros((1, num_classes), jnp.float32),
    })
    return params


# ----------------------------------------------------------------------------
# Entry point
# ----------------------------------------------------------------------------

if __name__ == "__main__":
    vocab_size, embed_dim, num_heads = 50, 32, 4
    num_classes, num_layers = 5, 2
    B, S = 2, 8

    key = jax.random.PRNGKey(0)
    pkey, tkey = jax.random.split(key)

    params = init_params(pkey, vocab_size, embed_dim, num_heads,
                         num_classes, num_layers)

    tokens = jax.random.randint(tkey, (B, S), 0, vocab_size, dtype=jnp.int32)
    padding_mask = jnp.zeros((B, S), dtype=bool).at[1, -2:].set(True)  # True == PAD

    fwd = jax.jit(functools.partial(model_forward,
                                    num_heads=num_heads, num_layers=num_layers))
    logits = fwd(params, tokens, padding_mask)
    jax.block_until_ready(logits)

    assert logits.shape == (B, num_classes)
    assert bool(jnp.all(jnp.isfinite(logits)))
    print("KERNEL_OK")
</pallas_src>

<mosaic_0001>
module attributes {stable_mosaic.version = 11 : i64} {
  func.func @_fused_model_kernel(%arg0: memref<16x1xi32, #tpu.memory_space<vmem>>, %arg1: memref<2x8xf32, #tpu.memory_space<vmem>>, %arg2: memref<50x32xf32, #tpu.memory_space<vmem>>, %arg3: memref<32x96xbf16, #tpu.memory_space<vmem>>, %arg4: memref<1x96xf32, #tpu.memory_space<vmem>>, %arg5: memref<32x32xbf16, #tpu.memory_space<vmem>>, %arg6: memref<1x32xf32, #tpu.memory_space<vmem>>, %arg7: memref<1x32xf32, #tpu.memory_space<vmem>>, %arg8: memref<1x32xf32, #tpu.memory_space<vmem>>, %arg9: memref<32x128xbf16, #tpu.memory_space<vmem>>, %arg10: memref<1x128xf32, #tpu.memory_space<vmem>>, %arg11: memref<128x32xbf16, #tpu.memory_space<vmem>>, %arg12: memref<1x32xf32, #tpu.memory_space<vmem>>, %arg13: memref<1x32xf32, #tpu.memory_space<vmem>>, %arg14: memref<1x32xf32, #tpu.memory_space<vmem>>, %arg15: memref<32x96xbf16, #tpu.memory_space<vmem>>, %arg16: memref<1x96xf32, #tpu.memory_space<vmem>>, %arg17: memref<32x32xbf16, #tpu.memory_space<vmem>>, %arg18: memref<1x32xf32, #tpu.memory_space<vmem>>, %arg19: memref<1x32xf32, #tpu.memory_space<vmem>>, %arg20: memref<1x32xf32, #tpu.memory_space<vmem>>, %arg21: memref<32x128xbf16, #tpu.memory_space<vmem>>, %arg22: memref<1x128xf32, #tpu.memory_space<vmem>>, %arg23: memref<128x32xbf16, #tpu.memory_space<vmem>>, %arg24: memref<1x32xf32, #tpu.memory_space<vmem>>, %arg25: memref<1x32xf32, #tpu.memory_space<vmem>>, %arg26: memref<1x32xf32, #tpu.memory_space<vmem>>, %arg27: memref<32x704xbf16, #tpu.memory_space<vmem>>, %arg28: memref<1x704xf32, #tpu.memory_space<vmem>>, %arg29: memref<1x704xf32, #tpu.memory_space<vmem>>, %arg30: memref<1x704xf32, #tpu.memory_space<vmem>>, %arg31: memref<704x512xbf16, #tpu.memory_space<vmem>>, %arg32: memref<1x512xf32, #tpu.memory_space<vmem>>, %arg33: memref<1x512xf32, #tpu.memory_space<vmem>>, %arg34: memref<1x512xf32, #tpu.memory_space<vmem>>, %arg35: memref<512x5xbf16, #tpu.memory_space<vmem>>, %arg36: memref<1x5xf32, #tpu.memory_space<vmem>>, %arg37: memref<2x5xf32, #tpu.memory_space<vmem>>) attributes {dimension_semantics = [], scalar_prefetch = 0 : i64, scratch_operands = 0 : i64, tpu.core_type = #tpu.core_type<tc>} {
    %c0 = arith.constant 0 : index
    %c0_0 = arith.constant 0 : index
    %0 = vector.load %arg0[%c0, %c0_0] : memref<16x1xi32, #tpu.memory_space<vmem>>, vector<16x1xi32>
    %1 = tpu.iota {dimensions = array<i32: 1>} : vector<16x50xi32>
    %2 = vector.broadcast %0 : vector<16x1xi32> to vector<16x50xi32>
    %3 = arith.cmpi eq, %1, %2 : vector<16x50xi32>
    %cst = arith.constant 1.000000e+00 : f32
    %cst_1 = arith.constant 0.000000e+00 : f32
    %4 = vector.broadcast %cst : f32 to vector<16x50xf32>
    %5 = vector.broadcast %cst_1 : f32 to vector<16x50xf32>
    %6 = arith.select %3, %4, %5 : vector<16x50xi1>, vector<16x50xf32>
    %7 = arith.truncf %6 : vector<16x50xf32> to vector<16x50xbf16>
    %c0_2 = arith.constant 0 : index
    %c0_3 = arith.constant 0 : index
    %8 = vector.load %arg2[%c0_2, %c0_3] : memref<50x32xf32, #tpu.memory_space<vmem>>, vector<50x32xf32>
    %9 = arith.truncf %8 : vector<50x32xf32> to vector<50x32xbf16>
    %cst_4 = arith.constant dense<0.000000e+00> : vector<16x32xf32>
    %10 = tpu.matmul %7, %9, %cst_4 {dimension_numbers = #tpu.dot_dimension_numbers<[1], [0], [0], [1], [0, 0, 1, 1], [], []>} : vector<16x50xbf16>, vector<50x32xbf16>, vector<16x32xf32> -> vector<16x32xf32>
    %c0_5 = arith.constant 0 : index
    %c0_6 = arith.constant 0 : index
    %11 = vector.load %arg1[%c0_5, %c0_6] : memref<2x8xf32, #tpu.memory_space<vmem>>, vector<2x8xf32>
    %12 = arith.truncf %10 : vector<16x32xf32> to vector<16x32xbf16>
    %c0_7 = arith.constant 0 : index
    %c0_8 = arith.constant 0 : index
    %13 = vector.load %arg3[%c0_7, %c0_8] : memref<32x96xbf16, #tpu.memory_space<vmem>>, vector<32x96xbf16>
    %cst_9 = arith.constant dense<0.000000e+00> : vector<16x96xf32>
    %14 = tpu.matmul %12, %13, %cst_9 {dimension_numbers = #tpu.dot_dimension_numbers<[1], [0], [0], [1], [0, 0, 1, 1], [], []>} : vector<16x32xbf16>, vector<32x96xbf16>, vector<16x96xf32> -> vector<16x96xf32>
    %c0_10 = arith.constant 0 : index
    %c0_11 = arith.constant 0 : index
    %15 = vector.load %arg4[%c0_10, %c0_11] : memref<1x96xf32, #tpu.memory_space<vmem>>, vector<1x96xf32>
    %16 = vector.broadcast %15 : vector<1x96xf32> to vector<16x96xf32>
    %17 = arith.addf %14, %16 : vector<16x96xf32>
    %18 = vector.extract_strided_slice %17 {offsets = [0, 0], sizes = [16, 32], strides = [1, 1]} : vector<16x96xf32> to vector<16x32xf32>
    %cst_12 = arith.constant 0.353553385 : f32
    %19 = vector.broadcast %cst_12 : f32 to vector<16x32xf32>
    %20 = arith.mulf %18, %19 : vector<16x32xf32>
    %21 = vector.extract_strided_slice %17 {offsets = [0, 32], sizes = [16, 32], strides = [1, 1]} : vector<16x96xf32> to vector<16x32xf32>
    %22 = vector.extract_strided_slice %17 {offsets = [0, 64], sizes = [16, 32], strides = [1, 1]} : vector<16x96xf32> to vector<16x32xf32>
    %23 = vector.extract_strided_slice %20 {offsets = [0, 0], sizes = [8, 32], strides = [1, 1]} : vector<16x32xf32> to vector<8x32xf32>
    %24 = vector.extract_strided_slice %21 {offsets = [0, 0], sizes = [8, 32], strides = [1, 1]} : vector<16x32xf32> to vector<8x32xf32>
    %25 = vector.extract_strided_slice %11 {offsets = [0, 0], sizes = [1, 8], strides = [1, 1]} : vector<2x8xf32> to vector<1x8xf32>
    %26 = vector.extract_strided_slice %23 {offsets = [0, 0], sizes = [8, 8], strides = [1, 1]} : vector<8x32xf32> to vector<8x8xf32>
    %27 = vector.extract_strided_slice %24 {offsets = [0, 0], sizes = [8, 8], strides = [1, 1]} : vector<8x32xf32> to vector<8x8xf32>
    %cst_13 = arith.constant dense<0.000000e+00> : vector<8x8xf32>
    %28 = tpu.matmul %26, %27, %cst_13 {dimension_numbers = #tpu.dot_dimension_numbers<[1], [1], [0], [0], [0, 0, 1, 0], [], []>} : vector<8x8xf32>, vector<8x8xf32>, vector<8x8xf32> -> vector<8x8xf32>
    %29 = vector.broadcast %25 : vector<1x8xf32> to vector<8x8xf32>
    %30 = arith.addf %28, %29 : vector<8x8xf32>
    %31 = vector.extract_strided_slice %23 {offsets = [0, 8], sizes = [8, 8], strides = [1, 1]} : vector<8x32xf32> to vector<8x8xf32>
    %32 = vector.extract_strided_slice %24 {offsets = [0, 8], sizes = [8, 8], strides = [1, 1]} : vector<8x32xf32> to vector<8x8xf32>
    %cst_14 = arith.constant dense<0.000000e+00> : vector<8x8xf32>
    %33 = tpu.matmul %31, %32, %cst_14 {dimension_numbers = #tpu.dot_dimension_numbers<[1], [1], [0], [0], [0, 0, 1, 0], [], []>} : vector<8x8xf32>, vector<8x8xf32>, vector<8x8xf32> -> vector<8x8xf32>
    %34 = vector.broadcast %25 : vector<1x8xf32> to vector<8x8xf32>
    %35 = arith.addf %33, %34 : vector<8x8xf32>
    %36 = vector.extract_strided_slice %23 {offsets = [0, 16], sizes = [8, 8], strides = [1, 1]} : vector<8x32xf32> to vector<8x8xf32>
    %37 = vector.extract_strided_slice %24 {offsets = [0, 16], sizes = [8, 8], strides = [1, 1]} : vector<8x32xf32> to vector<8x8xf32>
    %cst_15 = arith.constant dense<0.000000e+00> : vector<8x8xf32>
    %38 = tpu.matmul %36, %37, %cst_15 {dimension_numbers = #tpu.dot_dimension_numbers<[1], [1], [0], [0], [0, 0, 1, 0], [], []>} : vector<8x8xf32>, vector<8x8xf32>, vector<8x8xf32> -> vector<8x8xf32>
    %39 = vector.broadcast %25 : vector<1x8xf32> to vector<8x8xf32>
    %40 = arith.addf %38, %39 : vector<8x8xf32>
    %41 = vector.extract_strided_slice %23 {offsets = [0, 24], sizes = [8, 8], strides = [1, 1]} : vector<8x32xf32> to vector<8x8xf32>
    %42 = vector.extract_strided_slice %24 {offsets = [0, 24], sizes = [8, 8], strides = [1, 1]} : vector<8x32xf32> to vector<8x8xf32>
    %cst_16 = arith.constant dense<0.000000e+00> : vector<8x8xf32>
    %43 = tpu.matmul %41, %42, %cst_16 {dimension_numbers = #tpu.dot_dimension_numbers<[1], [1], [0], [0], [0, 0, 1, 0], [], []>} : vector<8x8xf32>, vector<8x8xf32>, vector<8x8xf32> -> vector<8x8xf32>
    %44 = vector.broadcast %25 : vector<1x8xf32> to vector<8x8xf32>
    %45 = arith.addf %43, %44 : vector<8x8xf32>
    %46 = vector.extract_strided_slice %20 {offsets = [8, 0], sizes = [8, 32], strides = [1, 1]} : vector<16x32xf32> to vector<8x32xf32>
    %47 = vector.extract_strided_slice %21 {offsets = [8, 0], sizes = [8, 32], strides = [1, 1]} : vector<16x32xf32> to vector<8x32xf32>
    %48 = vector.extract_strided_slice %11 {offsets = [1, 0], sizes = [1, 8], strides = [1, 1]} : vector<2x8xf32> to vector<1x8xf32>
    %49 = vector.extract_strided_slice %46 {offsets = [0, 0], sizes = [8, 8], strides = [1, 1]} : vector<8x32xf32> to vector<8x8xf32>
    %50 = vector.extract_strided_slice %47 {offsets = [0, 0], sizes = [8, 8], strides = [1, 1]} : vector<8x32xf32> to vector<8x8xf32>
    %cst_17 = arith.constant dense<0.000000e+00> : vector<8x8xf32>
    %51 = tpu.matmul %49, %50, %cst_17 {dimension_numbers = #tpu.dot_dimension_numbers<[1], [1], [0], [0], [0, 0, 1, 0], [], []>} : vector<8x8xf32>, vector<8x8xf32>, vector<8x8xf32> -> vector<8x8xf32>
    %52 = vector.broadcast %48 : vector<1x8xf32> to vector<8x8xf32>
    %53 = arith.addf %51, %52 : vector<8x8xf32>
    %54 = vector.extract_strided_slice %46 {offsets = [0, 8], sizes = [8, 8], strides = [1, 1]} : vector<8x32xf32> to vector<8x8xf32>
    %55 = vector.extract_strided_slice %47 {offsets = [0, 8], sizes = [8, 8], strides = [1, 1]} : vector<8x32xf32> to vector<8x8xf32>
    %cst_18 = arith.constant dense<0.000000e+00> : vector<8x8xf32>
    %56 = tpu.matmul %54, %55, %cst_18 {dimension_numbers = #tpu.dot_dimension_numbers<[1], [1], [0], [0], [0, 0, 1, 0], [], []>} : vector<8x8xf32>, vector<8x8xf32>, vector<8x8xf32> -> vector<8x8xf32>
    %57 = vector.broadcast %48 : vector<1x8xf32> to vector<8x8xf32>
    %58 = arith.addf %56, %57 : vector<8x8xf32>
    %59 = vector.extract_strided_slice %46 {offsets = [0, 16], sizes = [8, 8], strides = [1, 1]} : vector<8x32xf32> to vector<8x8xf32>
    %60 = vector.extract_strided_slice %47 {offsets = [0, 16], sizes = [8, 8], strides = [1, 1]} : vector<8x32xf32> to vector<8x8xf32>
    %cst_19 = arith.constant dense<0.000000e+00> : vector<8x8xf32>
    %61 = tpu.matmul %59, %60, %cst_19 {dimension_numbers = #tpu.dot_dimension_numbers<[1], [1], [0], [0], [0, 0, 1, 0], [], []>} : vector<8x8xf32>, vector<8x8xf32>, vector<8x8xf32> -> vector<8x8xf32>
    %62 = vector.broadcast %48 : vector<1x8xf32> to vector<8x8xf32>
    %63 = arith.addf %61, %62 : vector<8x8xf32>
    %64 = vector.extract_strided_slice %46 {offsets = [0, 24], sizes = [8, 8], strides = [1, 1]} : vector<8x32xf32> to vector<8x8xf32>
    %65 = vector.extract_strided_slice %47 {offsets = [0, 24], sizes = [8, 8], strides = [1, 1]} : vector<8x32xf32> to vector<8x8xf32>
    %cst_20 = arith.constant dense<0.000000e+00> : vector<8x8xf32>
    %66 = tpu.matmul %64, %65, %cst_20 {dimension_numbers = #tpu.dot_dimension_numbers<[1], [1], [0], [0], [0, 0, 1, 0], [], []>} : vector<8x8xf32>, vector<8x8xf32>, vector<8x8xf32> -> vector<8x8xf32>
    %67 = vector.broadcast %48 : vector<1x8xf32> to vector<8x8xf32>
    %68 = arith.addf %66, %67 : vector<8x8xf32>
    %69 = tpu.concatenate %30, %35, %40, %45, %53, %58, %63, %68 in 0 : vector<8x8xf32>, vector<8x8xf32>, vector<8x8xf32>, vector<8x8xf32>, vector<8x8xf32>, vector<8x8xf32>, vector<8x8xf32>, vector<8x8xf32> -> vector<64x8xf32>
    %cst_21 = arith.constant dense<0xFF800000> : vector<64xf32>
    %70 = vector.multi_reduction <maximumf>, %69, %cst_21 [1] : vector<64x8xf32> to vector<64xf32>
    %71 = vector.shape_cast %70 : vector<64xf32> to vector<64x1xf32>
    %72 = vector.broadcast %71 : vector<64x1xf32> to vector<64x8xf32>
    %73 = arith.subf %69, %72 : vector<64x8xf32>
    %74 = math.exp %73 : vector<64x8xf32>
    %cst_22 = arith.constant dense<0.000000e+00> : vector<64xf32>
    %75 = vector.multi_reduction <add>, %74, %cst_22 [1] : vector<64x8xf32> to vector<64xf32>
    %76 = vector.shape_cast %75 : vector<64xf32> to vector<64x1xf32>
    %77 = tpu.reciprocal %76 {approx = true} : vector<64x1xf32> -> vector<64x1xf32>
    %78 = vector.broadcast %77 : vector<64x1xf32> to vector<64x8xf32>
    %79 = arith.mulf %74, %78 : vector<64x8xf32>
    %80 = vector.extract_strided_slice %22 {offsets = [0, 0], sizes = [8, 32], strides = [1, 1]} : vector<16x32xf32> to vector<8x32xf32>
    %81 = vector.extract_strided_slice %79 {offsets = [0, 0], sizes = [8, 8], strides = [1, 1]} : vector<64x8xf32> to vector<8x8xf32>
    %82 = vector.extract_strided_slice %80 {offsets = [0, 0], sizes = [8, 8], strides = [1, 1]} : vector<8x32xf32> to vector<8x8xf32>
    %cst_23 = arith.constant dense<0.000000e+00> : vector<8x8xf32>
    %83 = tpu.matmul %81, %82, %cst_23 {dimension_numbers = #tpu.dot_dimension_numbers<[1], [0], [0], [1], [0, 0, 1, 1], [], []>} : vector<8x8xf32>, vector<8x8xf32>, vector<8x8xf32> -> vector<8x8xf32>
    %84 = vector.extract_strided_slice %79 {offsets = [8, 0], sizes = [8, 8], strides = [1, 1]} : vector<64x8xf32> to vector<8x8xf32>
    %85 = vector.extract_strided_slice %80 {offsets = [0, 8], sizes = [8, 8], strides = [1, 1]} : vector<8x32xf32> to vector<8x8xf32>
    %cst_24 = arith.constant dense<0.000000e+00> : vector<8x8xf32>
    %86 = tpu.matmul %84, %85, %cst_24 {dimension_numbers = #tpu.dot_dimension_numbers<[1], [0], [0], [1], [0, 0, 1, 1], [], []>} : vector<8x8xf32>, vector<8x8xf32>, vector<8x8xf32> -> vector<8x8xf32>
    %87 = vector.extract_strided_slice %79 {offsets = [16, 0], sizes = [8, 8], strides = [1, 1]} : vector<64x8xf32> to vector<8x8xf32>
    %88 = vector.extract_strided_slice %80 {offsets = [0, 16], sizes = [8, 8], strides = [1, 1]} : vector<8x32xf32> to vector<8x8xf32>
    %cst_25 = arith.constant dense<0.000000e+00> : vector<8x8xf32>
    %89 = tpu.matmul %87, %88, %cst_25 {dimension_numbers = #tpu.dot_dimension_numbers<[1], [0], [0], [1], [0, 0, 1, 1], [], []>} : vector<8x8xf32>, vector<8x8xf32>, vector<8x8xf32> -> vector<8x8xf32>
    %90 = vector.extract_strided_slice %79 {offsets = [24, 0], sizes = [8, 8], strides = [1, 1]} : vector<64x8xf32> to vector<8x8xf32>
    %91 = vector.extract_strided_slice %80 {offsets = [0, 24], sizes = [8, 8], strides = [1, 1]} : vector<8x32xf32> to vector<8x8xf32>
    %cst_26 = arith.constant dense<0.000000e+00> : vector<8x8xf32>
    %92 = tpu.matmul %90, %91, %cst_26 {dimension_numbers = #tpu.dot_dimension_numbers<[1], [0], [0], [1], [0, 0, 1, 1], [], []>} : vector<8x8xf32>, vector<8x8xf32>, vector<8x8xf32> -> vector<8x8xf32>
    %93 = tpu.concatenate %83, %86, %89, %92 in 1 : vector<8x8xf32>, vector<8x8xf32>, vector<8x8xf32>, vector<8x8xf32> -> vector<8x32xf32>
    %94 = vector.extract_strided_slice %22 {offsets = [8, 0], sizes = [8, 32], strides = [1, 1]} : vector<16x32xf32> to vector<8x32xf32>
    %95 = vector.extract_strided_slice %79 {offsets = [32, 0], sizes = [8, 8], strides = [1, 1]} : vector<64x8xf32> to vector<8x8xf32>
    %96 = vector.extract_strided_slice %94 {offsets = [0, 0], sizes = [8, 8], strides = [1, 1]} : vector<8x32xf32> to vector<8x8xf32>
    %cst_27 = arith.constant dense<0.000000e+00> : vector<8x8xf32>
    %97 = tpu.matmul %95, %96, %cst_27 {dimension_numbers = #tpu.dot_dimension_numbers<[1], [0], [0], [1], [0, 0, 1, 1], [], []>} : vector<8x8xf32>, vector<8x8xf32>, vector<8x8xf32> -> vector<8x8xf32>
    %98 = vector.extract_strided_slice %79 {offsets = [40, 0], sizes = [8, 8], strides = [1, 1]} : vector<64x8xf32> to vector<8x8xf32>
    %99 = vector.extract_strided_slice %94 {offsets = [0, 8], sizes = [8, 8], strides = [1, 1]} : vector<8x32xf32> to vector<8x8xf32>
    %cst_28 = arith.constant dense<0.000000e+00> : vector<8x8xf32>
    %100 = tpu.matmul %98, %99, %cst_28 {dimension_numbers = #tpu.dot_dimension_numbers<[1], [0], [0], [1], [0, 0, 1, 1], [], []>} : vector<8x8xf32>, vector<8x8xf32>, vector<8x8xf32> -> vector<8x8xf32>
    %101 = vector.extract_strided_slice %79 {offsets = [48, 0], sizes = [8, 8], strides = [1, 1]} : vector<64x8xf32> to vector<8x8xf32>
    %102 = vector.extract_strided_slice %94 {offsets = [0, 16], sizes = [8, 8], strides = [1, 1]} : vector<8x32xf32> to vector<8x8xf32>
    %cst_29 = arith.constant dense<0.000000e+00> : vector<8x8xf32>
    %103 = tpu.matmul %101, %102, %cst_29 {dimension_numbers = #tpu.dot_dimension_numbers<[1], [0], [0], [1], [0, 0, 1, 1], [], []>} : vector<8x8xf32>, vector<8x8xf32>, vector<8x8xf32> -> vector<8x8xf32>
    %104 = vector.extract_strided_slice %79 {offsets = [56, 0], sizes = [8, 8], strides = [1, 1]} : vector<64x8xf32> to vector<8x8xf32>
    %105 = vector.extract_strided_slice %94 {offsets = [0, 24], sizes = [8, 8], strides = [1, 1]} : vector<8x32xf32> to vector<8x8xf32>
    %cst_30 = arith.constant dense<0.000000e+00> : vector<8x8xf32>
    %106 = tpu.matmul %104, %105, %cst_30 {dimension_numbers = #tpu.dot_dimension_numbers<[1], [0], [0], [1], [0, 0, 1, 1], [], []>} : vector<8x8xf32>, vector<8x8xf32>, vector<8x8xf32> -> vector<8x8xf32>
    %107 = tpu.concatenate %97, %100, %103, %106 in 1 : vector<8x8xf32>, vector<8x8xf32>, vector<8x8xf32>, vector<8x8xf32> -> vector<8x32xf32>
    %108 = tpu.concatenate %93, %107 in 0 : vector<8x32xf32>, vector<8x32xf32> -> vector<16x32xf32>
    %109 = arith.truncf %108 : vector<16x32xf32> to vector<16x32xbf16>
    %c0_31 = arith.constant 0 : index
    %c0_32 = arith.constant 0 : index
    %110 = vector.load %arg5[%c0_31, %c0_32] : memref<32x32xbf16, #tpu.memory_space<vmem>>, vector<32x32xbf16>
    %cst_33 = arith.constant dense<0.000000e+00> : vector<16x32xf32>
    %111 = tpu.matmul %109, %110, %cst_33 {dimension_numbers = #tpu.dot_dimension_numbers<[1], [0], [0], [1], [0, 0, 1, 1], [], []>} : vector<16x32xbf16>, vector<32x32xbf16>, vector<16x32xf32> -> vector<16x32xf32>
    %c0_34 = arith.constant 0 : index
    %c0_35 = arith.constant 0 : index
    %112 = vector.load %arg6[%c0_34, %c0_35] : memref<1x32xf32, #tpu.memory_space<vmem>>, vector<1x32xf32>
    %113 = vector.broadcast %112 : vector<1x32xf32> to vector<16x32xf32>
    %114 = arith.addf %111, %113 : vector<16x32xf32>
    %115 = arith.addf %10, %114 : vector<16x32xf32>
    %c0_36 = arith.constant 0 : index
    %c0_37 = arith.constant 0 : index
    %116 = vector.load %arg7[%c0_36, %c0_37] : memref<1x32xf32, #tpu.memory_space<vmem>>, vector<1x32xf32>
    %c0_38 = arith.constant 0 : index
    %c0_39 = arith.constant 0 : index
    %117 = vector.load %arg8[%c0_38, %c0_39] : memref<1x32xf32, #tpu.memory_space<vmem>>, vector<1x32xf32>
    %cst_40 = arith.constant dense<0.000000e+00> : vector<16xf32>
    %118 = vector.multi_reduction <add>, %115, %cst_40 [1] : vector<16x32xf32> to vector<16xf32>
    %119 = vector.shape_cast %118 : vector<16xf32> to vector<16x1xf32>
    %cst_41 = arith.constant 3.200000e+01 : f32
    %120 = vector.broadcast %cst_41 : f32 to vector<16x1xf32>
    %121 = arith.divf %119, %120 : vector<16x1xf32>
    %122 = vector.broadcast %121 : vector<16x1xf32> to vector<16x32xf32>
    %123 = arith.subf %115, %122 : vector<16x32xf32>
    %124 = arith.mulf %123, %123 : vector<16x32xf32>
    %cst_42 = arith.constant dense<0.000000e+00> : vector<16xf32>
    %125 = vector.multi_reduction <add>, %124, %cst_42 [1] : vector<16x32xf32> to vector<16xf32>
    %126 = vector.shape_cast %125 : vector<16xf32> to vector<16x1xf32>
    %cst_43 = arith.constant 3.200000e+01 : f32
    %127 = vector.broadcast %cst_43 : f32 to vector<16x1xf32>
    %128 = arith.divf %126, %127 : vector<16x1xf32>
    %cst_44 = arith.constant 9.99999974E-6 : f32
    %129 = vector.broadcast %cst_44 : f32 to vector<16x1xf32>
    %130 = arith.addf %128, %129 : vector<16x1xf32>
    %131 = math.rsqrt %130 : vector<16x1xf32>
    %132 = vector.broadcast %131 : vector<16x1xf32> to vector<16x32xf32>
    %133 = arith.mulf %123, %132 : vector<16x32xf32>
    %134 = vector.broadcast %116 : vector<1x32xf32> to vector<16x32xf32>
    %135 = arith.mulf %133, %134 : vector<16x32xf32>
    %136 = vector.broadcast %117 : vector<1x32xf32> to vector<16x32xf32>
    %137 = arith.addf %135, %136 : vector<16x32xf32>
    %138 = arith.truncf %137 : vector<16x32xf32> to vector<16x32xbf16>
    %c0_45 = arith.constant 0 : index
    %c0_46 = arith.constant 0 : index
    %139 = vector.load %arg9[%c0_45, %c0_46] : memref<32x128xbf16, #tpu.memory_space<vmem>>, vector<32x128xbf16>
    %cst_47 = arith.constant dense<0.000000e+00> : vector<16x128xf32>
    %140 = tpu.matmul %138, %139, %cst_47 {dimension_numbers = #tpu.dot_dimension_numbers<[1], [0], [0], [1], [0, 0, 1, 1], [], []>} : vector<16x32xbf16>, vector<32x128xbf16>, vector<16x128xf32> -> vector<16x128xf32>
    %c0_48 = arith.constant 0 : index
    %c0_49 = arith.constant 0 : index
    %141 = vector.load %arg10[%c0_48, %c0_49] : memref<1x128xf32, #tpu.memory_space<vmem>>, vector<1x128xf32>
    %142 = vector.broadcast %141 : vector<1x128xf32> to vector<16x128xf32>
    %143 = arith.addf %140, %142 : vector<16x128xf32>
    %cst_50 = arith.constant 0.000000e+00 : f32
    %144 = vector.broadcast %cst_50 : f32 to vector<16x128xf32>
    %145 = arith.maximumf %143, %144 : vector<16x128xf32>
    %146 = arith.truncf %145 : vector<16x128xf32> to vector<16x128xbf16>
    %c0_51 = arith.constant 0 : index
    %c0_52 = arith.constant 0 : index
    %147 = vector.load %arg11[%c0_51, %c0_52] : memref<128x32xbf16, #tpu.memory_space<vmem>>, vector<128x32xbf16>
    %cst_53 = arith.constant dense<0.000000e+00> : vector<16x32xf32>
    %148 = tpu.matmul %146, %147, %cst_53 {dimension_numbers = #tpu.dot_dimension_numbers<[1], [0], [0], [1], [0, 0, 1, 1], [], []>} : vector<16x128xbf16>, vector<128x32xbf16>, vector<16x32xf32> -> vector<16x32xf32>
    %c0_54 = arith.constant 0 : index
    %c0_55 = arith.constant 0 : index
    %149 = vector.load %arg12[%c0_54, %c0_55] : memref<1x32xf32, #tpu.memory_space<vmem>>, vector<1x32xf32>
    %150 = vector.broadcast %149 : vector<1x32xf32> to vector<16x32xf32>
    %151 = arith.addf %148, %150 : vector<16x32xf32>
    %152 = arith.addf %137, %151 : vector<16x32xf32>
    %c0_56 = arith.constant 0 : index
    %c0_57 = arith.constant 0 : index
    %153 = vector.load %arg13[%c0_56, %c0_57] : memref<1x32xf32, #tpu.memory_space<vmem>>, vector<1x32xf32>
    %c0_58 = arith.constant 0 : index
    %c0_59 = arith.constant 0 : index
    %154 = vector.load %arg14[%c0_58, %c0_59] : memref<1x32xf32, #tpu.memory_space<vmem>>, vector<1x32xf32>
    %cst_60 = arith.constant dense<0.000000e+00> : vector<16xf32>
    %155 = vector.multi_reduction <add>, %152, %cst_60 [1] : vector<16x32xf32> to vector<16xf32>
    %156 = vector.shape_cast %155 : vector<16xf32> to vector<16x1xf32>
    %cst_61 = arith.constant 3.200000e+01 : f32
    %157 = vector.broadcast %cst_61 : f32 to vector<16x1xf32>
    %158 = arith.divf %156, %157 : vector<16x1xf32>
    %159 = vector.broadcast %158 : vector<16x1xf32> to vector<16x32xf32>
    %160 = arith.subf %152, %159 : vector<16x32xf32>
    %161 = arith.mulf %160, %160 : vector<16x32xf32>
    %cst_62 = arith.constant dense<0.000000e+00> : vector<16xf32>
    %162 = vector.multi_reduction <add>, %161, %cst_62 [1] : vector<16x32xf32> to vector<16xf32>
    %163 = vector.shape_cast %162 : vector<16xf32> to vector<16x1xf32>
    %cst_63 = arith.constant 3.200000e+01 : f32
    %164 = vector.broadcast %cst_63 : f32 to vector<16x1xf32>
    %165 = arith.divf %163, %164 : vector<16x1xf32>
    %cst_64 = arith.constant 9.99999974E-6 : f32
    %166 = vector.broadcast %cst_64 : f32 to vector<16x1xf32>
    %167 = arith.addf %165, %166 : vector<16x1xf32>
    %168 = math.rsqrt %167 : vector<16x1xf32>
    %169 = vector.broadcast %168 : vector<16x1xf32> to vector<16x32xf32>
    %170 = arith.mulf %160, %169 : vector<16x32xf32>
    %171 = vector.broadcast %153 : vector<1x32xf32> to vector<16x32xf32>
    %172 = arith.mulf %170, %171 : vector<16x32xf32>
    %173 = vector.broadcast %154 : vector<1x32xf32> to vector<16x32xf32>
    %174 = arith.addf %172, %173 : vector<16x32xf32>
    %175 = arith.truncf %174 : vector<16x32xf32> to vector<16x32xbf16>
    %c0_65 = arith.constant 0 : index
    %c0_66 = arith.constant 0 : index
    %176 = vector.load %arg15[%c0_65, %c0_66] : memref<32x96xbf16, #tpu.memory_space<vmem>>, vector<32x96xbf16>
    %cst_67 = arith.constant dense<0.000000e+00> : vector<16x96xf32>
    %177 = tpu.matmul %175, %176, %cst_67 {dimension_numbers = #tpu.dot_dimension_numbers<[1], [0], [0], [1], [0, 0, 1, 1], [], []>} : vector<16x32xbf16>, vector<32x96xbf16>, vector<16x96xf32> -> vector<16x96xf32>
    %c0_68 = arith.constant 0 : index
    %c0_69 = arith.constant 0 : index
    %178 = vector.load %arg16[%c0_68, %c0_69] : memref<1x96xf32, #tpu.memory_space<vmem>>, vector<1x96xf32>
    %179 = vector.broadcast %178 : vector<1x96xf32> to vector<16x96xf32>
    %180 = arith.addf %177, %179 : vector<16x96xf32>
    %181 = vector.extract_strided_slice %180 {offsets = [0, 0], sizes = [16, 32], strides = [1, 1]} : vector<16x96xf32> to vector<16x32xf32>
    %cst_70 = arith.constant 0.353553385 : f32
    %182 = vector.broadcast %cst_70 : f32 to vector<16x32xf32>
    %183 = arith.mulf %181, %182 : vector<16x32xf32>
    %184 = vector.extract_strided_slice %180 {offsets = [0, 32], sizes = [16, 32], strides = [1, 1]} : vector<16x96xf32> to vector<16x32xf32>
    %185 = vector.extract_strided_slice %180 {offsets = [0, 64], sizes = [16, 32], strides = [1, 1]} : vector<16x96xf32> to vector<16x32xf32>
    %186 = vector.extract_strided_slice %183 {offsets = [0, 0], sizes = [8, 32], strides = [1, 1]} : vector<16x32xf32> to vector<8x32xf32>
    %187 = vector.extract_strided_slice %184 {offsets = [0, 0], sizes = [8, 32], strides = [1, 1]} : vector<16x32xf32> to vector<8x32xf32>
    %188 = vector.extract_strided_slice %11 {offsets = [0, 0], sizes = [1, 8], strides = [1, 1]} : vector<2x8xf32> to vector<1x8xf32>
    %189 = vector.extract_strided_slice %186 {offsets = [0, 0], sizes = [8, 8], strides = [1, 1]} : vector<8x32xf32> to vector<8x8xf32>
    %190 = vector.extract_strided_slice %187 {offsets = [0, 0], sizes = [8, 8], strides = [1, 1]} : vector<8x32xf32> to vector<8x8xf32>
    %cst_71 = arith.constant dense<0.000000e+00> : vector<8x8xf32>
    %191 = tpu.matmul %189, %190, %cst_71 {dimension_numbers = #tpu.dot_dimension_numbers<[1], [1], [0], [0], [0, 0, 1, 0], [], []>} : vector<8x8xf32>, vector<8x8xf32>, vector<8x8xf32> -> vector<8x8xf32>
    %192 = vector.broadcast %188 : vector<1x8xf32> to vector<8x8xf32>
    %193 = arith.addf %191, %192 : vector<8x8xf32>
    %194 = vector.extract_strided_slice %186 {offsets = [0, 8], sizes = [8, 8], strides = [1, 1]} : vector<8x32xf32> to vector<8x8xf32>
    %195 = vector.extract_strided_slice %187 {offsets = [0, 8], sizes = [8, 8], strides = [1, 1]} : vector<8x32xf32> to vector<8x8xf32>
    %cst_72 = arith.constant dense<0.000000e+00> : vector<8x8xf32>
    %196 = tpu.matmul %194, %195, %cst_72 {dimension_numbers = #tpu.dot_dimension_numbers<[1], [1], [0], [0], [0, 0, 1, 0], [], []>} : vector<8x8xf32>, vector<8x8xf32>, vector<8x8xf32> -> vector<8x8xf32>
    %197 = vector.broadcast %188 : vector<1x8xf32> to vector<8x8xf32>
    %198 = arith.addf %196, %197 : vector<8x8xf32>
    %199 = vector.extract_strided_slice %186 {offsets = [0, 16], sizes = [8, 8], strides = [1, 1]} : vector<8x32xf32> to vector<8x8xf32>
    %200 = vector.extract_strided_slice %187 {offsets = [0, 16], sizes = [8, 8], strides = [1, 1]} : vector<8x32xf32> to vector<8x8xf32>
    %cst_73 = arith.constant dense<0.000000e+00> : vector<8x8xf32>
    %201 = tpu.matmul %199, %200, %cst_73 {dimension_numbers = #tpu.dot_dimension_numbers<[1], [1], [0], [0], [0, 0, 1, 0], [], []>} : vector<8x8xf32>, vector<8x8xf32>, vector<8x8xf32> -> vector<8x8xf32>
    %202 = vector.broadcast %188 : vector<1x8xf32> to vector<8x8xf32>
    %203 = arith.addf %201, %202 : vector<8x8xf32>
    %204 = vector.extract_strided_slice %186 {offsets = [0, 24], sizes = [8, 8], strides = [1, 1]} : vector<8x32xf32> to vector<8x8xf32>
    %205 = vector.extract_strided_slice %187 {offsets = [0, 24], sizes = [8, 8], strides = [1, 1]} : vector<8x32xf32> to vector<8x8xf32>
    %cst_74 = arith.constant dense<0.000000e+00> : vector<8x8xf32>
    %206 = tpu.matmul %204, %205, %cst_74 {dimension_numbers = #tpu.dot_dimension_numbers<[1], [1], [0], [0], [0, 0, 1, 0], [], []>} : vector<8x8xf32>, vector<8x8xf32>, vector<8x8xf32> -> vector<8x8xf32>
    %207 = vector.broadcast %188 : vector<1x8xf32> to vector<8x8xf32>
    %208 = arith.addf %206, %207 : vector<8x8xf32>
    %209 = vector.extract_strided_slice %183 {offsets = [8, 0], sizes = [8, 32], strides = [1, 1]} : vector<16x32xf32> to vector<8x32xf32>
    %210 = vector.extract_strided_slice %184 {offsets = [8, 0], sizes = [8, 32], strides = [1, 1]} : vector<16x32xf32> to vector<8x32xf32>
    %211 = vector.extract_strided_slice %11 {offsets = [1, 0], sizes = [1, 8], strides = [1, 1]} : vector<2x8xf32> to vector<1x8xf32>
    %212 = vector.extract_strided_slice %209 {offsets = [0, 0], sizes = [8, 8], strides = [1, 1]} : vector<8x32xf32> to vector<8x8xf32>
    %213 = vector.extract_strided_slice %210 {offsets = [0, 0], sizes = [8, 8], strides = [1, 1]} : vector<8x32xf32> to vector<8x8xf32>
    %cst_75 = arith.constant dense<0.000000e+00> : vector<8x8xf32>
    %214 = tpu.matmul %212, %213, %cst_75 {dimension_numbers = #tpu.dot_dimension_numbers<[1], [1], [0], [0], [0, 0, 1, 0], [], []>} : vector<8x8xf32>, vector<8x8xf32>, vector<8x8xf32> -> vector<8x8xf32>
    %215 = vector.broadcast %211 : vector<1x8xf32> to vector<8x8xf32>
    %216 = arith.addf %214, %215 : vector<8x8xf32>
    %217 = vector.extract_strided_slice %209 {offsets = [0, 8], sizes = [8, 8], strides = [1, 1]} : vector<8x32xf32> to vector<8x8xf32>
    %218 = vector.extract_strided_slice %210 {offsets = [0, 8], sizes = [8, 8], strides = [1, 1]} : vector<8x32xf32> to vector<8x8xf32>
    %cst_76 = arith.constant dense<0.000000e+00> : vector<8x8xf32>
    %219 = tpu.matmul %217, %218, %cst_76 {dimension_numbers = #tpu.dot_dimension_numbers<[1], [1], [0], [0], [0, 0, 1, 0], [], []>} : vector<8x8xf32>, vector<8x8xf32>, vector<8x8xf32> -> vector<8x8xf32>
    %220 = vector.broadcast %211 : vector<1x8xf32> to vector<8x8xf32>
    %221 = arith.addf %219, %220 : vector<8x8xf32>
    %222 = vector.extract_strided_slice %209 {offsets = [0, 16], sizes = [8, 8], strides = [1, 1]} : vector<8x32xf32> to vector<8x8xf32>
    %223 = vector.extract_strided_slice %210 {offsets = [0, 16], sizes = [8, 8], strides = [1, 1]} : vector<8x32xf32> to vector<8x8xf32>
    %cst_77 = arith.constant dense<0.000000e+00> : vector<8x8xf32>
    %224 = tpu.matmul %222, %223, %cst_77 {dimension_numbers = #tpu.dot_dimension_numbers<[1], [1], [0], [0], [0, 0, 1, 0], [], []>} : vector<8x8xf32>, vector<8x8xf32>, vector<8x8xf32> -> vector<8x8xf32>
    %225 = vector.broadcast %211 : vector<1x8xf32> to vector<8x8xf32>
    %226 = arith.addf %224, %225 : vector<8x8xf32>
    %227 = vector.extract_strided_slice %209 {offsets = [0, 24], sizes = [8, 8], strides = [1, 1]} : vector<8x32xf32> to vector<8x8xf32>
    %228 = vector.extract_strided_slice %210 {offsets = [0, 24], sizes = [8, 8], strides = [1, 1]} : vector<8x32xf32> to vector<8x8xf32>
    %cst_78 = arith.constant dense<0.000000e+00> : vector<8x8xf32>
    %229 = tpu.matmul %227, %228, %cst_78 {dimension_numbers = #tpu.dot_dimension_numbers<[1], [1], [0], [0], [0, 0, 1, 0], [], []>} : vector<8x8xf32>, vector<8x8xf32>, vector<8x8xf32> -> vector<8x8xf32>
    %230 = vector.broadcast %211 : vector<1x8xf32> to vector<8x8xf32>
    %231 = arith.addf %229, %230 : vector<8x8xf32>
    %232 = tpu.concatenate %193, %198, %203, %208, %216, %221, %226, %231 in 0 : vector<8x8xf32>, vector<8x8xf32>, vector<8x8xf32>, vector<8x8xf32>, vector<8x8xf32>, vector<8x8xf32>, vector<8x8xf32>, vector<8x8xf32> -> vector<64x8xf32>
    %cst_79 = arith.constant dense<0xFF800000> : vector<64xf32>
    %233 = vector.multi_reduction <maximumf>, %232, %cst_79 [1] : vector<64x8xf32> to vector<64xf32>
    %234 = vector.shape_cast %233 : vector<64xf32> to vector<64x1xf32>
    %235 = vector.broadcast %234 : vector<64x1xf32> to vector<64x8xf32>
    %236 = arith.subf %232, %235 : vector<64x8xf32>
    %237 = math.exp %236 : vector<64x8xf32>
    %cst_80 = arith.constant dense<0.000000e+00> : vector<64xf32>
    %238 = vector.multi_reduction <add>, %237, %cst_80 [1] : vector<64x8xf32> to vector<64xf32>
    %239 = vector.shape_cast %238 : vector<64xf32> to vector<64x1xf32>
    %240 = tpu.reciprocal %239 {approx = true} : vector<64x1xf32> -> vector<64x1xf32>
    %241 = vector.broadcast %240 : vector<64x1xf32> to vector<64x8xf32>
    %242 = arith.mulf %237, %241 : vector<64x8xf32>
    %243 = vector.extract_strided_slice %185 {offsets = [0, 0], sizes = [8, 32], strides = [1, 1]} : vector<16x32xf32> to vector<8x32xf32>
    %244 = vector.extract_strided_slice %242 {offsets = [0, 0], sizes = [8, 8], strides = [1, 1]} : vector<64x8xf32> to vector<8x8xf32>
    %245 = vector.extract_strided_slice %243 {offsets = [0, 0], sizes = [8, 8], strides = [1, 1]} : vector<8x32xf32> to vector<8x8xf32>
    %cst_81 = arith.constant dense<0.000000e+00> : vector<8x8xf32>
    %246 = tpu.matmul %244, %245, %cst_81 {dimension_numbers = #tpu.dot_dimension_numbers<[1], [0], [0], [1], [0, 0, 1, 1], [], []>} : vector<8x8xf32>, vector<8x8xf32>, vector<8x8xf32> -> vector<8x8xf32>
    %247 = vector.extract_strided_slice %242 {offsets = [8, 0], sizes = [8, 8], strides = [1, 1]} : vector<64x8xf32> to vector<8x8xf32>
    %248 = vector.extract_strided_slice %243 {offsets = [0, 8], sizes = [8, 8], strides = [1, 1]} : vector<8x32xf32> to vector<8x8xf32>
    %cst_82 = arith.constant dense<0.000000e+00> : vector<8x8xf32>
    %249 = tpu.matmul %247, %248, %cst_82 {dimension_numbers = #tpu.dot_dimension_numbers<[1], [0], [0], [1], [0, 0, 1, 1], [], []>} : vector<8x8xf32>, vector<8x8xf32>, vector<8x8xf32> -> vector<8x8xf32>
    %250 = vector.extract_strided_slice %242 {offsets = [16, 0], sizes = [8, 8], strides = [1, 1]} : vector<64x8xf32> to vector<8x8xf32>
    %251 = vector.extract_strided_slice %243 {offsets = [0, 16], sizes = [8, 8], strides = [1, 1]} : vector<8x32xf32> to vector<8x8xf32>
    %cst_83 = arith.constant dense<0.000000e+00> : vector<8x8xf32>
    %252 = tpu.matmul %250, %251, %cst_83 {dimension_numbers = #tpu.dot_dimension_numbers<[1], [0], [0], [1], [0, 0, 1, 1], [], []>} : vector<8x8xf32>, vector<8x8xf32>, vector<8x8xf32> -> vector<8x8xf32>
    %253 = vector.extract_strided_slice %242 {offsets = [24, 0], sizes = [8, 8], strides = [1, 1]} : vector<64x8xf32> to vector<8x8xf32>
    %254 = vector.extract_strided_slice %243 {offsets = [0, 24], sizes = [8, 8], strides = [1, 1]} : vector<8x32xf32> to vector<8x8xf32>
    %cst_84 = arith.constant dense<0.000000e+00> : vector<8x8xf32>
    %255 = tpu.matmul %253, %254, %cst_84 {dimension_numbers = #tpu.dot_dimension_numbers<[1], [0], [0], [1], [0, 0, 1, 1], [], []>} : vector<8x8xf32>, vector<8x8xf32>, vector<8x8xf32> -> vector<8x8xf32>
    %256 = tpu.concatenate %246, %249, %252, %255 in 1 : vector<8x8xf32>, vector<8x8xf32>, vector<8x8xf32>, vector<8x8xf32> -> vector<8x32xf32>
    %257 = vector.extract_strided_slice %185 {offsets = [8, 0], sizes = [8, 32], strides = [1, 1]} : vector<16x32xf32> to vector<8x32xf32>
    %258 = vector.extract_strided_slice %242 {offsets = [32, 0], sizes = [8, 8], strides = [1, 1]} : vector<64x8xf32> to vector<8x8xf32>
    %259 = vector.extract_strided_slice %257 {offsets = [0, 0], sizes = [8, 8], strides = [1, 1]} : vector<8x32xf32> to vector<8x8xf32>
    %cst_85 = arith.constant dense<0.000000e+00> : vector<8x8xf32>
    %260 = tpu.matmul %258, %259, %cst_85 {dimension_numbers = #tpu.dot_dimension_numbers<[1], [0], [0], [1], [0, 0, 1, 1], [], []>} : vector<8x8xf32>, vector<8x8xf32>, vector<8x8xf32> -> vector<8x8xf32>
    %261 = vector.extract_strided_slice %242 {offsets = [40, 0], sizes = [8, 8], strides = [1, 1]} : vector<64x8xf32> to vector<8x8xf32>
    %262 = vector.extract_strided_slice %257 {offsets = [0, 8], sizes = [8, 8], strides = [1, 1]} : vector<8x32xf32> to vector<8x8xf32>
    %cst_86 = arith.constant dense<0.000000e+00> : vector<8x8xf32>
    %263 = tpu.matmul %261, %262, %cst_86 {dimension_numbers = #tpu.dot_dimension_numbers<[1], [0], [0], [1], [0, 0, 1, 1], [], []>} : vector<8x8xf32>, vector<8x8xf32>, vector<8x8xf32> -> vector<8x8xf32>
    %264 = vector.extract_strided_slice %242 {offsets = [48, 0], sizes = [8, 8], strides = [1, 1]} : vector<64x8xf32> to vector<8x8xf32>
    %265 = vector.extract_strided_slice %257 {offsets = [0, 16], sizes = [8, 8], strides = [1, 1]} : vector<8x32xf32> to vector<8x8xf32>
    %cst_87 = arith.constant dense<0.000000e+00> : vector<8x8xf32>
    %266 = tpu.matmul %264, %265, %cst_87 {dimension_numbers = #tpu.dot_dimension_numbers<[1], [0], [0], [1], [0, 0, 1, 1], [], []>} : vector<8x8xf32>, vector<8x8xf32>, vector<8x8xf32> -> vector<8x8xf32>
    %267 = vector.extract_strided_slice %242 {offsets = [56, 0], sizes = [8, 8], strides = [1, 1]} : vector<64x8xf32> to vector<8x8xf32>
    %268 = vector.extract_strided_slice %257 {offsets = [0, 24], sizes = [8, 8], strides = [1, 1]} : vector<8x32xf32> to vector<8x8xf32>
    %cst_88 = arith.constant dense<0.000000e+00> : vector<8x8xf32>
    %269 = tpu.matmul %267, %268, %cst_88 {dimension_numbers = #tpu.dot_dimension_numbers<[1], [0], [0], [1], [0, 0, 1, 1], [], []>} : vector<8x8xf32>, vector<8x8xf32>, vector<8x8xf32> -> vector<8x8xf32>
    %270 = tpu.concatenate %260, %263, %266, %269 in 1 : vector<8x8xf32>, vector<8x8xf32>, vector<8x8xf32>, vector<8x8xf32> -> vector<8x32xf32>
    %271 = tpu.concatenate %256, %270 in 0 : vector<8x32xf32>, vector<8x32xf32> -> vector<16x32xf32>
    %272 = arith.truncf %271 : vector<16x32xf32> to vector<16x32xbf16>
    %c0_89 = arith.constant 0 : index
    %c0_90 = arith.constant 0 : index
    %273 = vector.load %arg17[%c0_89, %c0_90] : memref<32x32xbf16, #tpu.memory_space<vmem>>, vector<32x32xbf16>
    %cst_91 = arith.constant dense<0.000000e+00> : vector<16x32xf32>
    %274 = tpu.matmul %272, %273, %cst_91 {dimension_numbers = #tpu.dot_dimension_numbers<[1], [0], [0], [1], [0, 0, 1, 1], [], []>} : vector<16x32xbf16>, vector<32x32xbf16>, vector<16x32xf32> -> vector<16x32xf32>
    %c0_92 = arith.constant 0 : index
    %c0_93 = arith.constant 0 : index
    %275 = vector.load %arg18[%c0_92, %c0_93] : memref<1x32xf32, #tpu.memory_space<vmem>>, vector<1x32xf32>
    %276 = vector.broadcast %275 : vector<1x32xf32> to vector<16x32xf32>
    %277 = arith.addf %274, %276 : vector<16x32xf32>
    %278 = arith.addf %174, %277 : vector<16x32xf32>
    %c0_94 = arith.constant 0 : index
    %c0_95 = arith.constant 0 : index
    %279 = vector.load %arg19[%c0_94, %c0_95] : memref<1x32xf32, #tpu.memory_space<vmem>>, vector<1x32xf32>
    %c0_96 = arith.constant 0 : index
    %c0_97 = arith.constant 0 : index
    %280 = vector.load %arg20[%c0_96, %c0_97] : memref<1x32xf32, #tpu.memory_space<vmem>>, vector<1x32xf32>
    %cst_98 = arith.constant dense<0.000000e+00> : vector<16xf32>
    %281 = vector.multi_reduction <add>, %278, %cst_98 [1] : vector<16x32xf32> to vector<16xf32>
    %282 = vector.shape_cast %281 : vector<16xf32> to vector<16x1xf32>
    %cst_99 = arith.constant 3.200000e+01 : f32
    %283 = vector.broadcast %cst_99 : f32 to vector<16x1xf32>
    %284 = arith.divf %282, %283 : vector<16x1xf32>
    %285 = vector.broadcast %284 : vector<16x1xf32> to vector<16x32xf32>
    %286 = arith.subf %278, %285 : vector<16x32xf32>
    %287 = arith.mulf %286, %286 : vector<16x32xf32>
    %cst_100 = arith.constant dense<0.000000e+00> : vector<16xf32>
    %288 = vector.multi_reduction <add>, %287, %cst_100 [1] : vector<16x32xf32> to vector<16xf32>
    %289 = vector.shape_cast %288 : vector<16xf32> to vector<16x1xf32>
    %cst_101 = arith.constant 3.200000e+01 : f32
    %290 = vector.broadcast %cst_101 : f32 to vector<16x1xf32>
    %291 = arith.divf %289, %290 : vector<16x1xf32>
    %cst_102 = arith.constant 9.99999974E-6 : f32
    %292 = vector.broadcast %cst_102 : f32 to vector<16x1xf32>
    %293 = arith.addf %291, %292 : vector<16x1xf32>
    %294 = math.rsqrt %293 : vector<16x1xf32>
    %295 = vector.broadcast %294 : vector<16x1xf32> to vector<16x32xf32>
    %296 = arith.mulf %286, %295 : vector<16x32xf32>
    %297 = vector.broadcast %279 : vector<1x32xf32> to vector<16x32xf32>
    %298 = arith.mulf %296, %297 : vector<16x32xf32>
    %299 = vector.broadcast %280 : vector<1x32xf32> to vector<16x32xf32>
    %300 = arith.addf %298, %299 : vector<16x32xf32>
    %301 = arith.truncf %300 : vector<16x32xf32> to vector<16x32xbf16>
    %c0_103 = arith.constant 0 : index
    %c0_104 = arith.constant 0 : index
    %302 = vector.load %arg21[%c0_103, %c0_104] : memref<32x128xbf16, #tpu.memory_space<vmem>>, vector<32x128xbf16>
    %cst_105 = arith.constant dense<0.000000e+00> : vector<16x128xf32>
    %303 = tpu.matmul %301, %302, %cst_105 {dimension_numbers = #tpu.dot_dimension_numbers<[1], [0], [0], [1], [0, 0, 1, 1], [], []>} : vector<16x32xbf16>, vector<32x128xbf16>, vector<16x128xf32> -> vector<16x128xf32>
    %c0_106 = arith.constant 0 : index
    %c0_107 = arith.constant 0 : index
    %304 = vector.load %arg22[%c0_106, %c0_107] : memref<1x128xf32, #tpu.memory_space<vmem>>, vector<1x128xf32>
    %305 = vector.broadcast %304 : vector<1x128xf32> to vector<16x128xf32>
    %306 = arith.addf %303, %305 : vector<16x128xf32>
    %cst_108 = arith.constant 0.000000e+00 : f32
    %307 = vector.broadcast %cst_108 : f32 to vector<16x128xf32>
    %308 = arith.maximumf %306, %307 : vector<16x128xf32>
    %309 = arith.truncf %308 : vector<16x128xf32> to vector<16x128xbf16>
    %c0_109 = arith.constant 0 : index
    %c0_110 = arith.constant 0 : index
    %310 = vector.load %arg23[%c0_109, %c0_110] : memref<128x32xbf16, #tpu.memory_space<vmem>>, vector<128x32xbf16>
    %cst_111 = arith.constant dense<0.000000e+00> : vector<16x32xf32>
    %311 = tpu.matmul %309, %310, %cst_111 {dimension_numbers = #tpu.dot_dimension_numbers<[1], [0], [0], [1], [0, 0, 1, 1], [], []>} : vector<16x128xbf16>, vector<128x32xbf16>, vector<16x32xf32> -> vector<16x32xf32>
    %c0_112 = arith.constant 0 : index
    %c0_113 = arith.constant 0 : index
    %312 = vector.load %arg24[%c0_112, %c0_113] : memref<1x32xf32, #tpu.memory_space<vmem>>, vector<1x32xf32>
    %313 = vector.broadcast %312 : vector<1x32xf32> to vector<16x32xf32>
    %314 = arith.addf %311, %313 : vector<16x32xf32>
    %315 = arith.addf %300, %314 : vector<16x32xf32>
    %c0_114 = arith.constant 0 : index
    %c0_115 = arith.constant 0 : index
    %316 = vector.load %arg25[%c0_114, %c0_115] : memref<1x32xf32, #tpu.memory_space<vmem>>, vector<1x32xf32>
    %c0_116 = arith.constant 0 : index
    %c0_117 = arith.constant 0 : index
    %317 = vector.load %arg26[%c0_116, %c0_117] : memref<1x32xf32, #tpu.memory_space<vmem>>, vector<1x32xf32>
    %cst_118 = arith.constant dense<0.000000e+00> : vector<16xf32>
    %318 = vector.multi_reduction <add>, %315, %cst_118 [1] : vector<16x32xf32> to vector<16xf32>
    %319 = vector.shape_cast %318 : vector<16xf32> to vector<16x1xf32>
    %cst_119 = arith.constant 3.200000e+01 : f32
    %320 = vector.broadcast %cst_119 : f32 to vector<16x1xf32>
    %321 = arith.divf %319, %320 : vector<16x1xf32>
    %322 = vector.broadcast %321 : vector<16x1xf32> to vector<16x32xf32>
    %323 = arith.subf %315, %322 : vector<16x32xf32>
    %324 = arith.mulf %323, %323 : vector<16x32xf32>
    %cst_120 = arith.constant dense<0.000000e+00> : vector<16xf32>
    %325 = vector.multi_reduction <add>, %324, %cst_120 [1] : vector<16x32xf32> to vector<16xf32>
    %326 = vector.shape_cast %325 : vector<16xf32> to vector<16x1xf32>
    %cst_121 = arith.constant 3.200000e+01 : f32
    %327 = vector.broadcast %cst_121 : f32 to vector<16x1xf32>
    %328 = arith.divf %326, %327 : vector<16x1xf32>
    %cst_122 = arith.constant 9.99999974E-6 : f32
    %329 = vector.broadcast %cst_122 : f32 to vector<16x1xf32>
    %330 = arith.addf %328, %329 : vector<16x1xf32>
    %331 = math.rsqrt %330 : vector<16x1xf32>
    %332 = vector.broadcast %331 : vector<16x1xf32> to vector<16x32xf32>
    %333 = arith.mulf %323, %332 : vector<16x32xf32>
    %334 = vector.broadcast %316 : vector<1x32xf32> to vector<16x32xf32>
    %335 = arith.mulf %333, %334 : vector<16x32xf32>
    %336 = vector.broadcast %317 : vector<1x32xf32> to vector<16x32xf32>
    %337 = arith.addf %335, %336 : vector<16x32xf32>
    %338 = vector.extract_strided_slice %337 {offsets = [0, 0], sizes = [8, 32], strides = [1, 1]} : vector<16x32xf32> to vector<8x32xf32>
    %cst_123 = arith.constant dense<0.000000e+00> : vector<32xf32>
    %339 = vector.multi_reduction <add>, %338, %cst_123 [0] : vector<8x32xf32> to vector<32xf32>
    %340 = vector.shape_cast %339 : vector<32xf32> to vector<1x32xf32>
    %cst_124 = arith.constant 8.000000e+00 : f32
    %341 = vector.broadcast %cst_124 : f32 to vector<1x32xf32>
    %342 = arith.divf %340, %341 : vector<1x32xf32>
    %343 = vector.extract_strided_slice %337 {offsets = [8, 0], sizes = [8, 32], strides = [1, 1]} : vector<16x32xf32> to vector<8x32xf32>
    %cst_125 = arith.constant dense<0.000000e+00> : vector<32xf32>
    %344 = vector.multi_reduction <add>, %343, %cst_125 [0] : vector<8x32xf32> to vector<32xf32>
    %345 = vector.shape_cast %344 : vector<32xf32> to vector<1x32xf32>
    %cst_126 = arith.constant 8.000000e+00 : f32
    %346 = vector.broadcast %cst_126 : f32 to vector<1x32xf32>
    %347 = arith.divf %345, %346 : vector<1x32xf32>
    %348 = tpu.concatenate %342, %347 in 0 : vector<1x32xf32>, vector<1x32xf32> -> vector<2x32xf32>
    %349 = arith.truncf %348 : vector<2x32xf32> to vector<2x32xbf16>
    %c0_127 = arith.constant 0 : index
    %c0_128 = arith.constant 0 : index
    %350 = vector.load %arg27[%c0_127, %c0_128] : memref<32x704xbf16, #tpu.memory_space<vmem>>, vector<32x704xbf16>
    %cst_129 = arith.constant dense<0.000000e+00> : vector<2x704xf32>
    %351 = tpu.matmul %349, %350, %cst_129 {dimension_numbers = #tpu.dot_dimension_numbers<[1], [0], [0], [1], [0, 0, 1, 1], [], []>} : vector<2x32xbf16>, vector<32x704xbf16>, vector<2x704xf32> -> vector<2x704xf32>
    %c0_130 = arith.constant 0 : index
    %c0_131 = arith.constant 0 : index
    %352 = vector.load %arg28[%c0_130, %c0_131] : memref<1x704xf32, #tpu.memory_space<vmem>>, vector<1x704xf32>
    %353 = vector.broadcast %352 : vector<1x704xf32> to vector<2x704xf32>
    %354 = arith.addf %351, %353 : vector<2x704xf32>
    %c0_132 = arith.constant 0 : index
    %c0_133 = arith.constant 0 : index
    %355 = vector.load %arg29[%c0_132, %c0_133] : memref<1x704xf32, #tpu.memory_space<vmem>>, vector<1x704xf32>
    %c0_134 = arith.constant 0 : index
    %c0_135 = arith.constant 0 : index
    %356 = vector.load %arg30[%c0_134, %c0_135] : memref<1x704xf32, #tpu.memory_space<vmem>>, vector<1x704xf32>
    %cst_136 = arith.constant dense<0.000000e+00> : vector<2xf32>
    %357 = vector.multi_reduction <add>, %354, %cst_136 [1] : vector<2x704xf32> to vector<2xf32>
    %358 = vector.shape_cast %357 : vector<2xf32> to vector<2x1xf32>
    %cst_137 = arith.constant 7.040000e+02 : f32
    %359 = vector.broadcast %cst_137 : f32 to vector<2x1xf32>
    %360 = arith.divf %358, %359 : vector<2x1xf32>
    %361 = vector.broadcast %360 : vector<2x1xf32> to vector<2x704xf32>
    %362 = arith.subf %354, %361 : vector<2x704xf32>
    %363 = arith.mulf %362, %362 : vector<2x704xf32>
    %cst_138 = arith.constant dense<0.000000e+00> : vector<2xf32>
    %364 = vector.multi_reduction <add>, %363, %cst_138 [1] : vector<2x704xf32> to vector<2xf32>
    %365 = vector.shape_cast %364 : vector<2xf32> to vector<2x1xf32>
    %cst_139 = arith.constant 7.040000e+02 : f32
    %366 = vector.broadcast %cst_139 : f32 to vector<2x1xf32>
    %367 = arith.divf %365, %366 : vector<2x1xf32>
    %cst_140 = arith.constant 9.99999974E-6 : f32
    %368 = vector.broadcast %cst_140 : f32 to vector<2x1xf32>
    %369 = arith.addf %367, %368 : vector<2x1xf32>
    %370 = math.rsqrt %369 : vector<2x1xf32>
    %371 = vector.broadcast %370 : vector<2x1xf32> to vector<2x704xf32>
    %372 = arith.mulf %362, %371 : vector<2x704xf32>
    %373 = vector.broadcast %355 : vector<1x704xf32> to vector<2x704xf32>
    %374 = arith.mulf %372, %373 : vector<2x704xf32>
    %375 = vector.broadcast %356 : vector<1x704xf32> to vector<2x704xf32>
    %376 = arith.addf %374, %375 : vector<2x704xf32>
    %cst_141 = arith.constant 0.000000e+00 : f32
    %377 = vector.broadcast %cst_141 : f32 to vector<2x704xf32>
    %378 = arith.cmpf oge, %376, %377 : vector<2x704xf32>
    %cst_142 = arith.constant 0.00999999977 : f32
    %379 = vector.broadcast %cst_142 : f32 to vector<2x704xf32>
    %380 = arith.mulf %379, %376 : vector<2x704xf32>
    %381 = arith.select %378, %376, %380 : vector<2x704xi1>, vector<2x704xf32>
    %382 = arith.truncf %381 : vector<2x704xf32> to vector<2x704xbf16>
    %c0_143 = arith.constant 0 : index
    %c0_144 = arith.constant 0 : index
    %383 = vector.load %arg31[%c0_143, %c0_144] : memref<704x512xbf16, #tpu.memory_space<vmem>>, vector<704x512xbf16>
    %cst_145 = arith.constant dense<0.000000e+00> : vector<2x512xf32>
    %384 = tpu.matmul %382, %383, %cst_145 {dimension_numbers = #tpu.dot_dimension_numbers<[1], [0], [0], [1], [0, 0, 1, 1], [], []>} : vector<2x704xbf16>, vector<704x512xbf16>, vector<2x512xf32> -> vector<2x512xf32>
    %c0_146 = arith.constant 0 : index
    %c0_147 = arith.constant 0 : index
    %385 = vector.load %arg32[%c0_146, %c0_147] : memref<1x512xf32, #tpu.memory_space<vmem>>, vector<1x512xf32>
    %386 = vector.broadcast %385 : vector<1x512xf32> to vector<2x512xf32>
    %387 = arith.addf %384, %386 : vector<2x512xf32>
    %c0_148 = arith.constant 0 : index
    %c0_149 = arith.constant 0 : index
    %388 = vector.load %arg33[%c0_148, %c0_149] : memref<1x512xf32, #tpu.memory_space<vmem>>, vector<1x512xf32>
    %c0_150 = arith.constant 0 : index
    %c0_151 = arith.constant 0 : index
    %389 = vector.load %arg34[%c0_150, %c0_151] : memref<1x512xf32, #tpu.memory_space<vmem>>, vector<1x512xf32>
    %cst_152 = arith.constant dense<0.000000e+00> : vector<2xf32>
    %390 = vector.multi_reduction <add>, %387, %cst_152 [1] : vector<2x512xf32> to vector<2xf32>
    %391 = vector.shape_cast %390 : vector<2xf32> to vector<2x1xf32>
    %cst_153 = arith.constant 5.120000e+02 : f32
    %392 = vector.broadcast %cst_153 : f32 to vector<2x1xf32>
    %393 = arith.divf %391, %392 : vector<2x1xf32>
    %394 = vector.broadcast %393 : vector<2x1xf32> to vector<2x512xf32>
    %395 = arith.subf %387, %394 : vector<2x512xf32>
    %396 = arith.mulf %395, %395 : vector<2x512xf32>
    %cst_154 = arith.constant dense<0.000000e+00> : vector<2xf32>
    %397 = vector.multi_reduction <add>, %396, %cst_154 [1] : vector<2x512xf32> to vector<2xf32>
    %398 = vector.shape_cast %397 : vector<2xf32> to vector<2x1xf32>
    %cst_155 = arith.constant 5.120000e+02 : f32
    %399 = vector.broadcast %cst_155 : f32 to vector<2x1xf32>
    %400 = arith.divf %398, %399 : vector<2x1xf32>
    %cst_156 = arith.constant 9.99999974E-6 : f32
    %401 = vector.broadcast %cst_156 : f32 to vector<2x1xf32>
    %402 = arith.addf %400, %401 : vector<2x1xf32>
    %403 = math.rsqrt %402 : vector<2x1xf32>
    %404 = vector.broadcast %403 : vector<2x1xf32> to vector<2x512xf32>
    %405 = arith.mulf %395, %404 : vector<2x512xf32>
    %406 = vector.broadcast %388 : vector<1x512xf32> to vector<2x512xf32>
    %407 = arith.mulf %405, %406 : vector<2x512xf32>
    %408 = vector.broadcast %389 : vector<1x512xf32> to vector<2x512xf32>
    %409 = arith.addf %407, %408 : vector<2x512xf32>
    %cst_157 = arith.constant 0.000000e+00 : f32
    %410 = vector.broadcast %cst_157 : f32 to vector<2x512xf32>
    %411 = arith.cmpf oge, %409, %410 : vector<2x512xf32>
    %cst_158 = arith.constant 0.00999999977 : f32
    %412 = vector.broadcast %cst_158 : f32 to vector<2x512xf32>
    %413 = arith.mulf %412, %409 : vector<2x512xf32>
    %414 = arith.select %411, %409, %413 : vector<2x512xi1>, vector<2x512xf32>
    %415 = arith.truncf %414 : vector<2x512xf32> to vector<2x512xbf16>
    %c0_159 = arith.constant 0 : index
    %c0_160 = arith.constant 0 : index
    %416 = vector.load %arg35[%c0_159, %c0_160] : memref<512x5xbf16, #tpu.memory_space<vmem>>, vector<512x5xbf16>
    %cst_161 = arith.constant dense<0.000000e+00> : vector<2x5xf32>
    %417 = tpu.matmul %415, %416, %cst_161 {dimension_numbers = #tpu.dot_dimension_numbers<[1], [0], [0], [1], [0, 0, 1, 1], [], []>} : vector<2x512xbf16>, vector<512x5xbf16>, vector<2x5xf32> -> vector<2x5xf32>
    %c0_162 = arith.constant 0 : index
    %c0_163 = arith.constant 0 : index
    %418 = vector.load %arg36[%c0_162, %c0_163] : memref<1x5xf32, #tpu.memory_space<vmem>>, vector<1x5xf32>
    %419 = vector.broadcast %418 : vector<1x5xf32> to vector<2x5xf32>
    %420 = arith.addf %417, %419 : vector<2x5xf32>
    %c0_164 = arith.constant 0 : index
    %c0_165 = arith.constant 0 : index
    %421 = vector.load %arg37[%c0_164, %c0_165] : memref<2x5xf32, #tpu.memory_space<vmem>>, vector<2x5xf32>
    tpu.vector_store %arg37[%c0_164, %c0_165], %420 {strides = array<i32>} : memref<2x5xf32, #tpu.memory_space<vmem>>, vector<2x5xf32>,
    return
  }
}

</mosaic_0001>

<bundles_post_ra>
// kernel: model_forward.1
= control target key start
LH: loop header
LB: loop body
LE: loop exit
PB: predicated region body
PF: predicated region fallthrough
CT: control target
= control target key end

     0   :  { %s7329_s6 = smov 1   ;;  %s7330_s10 = smov 2   ;;  %s8304_s0 = inlined_call_operand.smem [shape: u32[38], index: -1, kind: input, shape index: {}] }
   0x1   :  { %s7394_s5 = sld [smem:[%s8304_s0]]   ;;  %s7331_s14 = smov 3  }
   0x2   :  { %s7399_s9 = sld [smem:[%s8304_s0 + %s7329_s6]]   ;;  %s7332_s18 = smov 4  }
   0x3   :  { %s7404_s13 = sld [smem:[%s8304_s0 + %s7330_s10]]   ;;  %s7333_s22 = smov 5  }
   0x4   :  { %s7409_s17 = sld [smem:[%s8304_s0 + %s7331_s14]]   ;;  %s7334_s26 = smov 6  }
   0x5   :  { %s7414_s21 = sld [smem:[%s8304_s0 + %s7332_s18]]   ;;  %s7335_s30 = smov 7  }
   0x6   :  { %s7419_s25 = sld [smem:[%s8304_s0 + %s7333_s22]]   ;;  %s7336_s4 = smov 8  }
   0x7   :  { %s7424_s29 = sld [smem:[%s8304_s0 + %s7334_s26]]   ;;  %s7337_s10 = smov 9  }
   0x8   :  { %s7429_s3 = sld [smem:[%s8304_s0 + %s7335_s30]]   ;;  %s7338_s15 = smov 10  }
   0x9   :  { %s7434_s8 = sld [smem:[%s8304_s0 + %s7336_s4]]   ;;  %s7339_s20 = smov 11  }
   0xa   :  { %s7439_s14 = sld [smem:[%s8304_s0 + %s7337_s10]]   ;;  %s7340_s26 = smov 12  }
   0xb   :  { %s7444_s19 = sld [smem:[%s8304_s0 + %s7338_s15]]   ;;  %s7341_s1 = smov 13  }
   0xc   :  { %s7449_s24 = sld [smem:[%s8304_s0 + %s7339_s20]]   ;;  %s7342_s7 = smov 14  }
   0xd   :  { %s7454_s30 = sld [smem:[%s8304_s0 + %s7340_s26]]   ;;  %s7343_s15 = smov 15  }
   0xe   :  { %s7459_s6 = sld [smem:[%s8304_s0 + %s7341_s1]]   ;;  %s7344_s22 = smov 16  }
   0xf   :  { %s7464_s12 = sld [smem:[%s8304_s0 + %s7342_s7]]   ;;  %s7345_s28 = smov 17  }
  0x10   :  { %s7469_s20 = sld [smem:[%s8304_s0 + %s7343_s15]]   ;;  %s7346_s7 = smov 18  }
  0x11   :  { %s7474_s27 = sld [smem:[%s8304_s0 + %s7344_s22]]   ;;  %s7347_s15 = smov 19  }
  0x12   :  { %s7479_s4 = sld [smem:[%s8304_s0 + %s7345_s28]]   ;;  %s7348_s22 = smov 20  }
  0x13   :  { %s7349_s28 = smov 21  }
  0x14   :  { %8310 = sst [smem:[#allocation8_spill]] %s7459_s6 }
  0x15   :  { %8311 = sst [smem:[#allocation9_spill]] %s7464_s12 }
  0x16   :  { %8312 = sst [smem:[#allocation10_spill]] %s7469_s20 }
  0x17   :  { %8313 = sst [smem:[#allocation11_spill]] %s7474_s27 }
  0x18   :  { %8314 = sst [smem:[#allocation12_spill]] %s7479_s4 }
  0x19   :  { %s7484_s12 = sld [smem:[%s8304_s0 + %s7346_s7]]   ;;  %s7350_s7 = smov 22  }
  0x1a   :  { %s7489_s6 = sld [smem:[%s8304_s0 + %s7347_s15]]   ;;  %s7351_s15 = smov 23  }
  0x1b   :  { %s7494_s27 = sld [smem:[%s8304_s0 + %s7348_s22]]   ;;  %s7352_s22 = smov 24  }
  0x1c   :  { %s7499_s4 = sld [smem:[%s8304_s0 + %s7349_s28]]   ;;  %s7353_s28 = smov 25  }
  0x1f   :  { %8315 = sst [smem:[#allocation13_spill]] %s7484_s12 }
  0x20   :  { %8316 = sst [smem:[#allocation14_spill]] %s7489_s6 }
  0x21   :  { %8317 = sst [smem:[#allocation15_spill]] %s7494_s27 }
  0x22   :  { %8318 = sst [smem:[#allocation16_spill]] %s7499_s4 }
  0x23   :  { %s7504_s12 = sld [smem:[%s8304_s0 + %s7350_s7]]   ;;  %s7354_s7 = smov 26  }
  0x24   :  { %s7509_s6 = sld [smem:[%s8304_s0 + %s7351_s15]]   ;;  %s7355_s15 = smov 27  }
  0x25   :  { %s7514_s27 = sld [smem:[%s8304_s0 + %s7352_s22]]   ;;  %s7356_s22 = smov 28  }
  0x26   :  { %s7519_s4 = sld [smem:[%s8304_s0 + %s7353_s28]]   ;;  %s7357_s28 = smov 29  }
  0x29   :  { %8319 = sst [smem:[#allocation17_spill]] %s7504_s12 }
  0x2a   :  { %8320 = sst [smem:[#allocation18_spill]] %s7509_s6 }
  0x2b   :  { %8321 = sst [smem:[#allocation19_spill]] %s7514_s27 }
  0x2c   :  { %8322 = sst [smem:[#allocation20_spill]] %s7519_s4 }
  0x2d   :  { %s7524_s12 = sld [smem:[%s8304_s0 + %s7354_s7]]   ;;  %s7358_s7 = smov 30  }
  0x2e   :  { %s7529_s6 = sld [smem:[%s8304_s0 + %s7355_s15]]   ;;  %s7359_s15 = smov 31  }
  0x2f   :  { %s7534_s27 = sld [smem:[%s8304_s0 + %s7356_s22]]   ;;  %s7360_s22 = smov 32  }
  0x30   :  { %s7539_s4 = sld [smem:[%s8304_s0 + %s7357_s28]]   ;;  %s7361_s28 = smov 33  }
  0x33   :  { %8323 = sst [smem:[#allocation21_spill]] %s7524_s12 }
  0x34   :  { %8324 = sst [smem:[#allocation22_spill]] %s7529_s6 }
  0x35   :  { %8325 = sst [smem:[#allocation23_spill]] %s7534_s27 }
  0x36   :  { %8326 = sst [smem:[#allocation24_spill]] %s7539_s4 }
  0x37   :  { %s7544_s12 = sld [smem:[%s8304_s0 + %s7358_s7]]   ;;  %s7362_s7 = smov 34  }
  0x38   :  { %s7549_s6 = sld [smem:[%s8304_s0 + %s7359_s15]]   ;;  %s7363_s15 = smov 35  }
  0x39   :  { %s7554_s27 = sld [smem:[%s8304_s0 + %s7360_s22]]   ;;  %s7364_s22 = smov 36  }
  0x3a   :  { %s7559_s4 = sld [smem:[%s8304_s0 + %s7361_s28]]   ;;  %s7365_s28 = smov 37  }
  0x3b   :  { %s7569_s20 = sld [smem:[%s8304_s0 + %s7363_s15]]  }
  0x3d   :  { %8327 = sst [smem:[#allocation25_spill]] %s7544_s12 }
  0x3e   :  { %s7564_s12 = sld [smem:[%s8304_s0 + %s7362_s7]]  }
  0x3f   :  { %8328 = sst [smem:[#allocation26_spill]] %s7554_s27 }
  0x40   :  { %8329 = sst [smem:[#allocation27_spill]] %s7559_s4 }
  0x41   :  { %s7574_s27 = sld [smem:[%s8304_s0 + %s7364_s22]]  }
  0x42   :  { %s7579_s4 = sld [smem:[%s8304_s0 + %s7365_s28]]  }
  0x43   :  { %80 = vsyncpa [#allocation3], 0 }
  0x44   :  { %81 = vsyncpa [#allocation4], 0  ;;  %s7366_s7 = smov [#allocation2]   ;;  %s7281_s11 = scalar_lea.hbm %s7549_s6, 22528 }
  0x45   :  { %s149_s10 = sshll.u32 %s7366_s7, 4  ;;  %p7282_p0 = scmp.ne.s32.totalorder %s7549_s6, %s7281_s11  ;;  %s150_s10 = int_to_ptr.vmem [resolvable:$true] %s149_s10 }
  0x46   :  { %p7285_p1 = scmp.lt.u32.totalorder %s7281_s11, %s7549_s6 }
  0x48   :  { %p7287_p2 = pnand %p7285_p1, %p7282_p0 }
  0x4a   :  { %7290 = shalt.err (!%p7287_p2)
}
  0x4b   :  { %s7291_s15 = scalar_lea.vmem %s150_s10, 22528  ;;  %p7296_p4 = scmp.lt.s32.totalorder %s150_s10, %s150_s10 }
  0x4c   :  { %p7292_p3 = scmp.ne.s32.totalorder %s150_s10, %s7291_s15  ;;  %p7297_p5 = scmp.lt.s32.totalorder %s7291_s15, %s7291_s15 }
  0x4e   :  { %p7298_p6 = por %p7297_p5, %p7296_p4 }
  0x50   :  { %p7299_p7 = pnand %p7298_p6, %p7292_p3 }
  0x52   :  { %7302 = shalt.err (!%p7299_p7)
}
  0x53   :  { %s7367_s0 = smov 256   ;;  %s7368_s16 = smov 16  }
  0x54   :  { %155 = dma.hbm_to_vmem [thread:$0]  %s7549_s6, 22528, %s150_s10, [#allocation3], %s7367_s0, %s7367_s0, %s7368_s16  }
  0x55   :  { %7325 = dma.done.wait [#allocation3], 22528  }
  0x56   :  { %7326 = vsyncadd [#allocation3], 4294944768  ;;  %v7369_v0 = vmov 0   ;;  %v7370_v1 = vmov 0.0   ;;  %v170_v2 = vld [vmem:[%s7394_s5] sm:$0xff]  ;;  %v186_v4 = vld [vmem:[%s7404_s13 + $0x8] sm:$0xff]  ;;  %v172_v17 = vlaneseq }
  0x57   :  { %6824 = vset.pattern.permute.xlu0 %v7369_v0  ;;  %6487 = vmatprep.subr.bf16.mxu0 %v7370_v1  ;;  %v185_v3 = vld [vmem:[%s7404_s13] sm:$0xff]  ;;  %v187_v5 = vld [vmem:[%s7404_s13 + $0x10] sm:$0xff]  ;;  %v188_v6 = vld [vmem:[%s7404_s13 + $0x18] sm:$0xff]  ;;  %vm200_vm0 = vcmask 1040384   ;;  %vm7371_vm1 = vmmov 0   ;;  %vm196_vm4 = vcmask 408576  }
  0x58   :  { %6499 = vmatprep.subr.bf16.mxu1 %v7370_v1  ;;  %175 = vperm.xlu0 %6824, %v170_v2   ;;  %v171_v7 = vld [vmem:[%s7394_s5 + $0x8] sm:$0xff]  ;;  %v192_v8 = vpack.c.bf16 %v186_v4, %v185_v3  ;;  %v191_v9 = vld [vmem:[%s7404_s13 + $0x30] sm:$0x3]  ;;  %v189_v10 = vld [vmem:[%s7404_s13 + $0x20] sm:$0xff]  ;;  %v193_v12 = vpack.c.bf16 %v188_v6, %v187_v5  ;;  %v173_v18 = vand.u32 127, %v172_v17  ;;  %vm270_vm5 = vcmask 261120  }
  0x59   :  { %v190_v11 = vld [vmem:[%s7404_s13 + $0x28] sm:$0xff]  ;;  %v195_v13 = vpack.c.bf16 %v191_v9, %v191_v9  ;;  %6495 = vmatprep.mubr.msk.bf16.mxu0 %vm7371_vm1, %v7370_v1  ;;  %v6855_v16 = vld [vmem:[%s7409_s17] sm:$0xff]   ;;  %6503 = vmatprep.mubr.msk.bf16.mxu1 %vm7371_vm1, %v7370_v1  ;;  %s7372_s5 = smov 96   ;;  %s7373_s13 = smov 120   ;;  %vm324_vm6 = vcmask 64512   ;;  %v7695_v53 = vshrl.u32 %v172_v17, 7 }
  0x5a   :  { %6488 = vmatpush3.bf16.msra.mxu0 %v192_v8  ;;  %v194_v14 = vpack.c.bf16 %v190_v11, %v189_v10  ;;  %6500 = vmatpush3.bf16.msra.mxu1 %v6855_v16  ;;  %v6856_v24 = vld [vmem:[%s7409_s17 + $0x8] sm:$0xff]   ;;  %v6014_v30 = vld [vmem:[%s7414_s21] ss:$0 sm:$0xff]  ;;  %s7374_s17 = smov 88   ;;  %s7375_s21 = smov 112   ;;  %vm1355_vm7 = vcmask 130048  }
  0x5b   :  { %6489 = vmatprep.subr.bf16.mxu0 %v7370_v1  ;;  %v202_v15 = vsel %vm200_vm0, %v195_v13, 0  ;;  %6501 = vmatprep.subr.bf16.mxu1 %v7370_v1  ;;  %s7376_s6 = smov 80   ;;  %s7377_s18 = smov 104   ;;  %v7698_v54 = vsub.s32 0, %v7695_v53  ;;  %v245_v55 = vld [vmem:[%s7399_s9] sm:$0x3] }
  0x5c   :  { %178 = vperm.xlu0 %6824, %v171_v7   ;;  %s7378_s22 = smov 72   ;;  %v7709_v4 = vsub.s32 1, %v7695_v53  ;;  %s7379_s9 = smov 64   ;;  %vm1357_vm8 = vcmask 195584   ;;  %vm4036_vm9 = vcmask 1041408   ;;  %vm4046_vm10 = vcmask 517120  }
  0x5d   :  { %v7702_v56 = vrot.slane %v245_v55, %v7698_v54  ;;  %s7380_s23 = smov 48   ;;  %s7381_s26 = smov 40  }
  0x5e   :  { %6490 = vmatpush3.bf16.msra.mxu0 %v193_v12  ;;  %6502 = vmatpush3.bf16.msra.mxu1 %v6856_v24  ;;  %v7718_v11 = vrot.slane %v245_v55, %v7709_v4  ;;  %s7382_s28 = smov 56   ;;  %s7383_s1 = smov 8  }
  0x5f   :  { %6491 = vmatprep.subr.bf16.mxu0 %v7370_v1  ;;  %6507 = vmatprep.subr.mxu1 %v7370_v1  ;;  %s7384_s2 = smov 24   ;;  %s8338_s7 = sld [smem:[#allocation14_spill]] }
  0x60   :  { %s8339_s10 = sld [smem:[#allocation15_spill]]  ;;  %s8340_s11 = sld [smem:[#allocation17_spill]] }
  0x61   :  { %s8341_s15 = sld [smem:[#allocation19_spill]]  ;;  %s8342_s0 = sld [smem:[#allocation22_spill]] }
  0x62   :  { %6492 = vmatpush3.bf16.msra.mxu0 %v194_v14 }
  0x63   :  { %6493 = vmatprep.subr.bf16.mxu0 %v7370_v1 }
  0x66   :  { %6494 = vmatpush3.bf16.msra.mxu0 %v202_v15 }
  0x67   :  { %6527 = vmatprep.subr.mxu0 %v7370_v1 }
  0xd7   :  { %v176_v19 = vpop.permute.xlu0 %175 }
  0xd8   :  { %vm180_vm2 = vcmp.eq.s32.totalorder %v173_v18, %v176_v19 }
  0xd9   :  { %v182_v21 = vsel %vm180_vm2, 1.0, %v7370_v1 }
  0xdb   :  { %v179_v20 = vpop.permute.xlu0 %178 }
  0xdc   :  { %vm181_vm3 = vcmp.eq.s32.totalorder %v173_v18, %v179_v20 }
  0xdd   :  { %v183_v22 = vsel %vm181_vm3, 1.0, %v7370_v1 }
  0xde   :  { %v184_v23 = vpack.c.bf16 %v183_v22, %v182_v21 }
  0xe0   :  { %6496 = vmatmul.mubr.msk.bf16.vlgmr.msra.gmra.mrb[0].mxu0 %vm196_vm4, %v184_v23 }
  0xe1   :  { %6529 = vmatprep.mubr.msk.f32.mxu0 %vm7371_vm1, %v7370_v1 }
 0x1b3   :  { %v7616_v25 = vpop.f32.mrb[0].mxu0 }
 0x1b4   :  { %v6497_v26 = vpop.f32.mrb[1].mxu0 }
 0x1b5   :  { %v7618_v27 = vpop.f32.mrb[2].mxu0 }
 0x1b6   :  { %v246_v28 = vpack.c.bf16 %v7618_v27, %v7616_v25  ;;  %v6498_v29 = vpop.f32.mrb[3].mxu0 }
 0x1b8   :  { %6504 = vmatmul.mubr.msk.bf16.vlgmr.msra.gmra.mrb[0].mxu1 %vm270_vm5, %v246_v28 }
 0x1b9   :  { %6509 = vmatprep.mubr.msk.f32.mxu1 %vm7371_vm1, %v7370_v1 }
 0x28b   :  { %v308_v31 = vpop.f32.mrb[0].mxu1 }
 0x28c   :  { %v7626_v32 = vadd.f32 %v6014_v30, %v308_v31  ;;  %v6505_v33 = vpop.f32.mrb[1].mxu1 }
 0x28d   :  { %v311_v34 = vpop.f32.mrb[2].mxu1 }
 0x28e   :  { %322 = vrot.lane.b32.xlu1 %v7626_v32, %s7372_s5  ;;  %v6506_v35 = vpop.f32.mrb[3].mxu1  ;;  %v315_v36 = vmul.f32 0.35355338, %v7626_v32  ;;  %v7638_v37 = vadd.f32 %v6014_v30, %v311_v34 }
 0x290   :  { %400 = vrot.lane.b32.xlu0 %v315_v36, %s7373_s13  ;;  %v316_v38 = vmul.f32 0.35355338, %v7638_v37 }
 0x292   :  { %402 = vrot.lane.b32.xlu1 %v7626_v32, %s7374_s17 }
 0x294   :  { %478 = vrot.lane.b32.xlu0 %v315_v36, %s7375_s21 }
 0x296   :  { %480 = vrot.lane.b32.xlu1 %v7626_v32, %s7376_s6 }
 0x298   :  { %556 = vrot.lane.b32.xlu0 %v315_v36, %s7377_s18 }
 0x29a   :  { %558 = vrot.lane.b32.xlu1 %v7626_v32, %s7378_s22 }
 0x29c   :  { %718 = vrot.lane.b32.xlu0 %v7638_v37, %s7374_s17 }
 0x29e   :  { %639 = vrot.lane.b32.xlu1 %v7638_v37, %s7372_s5 }
 0x2a0   :  { %796 = vrot.lane.b32.xlu0 %v7638_v37, %s7376_s6 }
 0x2a2   :  { %874 = vrot.lane.b32.xlu1 %v7638_v37, %s7378_s22 }
 0x2a4   :  { %794 = vrot.lane.b32.xlu0 %v316_v38, %s7375_s21 }
 0x2a6   :  { %716 = vrot.lane.b32.xlu1 %v316_v38, %s7373_s13 }
 0x2aa   :  { %872 = vrot.lane.b32.xlu1 %v316_v38, %s7377_s18 }
 0x300   :  { %v323_v39 = vpop.permute.xlu1 %322 }
 0x301   :  { %6508 = vmatpush3.xpose.msk.msra.mxu1 %vm324_vm6, %v323_v39 }
 0x302   :  { %v401_v40 = vpop.permute.xlu0 %400  ;;  %6512 = vmatprep.subr.mxu1 %v7370_v1 }
 0x304   :  { %v403_v41 = vpop.permute.xlu1 %402  ;;  %6510 = vmatmul.mubr.msk.f32.vlgmr.msra.gmra.mrb[4].mxu1 %vm324_vm6, %v315_v36 }
 0x305   :  { %6513 = vmatpush3.xpose.msk.msra.mxu1 %vm324_vm6, %v403_v41  ;;  %6514 = vmatprep.mubr.msk.f32.mxu1 %vm7371_vm1, %v7370_v1 }
 0x306   :  { %v479_v42 = vpop.permute.xlu0 %478  ;;  %6517 = vmatprep.subr.mxu1 %v7370_v1 }
 0x308   :  { %v481_v43 = vpop.permute.xlu1 %480  ;;  %6515 = vmatmul.mubr.msk.f32.vlgmr.msra.gmra.mrb[6].mxu1 %vm324_vm6, %v401_v40 }
 0x309   :  { %6518 = vmatpush3.xpose.msk.msra.mxu1 %vm324_vm6, %v481_v43  ;;  %6519 = vmatprep.mubr.msk.f32.mxu1 %vm7371_vm1, %v7370_v1 }
 0x30a   :  { %v557_v44 = vpop.permute.xlu0 %556  ;;  %6522 = vmatprep.subr.mxu1 %v7370_v1 }
 0x30c   :  { %v559_v45 = vpop.permute.xlu1 %558  ;;  %6520 = vmatmul.mubr.msk.f32.vlgmr.msra.gmra.mrb[8].mxu1 %vm324_vm6, %v479_v42 }
 0x30d   :  { %6523 = vmatpush3.xpose.msk.msra.mxu1 %vm324_vm6, %v559_v45  ;;  %6524 = vmatprep.mubr.msk.f32.mxu1 %vm7371_vm1, %v7370_v1 }
 0x30e   :  { %v719_v46 = vpop.permute.xlu0 %718  ;;  %6532 = vmatprep.subr.mxu1 %v7370_v1 }
 0x310   :  { %6525 = vmatmul.mubr.msk.f32.vlgmr.msra.gmra.mrb[10].mxu1 %vm324_vm6, %v557_v44  ;;  %v640_v47 = vpop.permute.xlu1 %639 }
 0x311   :  { %6528 = vmatpush3.xpose.msk.msra.mxu0 %vm324_vm6, %v640_v47  ;;  %6533 = vmatpush3.xpose.msk.msra.mxu1 %vm324_vm6, %v719_v46 }
 0x312   :  { %v797_v48 = vpop.permute.xlu0 %796  ;;  %6537 = vmatprep.subr.mxu0 %v7370_v1  ;;  %6534 = vmatprep.mubr.msk.f32.mxu1 %vm7371_vm1, %v7370_v1 }
 0x313   :  { %6542 = vmatprep.subr.mxu1 %v7370_v1 }
 0x314   :  { %v875_v49 = vpop.permute.xlu1 %874  ;;  %6530 = vmatmul.mubr.msk.f32.vlgmr.msra.gmra.mrb[4].mxu0 %vm324_vm6, %v316_v38 }
 0x315   :  { %6538 = vmatpush3.xpose.msk.msra.mxu0 %vm324_vm6, %v797_v48  ;;  %6539 = vmatprep.mubr.msk.f32.mxu0 %vm7371_vm1, %v7370_v1 }
 0x316   :  { %v795_v50 = vpop.permute.xlu0 %794  ;;  %6547 = vmatprep.subr.mxu0 %v7370_v1 }
 0x318   :  { %v717_v51 = vpop.permute.xlu1 %716  ;;  %6540 = vmatmul.mubr.msk.f32.vlgmr.msra.gmra.mrb[6].mxu0 %vm324_vm6, %v795_v50 }
 0x319   :  { %6535 = vmatmul.mubr.msk.f32.vlgmr.msra.gmra.mrb[12].mxu1 %vm324_vm6, %v717_v51  ;;  %6549 = vmatprep.mubr.msk.f32.mxu0 %vm7371_vm1, %v7370_v1 }
 0x31a   :  { %6543 = vmatpush3.xpose.msk.msra.mxu1 %vm324_vm6, %v875_v49  ;;  %6544 = vmatprep.mubr.msk.f32.mxu1 %vm7371_vm1, %v7370_v1 }
 0x31b   :  { %6552 = vmatprep.subr.mxu1 %v7370_v1 }
 0x31c   :  { %v873_v52 = vpop.permute.xlu1 %872 }
 0x31d   :  { %6545 = vmatmul.mubr.msk.f32.vlgmr.msra.gmra.mrb[14].mxu1 %vm324_vm6, %v873_v52 }
 0x31e   :  { %6554 = vmatprep.mubr.msk.f32.mxu1 %vm7371_vm1, %v7370_v1 }
 0x3d7   :  { %v396_v57 = vpop.f32.mrb[4].mxu1 }
 0x3d8   :  { %v397_v58 = vadd.f32 %v396_v57, %v7702_v56  ;;  %v6511_v59 = vpop.f32.mrb[5].mxu1 }
 0x3da   :  { %v950_v60 = vsel %vm324_vm6, %v397_v58, -inf }
 0x3db   :  { %951 = vmax.xlane.f32.xlu0 %v950_v60  ;;  %v474_v61 = vpop.f32.mrb[6].mxu1 }
 0x3dc   :  { %v475_v62 = vadd.f32 %v474_v61, %v7702_v56  ;;  %v6516_v63 = vpop.f32.mrb[7].mxu1 }
 0x3de   :  { %v953_v2 = vsel %vm324_vm6, %v475_v62, -inf }
 0x3df   :  { %954 = vmax.xlane.f32.xlu1 %v953_v2  ;;  %v552_v3 = vpop.f32.mrb[8].mxu1 }
 0x3e0   :  { %v7712_v5 = vadd.f32 %v552_v3, %v7702_v56  ;;  %v6521_v6 = vpop.f32.mrb[9].mxu1 }
 0x3e2   :  { %v956_v7 = vsel %vm324_vm6, %v7712_v5, -inf }
 0x3e3   :  { %957 = vmax.xlane.f32.xlu0 %v956_v7  ;;  %v630_v8 = vpop.f32.mrb[10].mxu1 }
 0x3e4   :  { %v631_v9 = vadd.f32 %v630_v8, %v7702_v56  ;;  %v6526_v10 = vpop.f32.mrb[11].mxu1 }
 0x3e6   :  { %v959_v12 = vsel %vm324_vm6, %v631_v9, -inf }
 0x3e7   :  { %960 = vmax.xlane.f32.xlu0 %v959_v12  ;;  %v712_v13 = vpop.f32.mrb[4].mxu0 }
 0x3e8   :  { %v713_v14 = vadd.f32 %v712_v13, %v7718_v11  ;;  %v6531_v15 = vpop.f32.mrb[5].mxu0 }
 0x3ea   :  { %v962_v16 = vsel %vm324_vm6, %v713_v14, -inf }
 0x3eb   :  { %963 = vmax.xlane.f32.xlu1 %v962_v16  ;;  %v868_v17 = vpop.f32.mrb[6].mxu0 }
 0x3ec   :  { %v869_v18 = vadd.f32 %v868_v17, %v7718_v11  ;;  %v790_v19 = vpop.f32.mrb[12].mxu1  ;;  %v6541_v20 = vpop.f32.mrb[7].mxu0 }
 0x3ed   :  { %v791_v21 = vadd.f32 %v790_v19, %v7718_v11  ;;  %v6536_v22 = vpop.f32.mrb[13].mxu1 }
 0x3ee   :  { %v968_v23 = vsel %vm324_vm6, %v869_v18, -inf }
 0x3ef   :  { %969 = vmax.xlane.f32.xlu1 %v968_v23  ;;  %v965_v24 = vsel %vm324_vm6, %v791_v21, -inf }
 0x3f0   :  { %966 = vmax.xlane.f32.xlu0 %v965_v24  ;;  %v946_v26 = vpop.f32.mrb[14].mxu1 }
 0x3f1   :  { %v947_v28 = vadd.f32 %v946_v26, %v7718_v11  ;;  %v6546_v29 = vpop.f32.mrb[15].mxu1 }
 0x3f3   :  { %v971_v30 = vsel %vm324_vm6, %v947_v28, -inf }
 0x3f4   :  { %972 = vmax.xlane.f32.xlu0 %v971_v30 }
 0x400   :  { %1038 = vrot.lane.b32.xlu1 %v7626_v32, %s7379_s9 }
 0x404   :  { %1190 = vrot.lane.b32.xlu1 %v7626_v32, %s7380_s23 }
 0x408   :  { %1266 = vrot.lane.b32.xlu1 %v7626_v32, %s7381_s26 }
 0x40a   :  { %1114 = vrot.lane.b32.xlu0 %v7626_v32, %s7382_s28 }
 0x40c   :  { %1435 = vrot.lane.b32.xlu1 %v7638_v37, %s7382_s28 }
 0x40e   :  { %1359 = vrot.lane.b32.xlu0 %v7638_v37, %s7379_s9 }
 0x468   :  { %v952_v31 = vpop.xlane.xlu0 %951 }
 0x469   :  { %v974_v33 = vsub.f32 %v397_v58, %v952_v31 }
 0x46b   :  { %v982_v34 = vmul.f32 1.442695, %v974_v33 }
 0x46c   :  { %v955_v35 = vpop.xlane.xlu1 %954 }
 0x46d   :  { %7197 = vpow2.f32 %v982_v34  ;;  %v975_v36 = vsub.f32 %v475_v62, %v955_v35 }
 0x46f   :  { %v984_v38 = vmul.f32 1.442695, %v975_v36 }
 0x470   :  { %v958_v39 = vpop.xlane.xlu0 %957 }
 0x471   :  { %7199 = vpow2.f32 %v984_v38  ;;  %v976_v47 = vsub.f32 %v7712_v5, %v958_v39 }
 0x473   :  { %v986_v57 = vmul.f32 1.442695, %v976_v47 }
 0x474   :  { %v961_v40 = vpop.xlane.xlu0 %960 }
 0x475   :  { %v977_v41 = vsub.f32 %v631_v9, %v961_v40 }
 0x477   :  { %v7198_v42 = vpop.eup %7197  ;;  %v988_v43 = vmul.f32 1.442695, %v977_v41 }
 0x478   :  { %v964_v32 = vpop.xlane.xlu1 %963  ;;  %v998_v44 = vsel %vm324_vm6, %v7198_v42, 0.0 }
 0x479   :  { %7201 = vpow2.f32 %v988_v43  ;;  %v978_v45 = vsub.f32 %v713_v14, %v964_v32  ;;  %999 = vadd.xlane.f32.xlu1 %v998_v44 }
 0x47b   :  { %v7200_v46 = vpop.eup %7199  ;;  %v990_v48 = vmul.f32 1.442695, %v978_v45 }
 0x47c   :  { %v970_v49 = vpop.xlane.xlu1 %969  ;;  %v1001_v50 = vsel %vm324_vm6, %v7200_v46, 0.0 }
 0x47d   :  { %7203 = vpow2.f32 %v990_v48  ;;  %v980_v51 = vsub.f32 %v869_v18, %v970_v49  ;;  %v967_v52 = vpop.xlane.xlu0 %966  ;;  %1002 = vadd.xlane.f32.xlu0 %v1001_v50 }
 0x47e   :  { %v979_v55 = vsub.f32 %v791_v21, %v967_v52 }
 0x47f   :  { %v994_v58 = vmul.f32 1.442695, %v980_v51 }
 0x480   :  { %v992_v59 = vmul.f32 1.442695, %v979_v55  ;;  %v1039_v60 = vpop.permute.xlu1 %1038 }
 0x481   :  { %7205 = vpow2.f32 %v994_v58  ;;  %v973_v61 = vpop.xlane.xlu0 %972  ;;  %6548 = vmatpush3.msra.mxu0 %v1039_v60  ;;  %v6857_v58 = vld [vmem:[%s7419_s25] sm:$0xff]  }
 0x482   :  { %7207 = vpow2.f32 %v992_v59  ;;  %v981_v62 = vsub.f32 %v947_v28, %v973_v61  ;;  %6557 = vmatprep.subr.mxu0 %v7370_v1 }
 0x483   :  { %v7202_v63 = vpop.eup %7201  ;;  %7209 = vpow2.f32 %v986_v57 }
 0x484   :  { %v996_v2 = vmul.f32 1.442695, %v981_v62  ;;  %v1007_v3 = vsel %vm324_vm6, %v7202_v63, 0.0  ;;  %v1191_v17 = vpop.permute.xlu1 %1190 }
 0x485   :  { %1008 = vadd.xlane.f32.xlu0 %v1007_v3  ;;  %v1115_v5 = vpop.permute.xlu0 %1114 }
 0x486   :  { %7211 = vpow2.f32 %v996_v2  ;;  %6553 = vmatpush3.msra.mxu1 %v1115_v5 }
 0x487   :  { %v7746_v6 = vpop.eup %7203  ;;  %6562 = vmatprep.subr.mxu1 %v7370_v1 }
 0x488   :  { %v1010_v7 = vsel %vm324_vm6, %v7746_v6, 0.0  ;;  %v1267_v18 = vpop.permute.xlu1 %1266 }
 0x489   :  { %1011 = vadd.xlane.f32.xlu1 %v1010_v7  ;;  %v1360_v20 = vpop.permute.xlu0 %1359 }
 0x48b   :  { %v7751_v8 = vpop.eup %7205 }
 0x48c   :  { %v7208_v9 = vpop.eup %7207  ;;  %v1016_v10 = vsel %vm324_vm6, %v7751_v8, 0.0  ;;  %v1436_v19 = vpop.permute.xlu1 %1435 }
 0x48d   :  { %v7210_v12 = vpop.eup %7209  ;;  %1017 = vadd.xlane.f32.xlu1 %v1016_v10  ;;  %v1013_v13 = vsel %vm324_vm6, %v7208_v9, 0.0 }
 0x48e   :  { %1014 = vadd.xlane.f32.xlu0 %v1013_v13  ;;  %v1004_v15 = vsel %vm324_vm6, %v7210_v12, 0.0 }
 0x490   :  { %v7212_v14 = vpop.eup %7211 }
 0x491   :  { %1005 = vadd.xlane.f32.xlu1 %v1004_v15  ;;  %v1019_v16 = vsel %vm324_vm6, %v7212_v14, 0.0 }
 0x492   :  { %1020 = vadd.xlane.f32.xlu0 %v1019_v16 }
 0x4a2   :  { %1587 = vrot.lane.b32.xlu1 %v7638_v37, %s7381_s26 }
 0x4a8   :  { %1511 = vrot.lane.b32.xlu0 %v7638_v37, %s7380_s23 }
 0x506   :  { %v1000_v21 = vpop.xlane.xlu1 %999 }
 0x507   :  { %7213 = vrcp.f32 %v1000_v21 }
 0x50a   :  { %v1003_v22 = vpop.xlane.xlu0 %1002 }
 0x50b   :  { %7215 = vrcp.f32 %v1003_v22 }
 0x511   :  { %v7214_v23 = vpop.eup %7213 }
 0x512   :  { %v1030_v24 = vmul.f32 %v7214_v23, %v7198_v42  ;;  %v1009_v26 = vpop.xlane.xlu0 %1008 }
 0x513   :  { %7217 = vrcp.f32 %v1009_v26 }
 0x514   :  { %6550 = vmatmul.mubr.msk.f32.vlgmr.msra.gmra.mrb[8].mxu0 %vm324_vm6, %v1030_v24 }
 0x515   :  { %v7216_v28 = vpop.eup %7215  ;;  %6558 = vmatpush3.msra.mxu0 %v1191_v17  ;;  %6559 = vmatprep.mubr.msk.f32.mxu0 %vm7371_vm1, %v7370_v1 }
 0x516   :  { %v1031_v37 = vmul.f32 %v7216_v28, %v7200_v46  ;;  %v1012_v29 = vpop.xlane.xlu1 %1011  ;;  %6567 = vmatprep.subr.mxu0 %v7370_v1 }
 0x518   :  { %6555 = vmatmul.mubr.msk.f32.vlgmr.msra.gmra.mrb[16].mxu1 %vm324_vm6, %v1031_v37 }
 0x519   :  { %6563 = vmatpush3.msra.mxu1 %v1267_v18  ;;  %6564 = vmatprep.mubr.msk.f32.mxu1 %vm7371_vm1, %v7370_v1 }
 0x51a   :  { %v1018_v30 = vpop.xlane.xlu1 %1017  ;;  %6572 = vmatprep.subr.mxu1 %v7370_v1 }
 0x51b   :  { %v1015_v31 = vpop.xlane.xlu0 %1014 }
 0x51c   :  { %7219 = vrcp.f32 %v1015_v31 }
 0x51d   :  { %v7218_v33 = vpop.eup %7217 }
 0x51e   :  { %v1033_v34 = vmul.f32 %v7218_v33, %v7202_v63  ;;  %v1006_v35 = vpop.xlane.xlu1 %1005  ;;  %v6858_v63 = vld [vmem:[%s7419_s25 + $0x8] sm:$0xff]   ;;  %s8330_s25 = sld [smem:[#allocation10_spill]] }
 0x51f   :  { %7221 = vrcp.f32 %v1006_v35  ;;  %v1021_v36 = vpop.xlane.xlu0 %1020 }
 0x520   :  { %7223 = vrcp.f32 %v1021_v36  ;;  %6565 = vmatmul.mubr.msk.f32.vlgmr.msra.gmra.mrb[18].mxu1 %vm324_vm6, %v1033_v34 }
 0x521   :  { %7225 = vrcp.f32 %v1012_v29  ;;  %6573 = vmatpush3.msra.mxu1 %v1436_v19  ;;  %6574 = vmatprep.mubr.msk.f32.mxu1 %vm7371_vm1, %v7370_v1 }
 0x522   :  { %6582 = vmatprep.subr.mxu1 %v7370_v1  ;;  %7227 = vrcp.f32 %v1018_v30  ;;  %v1588_v41 = vpop.permute.xlu1 %1587  ;;  %v6042_v30 = vld [vmem:[%s7424_s29] ss:$0 sm:$0xff]  ;;  %s8331_s29 = sld [smem:[#allocation8_spill]] }
 0x523   :  { %v1512_v47 = vpop.permute.xlu0 %1511 }
 0x526   :  { %v7220_v38 = vpop.eup %7219 }
 0x527   :  { %v1035_v39 = vmul.f32 %v7220_v38, %v7208_v9 }
 0x529   :  { %v7222_v40 = vpop.eup %7221  ;;  %6575 = vmatmul.mubr.msk.f32.vlgmr.msra.gmra.mrb[20].mxu1 %vm324_vm6, %v1035_v39 }
 0x52a   :  { %v7224_v42 = vpop.eup %7223  ;;  %v1032_v43 = vmul.f32 %v7222_v40, %v7210_v12  ;;  %6583 = vmatpush3.msra.mxu1 %v1588_v41  ;;  %6584 = vmatprep.mubr.msk.f32.mxu1 %vm7371_vm1, %v7370_v1 }
 0x52b   :  { %v7226_v32 = vpop.eup %7225  ;;  %v1037_v44 = vmul.f32 %v7224_v42, %v7212_v14  ;;  %6595 = vmatprep.subr.bf16.mxu1 %v7370_v1 }
 0x52c   :  { %6560 = vmatmul.mubr.msk.f32.vlgmr.msra.gmra.mrb[10].mxu0 %vm324_vm6, %v1032_v43  ;;  %v1034_v45 = vmul.f32 %v7226_v32, %v7746_v6  ;;  %v7228_v46 = vpop.eup %7227 }
 0x52d   :  { %6568 = vmatpush3.msra.mxu0 %v1360_v20  ;;  %6585 = vmatmul.mubr.msk.f32.vlgmr.msra.gmra.mrb[22].mxu1 %vm324_vm6, %v1037_v44  ;;  %v1036_v48 = vmul.f32 %v7228_v46, %v7751_v8 }
 0x52e   :  { %6569 = vmatprep.mubr.msk.f32.mxu0 %vm7371_vm1, %v7370_v1  ;;  %6577 = vmatprep.subr.mxu0 %v7370_v1 }
 0x52f   :  { %6599 = vmatprep.mubr.msk.bf16.mxu1 %vm7371_vm1, %v7370_v1 }
 0x530   :  { %6570 = vmatmul.mubr.msk.f32.vlgmr.msra.gmra.mrb[12].mxu0 %vm324_vm6, %v1034_v45 }
 0x531   :  { %6578 = vmatpush3.msra.mxu0 %v1512_v47  ;;  %6579 = vmatprep.mubr.msk.f32.mxu0 %vm7371_vm1, %v7370_v1 }
 0x532   :  { %6587 = vmatprep.subr.bf16.mxu0 %v7370_v1 }
 0x534   :  { %6580 = vmatmul.mubr.msk.f32.vlgmr.msra.gmra.mrb[14].mxu0 %vm324_vm6, %v1036_v48 }
 0x535   :  { %6591 = vmatprep.mubr.msk.bf16.mxu0 %vm7371_vm1, %v7370_v1  ;;  %6588 = vmatpush3.bf16.msra.mxu0 %v6857_v58  ;;  %v6864_v58 = vld [vmem:[%s7449_s24 + $0x18] sm:$0xff]  }
 0x536   :  { %6589 = vmatprep.subr.bf16.mxu0 %v7370_v1 }
 0x539   :  { %6590 = vmatpush3.bf16.msra.mxu0 %v6858_v63 }
 0x53a   :  { %6603 = vmatprep.subr.bf16.mxu0 %v7370_v1 }
 0x5e7   :  { %v1110_v49 = vpop.f32.mrb[8].mxu0 }
 0x5e8   :  { %v6551_v50 = vpop.f32.mrb[9].mxu0 }
 0x5e9   :  { %v6859_v50 = vld [vmem:[%s7439_s14] sm:$0xff]  }
 0x5ea   :  { %6596 = vmatpush3.bf16.msra.mxu1 %v6859_v50 }
 0x5eb   :  { %v1186_v51 = vpop.f32.mrb[16].mxu1  ;;  %6597 = vmatprep.subr.bf16.mxu1 %v7370_v1 }
 0x5ec   :  { %v6556_v52 = vpop.f32.mrb[17].mxu1 }
 0x5ed   :  { %v6861_v52 = vld [vmem:[%s7449_s24] sm:$0xff]  }
 0x5f3   :  { %v1338_v55 = vpop.f32.mrb[18].mxu1 }
 0x5f4   :  { %v6566_v57 = vpop.f32.mrb[19].mxu1 }
 0x5f5   :  { %v6863_v57 = vld [vmem:[%s7449_s24 + $0x10] sm:$0xff]  }
 0x5fc   :  { %v1507_v59 = vpop.f32.mrb[20].mxu1 }
 0x5fd   :  { %v6825_v60 = vpack.i.bf16 %v1507_v59, %v1186_v51  ;;  %v6576_v61 = vpop.f32.mrb[21].mxu1  ;;  %v6860_v51 = vld [vmem:[%s7439_s14 + $0x8] sm:$0xff]   ;;  %v6865_v59 = vld [vmem:[%s7449_s24 + $0x20] sm:$0xff]   ;;  %s8334_s14 = sld [smem:[#allocation12_spill]] }
 0x5fe   :  { %6598 = vmatpush3.bf16.msra.mxu1 %v6860_v51  ;;  %v6869_v51 = vld [vmem:[%s8330_s25] sm:$0xff]  }
 0x5ff   :  { %6826 = vrot.lane.b32.xlu0 %v6825_v60, %s7383_s1  ;;  %v1262_v62 = vpop.f32.mrb[10].mxu0  ;;  %6623 = vmatprep.subr.bf16.mxu1 %v7370_v1  ;;  %v6866_v60 = vld [vmem:[%s7449_s24 + $0x28] sm:$0xff]  }
 0x600   :  { %v6561_v2 = vpop.f32.mrb[11].mxu0  ;;  %v1659_v3 = vpop.f32.mrb[22].mxu1 }
 0x601   :  { %v6835_v5 = vpack.i.bf16 %v1659_v3, %v1338_v55  ;;  %v6586_v6 = vpop.f32.mrb[23].mxu1  ;;  %v6862_v55 = vld [vmem:[%s7449_s24 + $0x8] sm:$0xff]  }
 0x603   :  { %6836 = vrot.lane.b32.xlu0 %v6835_v5, %s7384_s2  ;;  %v1431_v7 = vpop.f32.mrb[12].mxu0 }
 0x604   :  { %v6571_v8 = vpop.f32.mrb[13].mxu0 }
 0x607   :  { %v1583_v9 = vpop.f32.mrb[14].mxu0 }
 0x608   :  { %v6830_v10 = vpack.i.bf16 %v1583_v9, %v1262_v62  ;;  %v6581_v12 = vpop.f32.mrb[15].mxu0 }
 0x60a   :  { %6831 = vrot.lane.b32.xlu1 %v6830_v10, %s7368_s16 }
 0x671   :  { %v6827_v13 = vpop.permute.xlu0 %6826 }
 0x672   :  { %v6829_v14 = vunpack.i.h.bf16 %v6827_v13  ;;  %v6828_v15 = vunpack.i.l.bf16 %v6827_v13  ;;  %v6047_v13 = vld [vmem:[%s7434_s8] ss:$0 sm:$0xff]  ;;  %s8333_s8 = sld [smem:[#allocation11_spill]] }
 0x674   :  { %v1354_v20 = vsel %vm324_vm6, %v1110_v49, %v6828_v15  ;;  %v1675_v21 = vsel %vm324_vm6, %v1431_v7, %v6829_v14  ;;  %v6046_v7 = vld [vmem:[%s7429_s3] ss:$0 sm:$0xff]  ;;  %s8332_s3 = sld [smem:[#allocation9_spill]] }
 0x675   :  { %v6837_v16 = vpop.permute.xlu0 %6836 }
 0x676   :  { %v6839_v22 = vunpack.i.h.bf16 %v6837_v16  ;;  %v6838_v23 = vunpack.i.l.bf16 %v6837_v16 }
 0x67c   :  { %v6832_v17 = vpop.permute.xlu1 %6831 }
 0x67d   :  { %v6834_v18 = vunpack.i.h.bf16 %v6832_v17  ;;  %v6833_v19 = vunpack.i.l.bf16 %v6832_v17 }
 0x67f   :  { %v1676_v24 = vsel %vm1355_vm7, %v1675_v21, %v6834_v18  ;;  %v1356_v26 = vsel %vm1355_vm7, %v1354_v20, %v6833_v19  ;;  %v6867_v18 = vld [vmem:[%s7449_s24 + $0x30] sm:$0xff]   ;;  %v6868_v19 = vld [vmem:[%s7449_s24 + $0x38] sm:$0xff]   ;;  %v6048_v20 = vld [vmem:[%s7444_s19] ss:$0 sm:$0xff]  ;;  %s8335_s19 = sld [smem:[#allocation13_spill]]  ;;  %s8336_s24 = sld [smem:[#allocation16_spill]] }
 0x680   :  { %v1677_v28 = vsel %vm1357_vm8, %v1676_v24, %v6839_v22  ;;  %v1358_v37 = vsel %vm1357_vm8, %v1356_v26, %v6838_v23 }
 0x681   :  { %v1678_v29 = vpack.c.bf16 %v1677_v28, %v1358_v37 }
 0x683   :  { %6592 = vmatmul.mubr.msk.bf16.vlgmr.msra.gmra.mrb[16].mxu0 %vm270_vm5, %v1678_v29 }
 0x684   :  { %6619 = vmatprep.mubr.msk.bf16.mxu0 %vm7371_vm1, %v7370_v1  ;;  %6604 = vmatpush3.bf16.msra.mxu0 %v6861_v52  ;;  %v6870_v52 = vld [vmem:[%s8330_s25 + $0x8] sm:$0xff]  }
 0x685   :  { %6605 = vmatprep.subr.bf16.mxu0 %v7370_v1 }
 0x688   :  { %6606 = vmatpush3.bf16.msra.mxu0 %v6862_v55 }
 0x689   :  { %6607 = vmatprep.subr.bf16.mxu0 %v7370_v1 }
 0x68c   :  { %6608 = vmatpush3.bf16.msra.mxu0 %v6863_v57 }
 0x68d   :  { %6609 = vmatprep.subr.bf16.mxu0 %v7370_v1 }
 0x690   :  { %6610 = vmatpush3.bf16.msra.mxu0 %v6864_v58 }
 0x691   :  { %6611 = vmatprep.subr.bf16.mxu0 %v7370_v1 }
 0x694   :  { %6612 = vmatpush3.bf16.msra.mxu0 %v6865_v59 }
 0x695   :  { %6613 = vmatprep.subr.bf16.mxu0 %v7370_v1 }
 0x698   :  { %6614 = vmatpush3.bf16.msra.mxu0 %v6866_v60 }
 0x699   :  { %6615 = vmatprep.subr.bf16.mxu0 %v7370_v1 }
 0x69c   :  { %6616 = vmatpush3.bf16.msra.mxu0 %v6867_v18 }
 0x69d   :  { %6617 = vmatprep.subr.bf16.mxu0 %v7370_v1 }
 0x6a0   :  { %6618 = vmatpush3.bf16.msra.mxu0 %v6868_v19 }
 0x6a1   :  { %6661 = vmatprep.subr.mxu0 %v7370_v1 }
 0x756   :  { %v1739_v31 = vpop.f32.mrb[16].mxu0 }
 0x757   :  { %v1740_v33 = vadd.f32 %v6042_v30, %v1739_v31  ;;  %v6593_v34 = vpop.f32.mrb[17].mxu0  ;;  %v6052_v31 = vld [vmem:[%s7454_s30] ss:$0 sm:$0xff]  ;;  %s8337_s30 = sld [smem:[#allocation18_spill]] }
 0x758   :  { %v1742_v35 = vpop.f32.mrb[18].mxu0 }
 0x759   :  { %v1743_v36 = vadd.f32 %v6042_v30, %v1742_v35  ;;  %v6594_v38 = vpop.f32.mrb[19].mxu0  ;;  %v1746_v39 = vadd.f32 %v1740_v33, %v7616_v25 }
 0x75b   :  { %v1750_v40 = vsel %vm270_vm5, %v1746_v39, 0.0  ;;  %v1747_v41 = vadd.f32 %v1743_v36, %v7618_v27 }
 0x75c   :  { %1751 = vadd.xlane.f32.xlu1 %v1750_v40 }
 0x75d   :  { %v1753_v42 = vsel %vm270_vm5, %v1747_v41, 0.0 }
 0x75e   :  { %1754 = vadd.xlane.f32.xlu0 %v1753_v42 }
 0x7e9   :  { %v1752_v43 = vpop.xlane.xlu1 %1751 }
 0x7ea   :  { %v1757_v32 = vmul.f32 0.03125, %v1752_v43 }
 0x7eb   :  { %v1755_v44 = vpop.xlane.xlu0 %1754 }
 0x7ec   :  { %v1759_v45 = vsub.f32 %v1746_v39, %v1757_v32  ;;  %v1758_v46 = vmul.f32 0.03125, %v1755_v44 }
 0x7ee   :  { %v1760_v47 = vsub.f32 %v1747_v41, %v1758_v46  ;;  %v1761_v48 = vmul.f32 %v1759_v45, %v1759_v45 }
 0x7f0   :  { %v1763_v25 = vsel %vm270_vm5, %v1761_v48, 0.0  ;;  %v1762_v49 = vmul.f32 %v1760_v47, %v1760_v47 }
 0x7f1   :  { %1764 = vadd.xlane.f32.xlu0 %v1763_v25 }
 0x7f2   :  { %v1766_v27 = vsel %vm270_vm5, %v1762_v49, 0.0 }
 0x7f3   :  { %1767 = vadd.xlane.f32.xlu1 %v1766_v27 }
 0x87e   :  { %v1765_v61 = vpop.xlane.xlu0 %1764 }
 0x87f   :  { %v1769_v62 = vmul.f32 0.03125, %v1765_v61 }
 0x880   :  { %v1768_v63 = vpop.xlane.xlu1 %1767 }
 0x881   :  { %v1771_v2 = vadd.f32 1e-05, %v1769_v62  ;;  %v1770_v3 = vmul.f32 0.03125, %v1768_v63  ;;  %v6061_v63 = vld [vmem:[%s8331_s29] ss:$0 sm:$0xff] }
 0x883   :  { %7229 = vrsqrt.f32 %v1771_v2  ;;  %v1772_v5 = vadd.f32 1e-05, %v1770_v3 }
 0x885   :  { %7231 = vrsqrt.f32 %v1772_v5 }
 0x88d   :  { %v7230_v6 = vpop.eup %7229 }
 0x88e   :  { %v1775_v8 = vmul.f32 %v7230_v6, %v1759_v45 }
 0x88f   :  { %v7232_v9 = vpop.eup %7231 }
 0x890   :  { %v1783_v10 = vmul.f32 %v6046_v7, %v1775_v8  ;;  %v1776_v12 = vmul.f32 %v7232_v9, %v1760_v47 }
 0x892   :  { %v1784_v14 = vmul.f32 %v6046_v7, %v1776_v12  ;;  %v1791_v15 = vadd.f32 %v6047_v13, %v1783_v10  ;;  %v6062_v7 = vld [vmem:[%s8332_s3] ss:$0 sm:$0xff] }
 0x894   :  { %v1792_v16 = vadd.f32 %v6047_v13, %v1784_v14  ;;  %v6063_v13 = vld [vmem:[%s8333_s8] ss:$0 sm:$0xff] }
 0x896   :  { %v1793_v17 = vpack.c.bf16 %v1792_v16, %v1791_v15 }
 0x898   :  { %6600 = vmatmul.mubr.msk.bf16.vlgmr.msra.gmra.mrb[24].mxu1 %vm270_vm5, %v1793_v17 }
 0x899   :  { %6627 = vmatprep.mubr.msk.bf16.mxu1 %vm7371_vm1, %v7370_v1  ;;  %6624 = vmatpush3.bf16.msra.mxu1 %v6869_v51 }
 0x89a   :  { %6625 = vmatprep.subr.bf16.mxu1 %v7370_v1 }
 0x89d   :  { %6626 = vmatpush3.bf16.msra.mxu1 %v6870_v52 }
 0x89e   :  { %6631 = vmatprep.subr.mxu1 %v7370_v1 }
 0x96b   :  { %v1854_v21 = vpop.f32.mrb[24].mxu1 }
 0x96c   :  { %v1855_v22 = vadd.f32 %v6048_v20, %v1854_v21  ;;  %v6601_v23 = vpop.f32.mrb[25].mxu1 }
 0x96d   :  { %v1857_v24 = vpop.f32.mrb[26].mxu1 }
 0x96e   :  { %v1858_v26 = vadd.f32 %v6048_v20, %v1857_v24  ;;  %v6602_v28 = vpop.f32.mrb[27].mxu1  ;;  %v1861_v37 = vmax.f32 %v1855_v22, 0.0 }
 0x970   :  { %v1862_v29 = vmax.f32 %v1858_v26, 0.0 }
 0x972   :  { %v1863_v30 = vpack.c.bf16 %v1862_v29, %v1861_v37 }
 0x974   :  { %6620 = vmatmul.mubr.bf16.vlgmr.msra.gmra.mrb[20].mxu0 %v1863_v30 }
 0x975   :  { %6663 = vmatprep.mubr.msk.f32.mxu0 %vm7371_vm1, %v7370_v1 }
 0xa47   :  { %v1969_v33 = vpop.f32.mrb[20].mxu0 }
 0xa48   :  { %v1970_v34 = vadd.f32 %v6052_v31, %v1969_v33  ;;  %v6621_v35 = vpop.f32.mrb[21].mxu0 }
 0xa49   :  { %v1972_v36 = vpop.f32.mrb[22].mxu0 }
 0xa4a   :  { %v1973_v38 = vadd.f32 %v6052_v31, %v1972_v36  ;;  %v6622_v39 = vpop.f32.mrb[23].mxu0  ;;  %v1976_v40 = vadd.f32 %v1970_v34, %v1791_v15 }
 0xa4c   :  { %v1980_v41 = vsel %vm270_vm5, %v1976_v40, 0.0  ;;  %v1977_v42 = vadd.f32 %v1973_v38, %v1792_v16 }
 0xa4d   :  { %1981 = vadd.xlane.f32.xlu0 %v1980_v41 }
 0xa4e   :  { %v1983_v43 = vsel %vm270_vm5, %v1977_v42, 0.0 }
 0xa4f   :  { %1984 = vadd.xlane.f32.xlu1 %v1983_v43 }
 0xada   :  { %v1982_v32 = vpop.xlane.xlu0 %1981 }
 0xadb   :  { %v1986_v44 = vmul.f32 0.03125, %v1982_v32 }
 0xadc   :  { %v1985_v45 = vpop.xlane.xlu1 %1984 }
 0xadd   :  { %v1988_v46 = vsub.f32 %v1976_v40, %v1986_v44  ;;  %v1987_v47 = vmul.f32 0.03125, %v1985_v45 }
 0xadf   :  { %v1989_v48 = vsub.f32 %v1977_v42, %v1987_v47  ;;  %v1990_v25 = vmul.f32 %v1988_v46, %v1988_v46 }
 0xae1   :  { %v1992_v49 = vsel %vm270_vm5, %v1990_v25, 0.0  ;;  %v1991_v27 = vmul.f32 %v1989_v48, %v1989_v48 }
 0xae2   :  { %1993 = vadd.xlane.f32.xlu0 %v1992_v49 }
 0xae3   :  { %v1995_v50 = vsel %vm270_vm5, %v1991_v27, 0.0 }
 0xae4   :  { %1996 = vadd.xlane.f32.xlu1 %v1995_v50 }
 0xb6f   :  { %v1994_v55 = vpop.xlane.xlu0 %1993 }
 0xb70   :  { %v1998_v57 = vmul.f32 0.03125, %v1994_v55 }
 0xb71   :  { %v1997_v58 = vpop.xlane.xlu1 %1996 }
 0xb72   :  { %v2000_v59 = vadd.f32 1e-05, %v1998_v57  ;;  %v1999_v60 = vmul.f32 0.03125, %v1997_v58 }
 0xb74   :  { %7233 = vrsqrt.f32 %v2000_v59  ;;  %v2001_v61 = vadd.f32 1e-05, %v1999_v60 }
 0xb76   :  { %7235 = vrsqrt.f32 %v2001_v61 }
 0xb7e   :  { %v7234_v62 = vpop.eup %7233 }
 0xb7f   :  { %v2004_v2 = vmul.f32 %v7234_v62, %v1988_v46 }
 0xb80   :  { %v7236_v3 = vpop.eup %7235 }
 0xb81   :  { %v2012_v5 = vmul.f32 %v6061_v63, %v2004_v2  ;;  %v2005_v6 = vmul.f32 %v7236_v3, %v1989_v48 }
 0xb83   :  { %v2013_v8 = vmul.f32 %v6061_v63, %v2005_v6  ;;  %v7856_v9 = vadd.f32 %v6062_v7, %v2012_v5 }
 0xb85   :  { %v7858_v10 = vadd.f32 %v6062_v7, %v2013_v8 }
 0xb87   :  { %v2022_v12 = vpack.c.bf16 %v7858_v10, %v7856_v9 }
 0xb89   :  { %6628 = vmatmul.mubr.msk.bf16.vlgmr.msra.gmra.mrb[28].mxu1 %vm270_vm5, %v2022_v12 }
 0xb8a   :  { %6633 = vmatprep.mubr.msk.f32.mxu1 %vm7371_vm1, %v7370_v1 }
 0xc5c   :  { %v2083_v14 = vpop.f32.mrb[28].mxu1 }
 0xc5d   :  { %v7866_v15 = vadd.f32 %v6063_v13, %v2083_v14  ;;  %v6629_v16 = vpop.f32.mrb[29].mxu1 }
 0xc5e   :  { %v2086_v17 = vpop.f32.mrb[30].mxu1 }
 0xc5f   :  { %2172 = vrot.lane.b32.xlu1 %v7866_v15, %s7374_s17  ;;  %2093 = vrot.lane.b32.xlu0 %v7866_v15, %s7372_s5  ;;  %v6630_v18 = vpop.f32.mrb[31].mxu1  ;;  %v2090_v19 = vmul.f32 0.35355338, %v7866_v15  ;;  %v7879_v20 = vadd.f32 %v6063_v13, %v2086_v17 }
 0xc61   :  { %v2091_v21 = vmul.f32 0.35355338, %v7879_v20 }
 0xc63   :  { %2250 = vrot.lane.b32.xlu0 %v7866_v15, %s7376_s6  ;;  %2170 = vrot.lane.b32.xlu1 %v2090_v19, %s7373_s13 }
 0xc67   :  { %2328 = vrot.lane.b32.xlu0 %v7866_v15, %s7378_s22  ;;  %2248 = vrot.lane.b32.xlu1 %v2090_v19, %s7375_s21 }
 0xc6b   :  { %2326 = vrot.lane.b32.xlu1 %v2090_v19, %s7377_s18  ;;  %2405 = vrot.lane.b32.xlu0 %v7879_v20, %s7372_s5  ;;  %s8344_s5 = sld [smem:[#allocation21_spill]] }
 0xc6f   :  { %2484 = vrot.lane.b32.xlu1 %v7879_v20, %s7374_s17  ;;  %2640 = vrot.lane.b32.xlu0 %v7879_v20, %s7378_s22  ;;  %s8346_s17 = sld [smem:[#allocation24_spill]] }
 0xc73   :  { %2562 = vrot.lane.b32.xlu1 %v7879_v20, %s7376_s6  ;;  %2482 = vrot.lane.b32.xlu0 %v2091_v21, %s7373_s13  ;;  %s8345_s13 = sld [smem:[#allocation23_spill]]  ;;  %s8348_s6 = sld [smem:[#allocation26_spill]] }
 0xc77   :  { %2560 = vrot.lane.b32.xlu1 %v2091_v21, %s7375_s21  ;;  %2638 = vrot.lane.b32.xlu0 %v2091_v21, %s7377_s18  ;;  %s8347_s21 = sld [smem:[#allocation25_spill]]  ;;  %s8349_s18 = sld [smem:[#allocation27_spill]] }
 0xcd1   :  { %v2173_v22 = vpop.permute.xlu1 %2172  ;;  %v2094_v23 = vpop.permute.xlu0 %2093 }
 0xcd2   :  { %6632 = vmatpush3.xpose.msk.msra.mxu1 %vm324_vm6, %v2094_v23 }
 0xcd3   :  { %6636 = vmatprep.subr.mxu1 %v7370_v1 }
 0xcd5   :  { %v2251_v24 = vpop.permute.xlu0 %2250  ;;  %v2171_v26 = vpop.permute.xlu1 %2170  ;;  %6634 = vmatmul.mubr.msk.f32.vlgmr.msra.gmra.mrb[32].mxu1 %vm324_vm6, %v2090_v19 }
 0xcd6   :  { %6637 = vmatpush3.xpose.msk.msra.mxu1 %vm324_vm6, %v2173_v22  ;;  %6638 = vmatprep.mubr.msk.f32.mxu1 %vm7371_vm1, %v7370_v1 }
 0xcd7   :  { %6641 = vmatprep.subr.mxu1 %v7370_v1 }
 0xcd9   :  { %v2329_v28 = vpop.permute.xlu0 %2328  ;;  %v2249_v37 = vpop.permute.xlu1 %2248  ;;  %6639 = vmatmul.mubr.msk.f32.vlgmr.msra.gmra.mrb[34].mxu1 %vm324_vm6, %v2171_v26 }
 0xcda   :  { %6642 = vmatpush3.xpose.msk.msra.mxu1 %vm324_vm6, %v2251_v24  ;;  %6643 = vmatprep.mubr.msk.f32.mxu1 %vm7371_vm1, %v7370_v1 }
 0xcdb   :  { %6646 = vmatprep.subr.mxu1 %v7370_v1 }
 0xcdd   :  { %v2327_v29 = vpop.permute.xlu1 %2326  ;;  %6644 = vmatmul.mubr.msk.f32.vlgmr.msra.gmra.mrb[36].mxu1 %vm324_vm6, %v2249_v37  ;;  %v2406_v30 = vpop.permute.xlu0 %2405 }
 0xcde   :  { %6647 = vmatpush3.xpose.msk.msra.mxu1 %vm324_vm6, %v2329_v28  ;;  %6648 = vmatprep.mubr.msk.f32.mxu1 %vm7371_vm1, %v7370_v1 }
 0xcdf   :  { %6651 = vmatprep.subr.mxu1 %v7370_v1 }
 0xce1   :  { %6649 = vmatmul.mubr.msk.f32.vlgmr.msra.gmra.mrb[38].mxu1 %vm324_vm6, %v2327_v29  ;;  %v2485_v31 = vpop.permute.xlu1 %2484  ;;  %v2641_v33 = vpop.permute.xlu0 %2640 }
 0xce2   :  { %6652 = vmatpush3.xpose.msk.msra.mxu1 %vm324_vm6, %v2406_v30  ;;  %6653 = vmatprep.mubr.msk.f32.mxu1 %vm7371_vm1, %v7370_v1 }
 0xce3   :  { %6656 = vmatprep.subr.mxu1 %v7370_v1 }
 0xce5   :  { %v2563_v34 = vpop.permute.xlu1 %2562  ;;  %6654 = vmatmul.mubr.msk.f32.vlgmr.msra.gmra.mrb[40].mxu1 %vm324_vm6, %v2091_v21  ;;  %v2483_v35 = vpop.permute.xlu0 %2482 }
 0xce6   :  { %6657 = vmatpush3.xpose.msk.msra.mxu1 %vm324_vm6, %v2485_v31  ;;  %6662 = vmatpush3.xpose.msk.msra.mxu0 %vm324_vm6, %v2563_v34 }
 0xce7   :  { %6658 = vmatprep.mubr.msk.f32.mxu1 %vm7371_vm1, %v7370_v1  ;;  %6666 = vmatprep.subr.mxu1 %v7370_v1 }
 0xce8   :  { %6671 = vmatprep.subr.mxu0 %v7370_v1 }
 0xce9   :  { %v2561_v36 = vpop.permute.xlu1 %2560  ;;  %6659 = vmatmul.mubr.msk.f32.vlgmr.msra.gmra.mrb[42].mxu1 %vm324_vm6, %v2483_v35  ;;  %v2639_v38 = vpop.permute.xlu0 %2638 }
 0xcea   :  { %6664 = vmatmul.mubr.msk.f32.vlgmr.msra.gmra.mrb[24].mxu0 %vm324_vm6, %v2561_v36  ;;  %6667 = vmatpush3.xpose.msk.msra.mxu1 %vm324_vm6, %v2641_v33 }
 0xceb   :  { %6668 = vmatprep.mubr.msk.f32.mxu1 %vm7371_vm1, %v7370_v1  ;;  %6676 = vmatprep.subr.mxu1 %v7370_v1 }
 0xcec   :  { %6673 = vmatprep.mubr.msk.f32.mxu0 %vm7371_vm1, %v7370_v1 }
 0xced   :  { %6669 = vmatmul.mubr.msk.f32.vlgmr.msra.gmra.mrb[44].mxu1 %vm324_vm6, %v2639_v38 }
 0xcee   :  { %6678 = vmatprep.mubr.msk.f32.mxu1 %vm7371_vm1, %v7370_v1 }
 0xda8   :  { %v2166_v39 = vpop.f32.mrb[32].mxu1 }
 0xda9   :  { %v2167_v40 = vadd.f32 %v2166_v39, %v7702_v56  ;;  %v6635_v41 = vpop.f32.mrb[33].mxu1 }
 0xdab   :  { %v2716_v42 = vsel %vm324_vm6, %v2167_v40, -inf }
 0xdac   :  { %2717 = vmax.xlane.f32.xlu1 %v2716_v42  ;;  %v2244_v43 = vpop.f32.mrb[34].mxu1 }
 0xdad   :  { %v2245_v32 = vadd.f32 %v2244_v43, %v7702_v56  ;;  %v6640_v44 = vpop.f32.mrb[35].mxu1 }
 0xdaf   :  { %v2719_v45 = vsel %vm324_vm6, %v2245_v32, -inf }
 0xdb0   :  { %2720 = vmax.xlane.f32.xlu0 %v2719_v45  ;;  %v2322_v46 = vpop.f32.mrb[36].mxu1 }
 0xdb1   :  { %v2323_v47 = vadd.f32 %v2322_v46, %v7702_v56  ;;  %v6645_v48 = vpop.f32.mrb[37].mxu1 }
 0xdb3   :  { %v2722_v25 = vsel %vm324_vm6, %v2323_v47, -inf }
 0xdb4   :  { %2723 = vmax.xlane.f32.xlu0 %v2722_v25  ;;  %v2400_v49 = vpop.f32.mrb[38].mxu1 }
 0xdb5   :  { %v2401_v27 = vadd.f32 %v2400_v49, %v7702_v56  ;;  %v6650_v50 = vpop.f32.mrb[39].mxu1 }
 0xdb7   :  { %v2725_v51 = vsel %vm324_vm6, %v2401_v27, -inf }
 0xdb8   :  { %2726 = vmax.xlane.f32.xlu1 %v2725_v51  ;;  %v2478_v52 = vpop.f32.mrb[40].mxu1 }
 0xdb9   :  { %v7943_v55 = vadd.f32 %v2478_v52, %v7718_v11  ;;  %v6655_v57 = vpop.f32.mrb[41].mxu1 }
 0xdbb   :  { %v2728_v58 = vsel %vm324_vm6, %v7943_v55, -inf }
 0xdbc   :  { %2729 = vmax.xlane.f32.xlu0 %v2728_v58  ;;  %v2556_v59 = vpop.f32.mrb[42].mxu1 }
 0xdbd   :  { %v2557_v60 = vadd.f32 %v2556_v59, %v7718_v11  ;;  %v6660_v61 = vpop.f32.mrb[43].mxu1  ;;  %v2634_v62 = vpop.f32.mrb[24].mxu0 }
 0xdbe   :  { %v2635_v56 = vadd.f32 %v2634_v62, %v7718_v11  ;;  %v6665_v63 = vpop.f32.mrb[25].mxu0 }
 0xdbf   :  { %v2731_v2 = vsel %vm324_vm6, %v2557_v60, -inf }
 0xdc0   :  { %2732 = vmax.xlane.f32.xlu1 %v2731_v2  ;;  %v2712_v3 = vpop.f32.mrb[44].mxu1  ;;  %v2734_v5 = vsel %vm324_vm6, %v2635_v56, -inf }
 0xdc1   :  { %v2713_v6 = vadd.f32 %v2712_v3, %v7718_v11  ;;  %v6670_v7 = vpop.f32.mrb[45].mxu1  ;;  %2735 = vmax.xlane.f32.xlu0 %v2734_v5 }
 0xdc3   :  { %v2737_v8 = vsel %vm324_vm6, %v2713_v6, -inf }
 0xdc4   :  { %2738 = vmax.xlane.f32.xlu1 %v2737_v8 }
 0xdd5   :  { %2880 = vrot.lane.b32.xlu1 %v7866_v15, %s7382_s28 }
 0xdd7   :  { %2804 = vrot.lane.b32.xlu0 %v7866_v15, %s7379_s9 }
 0xdd9   :  { %2956 = vrot.lane.b32.xlu1 %v7866_v15, %s7380_s23 }
 0xddb   :  { %3032 = vrot.lane.b32.xlu0 %v7866_v15, %s7381_s26 }
 0xddd   :  { %3123 = vrot.lane.b32.xlu1 %v7879_v20, %s7379_s9 }
 0xddf   :  { %3199 = vrot.lane.b32.xlu0 %v7879_v20, %s7382_s28 }
 0xe39   :  { %v2718_v11 = vpop.xlane.xlu1 %2717 }
 0xe3a   :  { %v2740_v12 = vsub.f32 %v2167_v40, %v2718_v11 }
 0xe3c   :  { %v2748_v13 = vmul.f32 1.442695, %v2740_v12 }
 0xe3d   :  { %v2721_v14 = vpop.xlane.xlu0 %2720 }
 0xe3e   :  { %7237 = vpow2.f32 %v2748_v13  ;;  %v2741_v16 = vsub.f32 %v2245_v32, %v2721_v14 }
 0xe40   :  { %v2750_v17 = vmul.f32 1.442695, %v2741_v16 }
 0xe41   :  { %v2724_v18 = vpop.xlane.xlu0 %2723 }
 0xe42   :  { %7239 = vpow2.f32 %v2750_v17  ;;  %v2742_v28 = vsub.f32 %v2323_v47, %v2724_v18 }
 0xe44   :  { %v2752_v35 = vmul.f32 1.442695, %v2742_v28 }
 0xe45   :  { %v2727_v19 = vpop.xlane.xlu1 %2726 }
 0xe46   :  { %v2743_v21 = vsub.f32 %v2401_v27, %v2727_v19 }
 0xe48   :  { %v7238_v22 = vpop.eup %7237  ;;  %v2754_v23 = vmul.f32 1.442695, %v2743_v21 }
 0xe49   :  { %v2730_v15 = vpop.xlane.xlu0 %2729  ;;  %v2764_v24 = vsel %vm324_vm6, %v7238_v22, 0.0 }
 0xe4a   :  { %7241 = vpow2.f32 %v2754_v23  ;;  %2765 = vadd.xlane.f32.xlu0 %v2764_v24  ;;  %v2744_v36 = vsub.f32 %v7943_v55, %v2730_v15 }
 0xe4c   :  { %v7966_v26 = vpop.eup %7239  ;;  %v2756_v32 = vmul.f32 1.442695, %v2744_v36 }
 0xe4d   :  { %v2733_v37 = vpop.xlane.xlu1 %2732  ;;  %v2767_v29 = vsel %vm324_vm6, %v7966_v26, 0.0 }
 0xe4e   :  { %v2745_v30 = vsub.f32 %v2557_v60, %v2733_v37  ;;  %2768 = vadd.xlane.f32.xlu1 %v2767_v29  ;;  %v2736_v31 = vpop.xlane.xlu0 %2735 }
 0xe4f   :  { %v2746_v33 = vsub.f32 %v2635_v56, %v2736_v31 }
 0xe50   :  { %v2758_v34 = vmul.f32 1.442695, %v2745_v30 }
 0xe51   :  { %v2760_v38 = vmul.f32 1.442695, %v2746_v33  ;;  %v2739_v39 = vpop.xlane.xlu1 %2738 }
 0xe52   :  { %7243 = vpow2.f32 %v2758_v34  ;;  %v2747_v40 = vsub.f32 %v2713_v6, %v2739_v39  ;;  %v2805_v41 = vpop.permute.xlu0 %2804 }
 0xe53   :  { %7245 = vpow2.f32 %v2760_v38  ;;  %6672 = vmatpush3.msra.mxu0 %v2805_v41 }
 0xe54   :  { %v7242_v42 = vpop.eup %7241  ;;  %v2762_v43 = vmul.f32 1.442695, %v2747_v40  ;;  %6681 = vmatprep.subr.mxu0 %v7370_v1  ;;  %7247 = vpow2.f32 %v2752_v35  ;;  %v6871_v35 = vld [vmem:[%s8334_s14] sm:$0xff]  }
 0xe55   :  { %v2881_v44 = vpop.permute.xlu1 %2880  ;;  %v2773_v45 = vsel %vm324_vm6, %v7242_v42, 0.0 }
 0xe56   :  { %7249 = vpow2.f32 %v2762_v43  ;;  %2774 = vadd.xlane.f32.xlu1 %v2773_v45  ;;  %6677 = vmatpush3.msra.mxu1 %v2881_v44  ;;  %v3033_v57 = vpop.permute.xlu0 %3032 }
 0xe57   :  { %6686 = vmatprep.subr.mxu1 %v7370_v1  ;;  %7251 = vpow2.f32 %v2756_v32  ;;  %v6872_v32 = vld [vmem:[%s8334_s14 + $0x8] sm:$0xff]  }
 0xe59   :  { %v2957_v58 = vpop.permute.xlu1 %2956 }
 0xe5a   :  { %v3200_v59 = vpop.permute.xlu0 %3199 }
 0xe5c   :  { %v7244_v46 = vpop.eup %7243 }
 0xe5d   :  { %v7974_v47 = vpop.eup %7245  ;;  %v2779_v48 = vsel %vm324_vm6, %v7244_v46, 0.0  ;;  %v3124_v60 = vpop.permute.xlu1 %3123 }
 0xe5e   :  { %2780 = vadd.xlane.f32.xlu1 %v2779_v48  ;;  %v2782_v25 = vsel %vm324_vm6, %v7974_v47, 0.0  ;;  %v7248_v49 = vpop.eup %7247 }
 0xe5f   :  { %2783 = vadd.xlane.f32.xlu0 %v2782_v25  ;;  %v2770_v51 = vsel %vm324_vm6, %v7248_v49, 0.0 }
 0xe60   :  { %v7250_v27 = vpop.eup %7249 }
 0xe61   :  { %v2785_v50 = vsel %vm324_vm6, %v7250_v27, 0.0  ;;  %v7252_v52 = vpop.eup %7251 }
 0xe62   :  { %2786 = vadd.xlane.f32.xlu1 %v2785_v50  ;;  %v2776_v55 = vsel %vm324_vm6, %v7252_v52, 0.0 }
 0xe63   :  { %2771 = vadd.xlane.f32.xlu0 %v2770_v51 }
 0xe67   :  { %2777 = vadd.xlane.f32.xlu0 %v2776_v55 }
 0xe73   :  { %3275 = vrot.lane.b32.xlu1 %v7879_v20, %s7380_s23 }
 0xe7d   :  { %3351 = vrot.lane.b32.xlu0 %v7879_v20, %s7381_s26 }
 0xed7   :  { %v2766_v61 = vpop.xlane.xlu0 %2765 }
 0xed8   :  { %7253 = vrcp.f32 %v2766_v61 }
 0xedb   :  { %v2769_v62 = vpop.xlane.xlu1 %2768 }
 0xedc   :  { %7255 = vrcp.f32 %v2769_v62 }
 0xee2   :  { %v7254_v56 = vpop.eup %7253 }
 0xee3   :  { %v2796_v63 = vmul.f32 %v7254_v56, %v7238_v22  ;;  %v2775_v2 = vpop.xlane.xlu1 %2774 }
 0xee4   :  { %7257 = vrcp.f32 %v2775_v2 }
 0xee5   :  { %6674 = vmatmul.mubr.msk.f32.vlgmr.msra.gmra.mrb[26].mxu0 %vm324_vm6, %v2796_v63 }
 0xee6   :  { %v7256_v3 = vpop.eup %7255  ;;  %6682 = vmatpush3.msra.mxu0 %v2957_v58  ;;  %6683 = vmatprep.mubr.msk.f32.mxu0 %vm7371_vm1, %v7370_v1 }
 0xee7   :  { %v2797_v20 = vmul.f32 %v7256_v3, %v7966_v26  ;;  %6691 = vmatprep.subr.mxu0 %v7370_v1 }
 0xee9   :  { %6679 = vmatmul.mubr.msk.f32.vlgmr.msra.gmra.mrb[46].mxu1 %vm324_vm6, %v2797_v20  ;;  %v6091_v20 = vld [vmem:[%s8335_s19] ss:$0 sm:$0xff] }
 0xeea   :  { %6687 = vmatpush3.msra.mxu1 %v3033_v57  ;;  %6688 = vmatprep.mubr.msk.f32.mxu1 %vm7371_vm1, %v7370_v1 }
 0xeeb   :  { %v2781_v5 = vpop.xlane.xlu1 %2780  ;;  %6696 = vmatprep.subr.mxu1 %v7370_v1 }
 0xeec   :  { %7259 = vrcp.f32 %v2781_v5  ;;  %v2784_v6 = vpop.xlane.xlu0 %2783 }
 0xeee   :  { %v7258_v7 = vpop.eup %7257 }
 0xeef   :  { %v2799_v8 = vmul.f32 %v7258_v7, %v7242_v42  ;;  %v2787_v11 = vpop.xlane.xlu1 %2786 }
 0xef0   :  { %7261 = vrcp.f32 %v2787_v11  ;;  %v2772_v12 = vpop.xlane.xlu0 %2771 }
 0xef1   :  { %7263 = vrcp.f32 %v2772_v12  ;;  %6689 = vmatmul.mubr.msk.f32.vlgmr.msra.gmra.mrb[48].mxu1 %vm324_vm6, %v2799_v8 }
 0xef2   :  { %6697 = vmatpush3.msra.mxu1 %v3200_v59  ;;  %6698 = vmatprep.mubr.msk.f32.mxu1 %vm7371_vm1, %v7370_v1 }
 0xef3   :  { %6706 = vmatprep.subr.mxu1 %v7370_v1  ;;  %v3276_v26 = vpop.permute.xlu1 %3275 }
 0xef4   :  { %v2778_v13 = vpop.xlane.xlu0 %2777 }
 0xef5   :  { %7265 = vrcp.f32 %v2778_v13 }
 0xef6   :  { %v7260_v14 = vpop.eup %7259  ;;  %7267 = vrcp.f32 %v2784_v6 }
 0xef7   :  { %v2801_v16 = vmul.f32 %v7260_v14, %v7244_v46 }
 0xef8   :  { %v3352_v17 = vpop.permute.xlu0 %3351 }
 0xef9   :  { %6699 = vmatmul.mubr.msk.f32.vlgmr.msra.gmra.mrb[50].mxu1 %vm324_vm6, %v2801_v16 }
 0xefa   :  { %v7262_v18 = vpop.eup %7261  ;;  %6707 = vmatpush3.msra.mxu1 %v3352_v17  ;;  %6708 = vmatprep.mubr.msk.f32.mxu1 %vm7371_vm1, %v7370_v1 }
 0xefb   :  { %v7264_v19 = vpop.eup %7263  ;;  %v2803_v21 = vmul.f32 %v7262_v18, %v7250_v27  ;;  %6719 = vmatprep.subr.bf16.mxu1 %v7370_v1 }
 0xefc   :  { %v2798_v22 = vmul.f32 %v7264_v19, %v7248_v49 }
 0xefd   :  { %6709 = vmatmul.mubr.msk.f32.vlgmr.msra.gmra.mrb[52].mxu1 %vm324_vm6, %v2803_v21 }
 0xefe   :  { %6684 = vmatmul.mubr.msk.f32.vlgmr.msra.gmra.mrb[28].mxu0 %vm324_vm6, %v2798_v22  ;;  %6723 = vmatprep.mubr.msk.bf16.mxu1 %vm7371_vm1, %v7370_v1 }
 0xeff   :  { %v7266_v23 = vpop.eup %7265  ;;  %6692 = vmatpush3.msra.mxu0 %v3124_v60  ;;  %6693 = vmatprep.mubr.msk.f32.mxu0 %vm7371_vm1, %v7370_v1 }
 0xf00   :  { %v2800_v15 = vmul.f32 %v7266_v23, %v7252_v52  ;;  %6701 = vmatprep.subr.mxu0 %v7370_v1  ;;  %v7268_v24 = vpop.eup %7267 }
 0xf01   :  { %v2802_v28 = vmul.f32 %v7268_v24, %v7974_v47 }
 0xf02   :  { %6694 = vmatmul.mubr.msk.f32.vlgmr.msra.gmra.mrb[30].mxu0 %vm324_vm6, %v2800_v15 }
 0xf03   :  { %6702 = vmatpush3.msra.mxu0 %v3276_v26  ;;  %6703 = vmatprep.mubr.msk.f32.mxu0 %vm7371_vm1, %v7370_v1 }
 0xf04   :  { %6711 = vmatprep.subr.bf16.mxu0 %v7370_v1 }
 0xf06   :  { %6704 = vmatmul.mubr.msk.f32.vlgmr.msra.gmra.mrb[32].mxu0 %vm324_vm6, %v2802_v28  ;;  %v6873_v28 = vld [vmem:[%s8336_s24] sm:$0xff]  }
 0xf07   :  { %6715 = vmatprep.mubr.msk.bf16.mxu0 %vm7371_vm1, %v7370_v1  ;;  %6712 = vmatpush3.bf16.msra.mxu0 %v6871_v35  ;;  %v6880_v35 = vld [vmem:[%s8337_s30 + $0x28] sm:$0xff]  }
 0xf08   :  { %6713 = vmatprep.subr.bf16.mxu0 %v7370_v1  ;;  %6720 = vmatpush3.bf16.msra.mxu1 %v6873_v28  ;;  %v6888_v28 = vld [vmem:[%s8342_s0 + $0x34] ss:$24 sps:$4 sm:$0xff]  }
 0xf09   :  { %6721 = vmatprep.subr.bf16.mxu1 %v7370_v1 }
 0xf0b   :  { %6714 = vmatpush3.bf16.msra.mxu0 %v6872_v32 }
 0xf0c   :  { %6727 = vmatprep.subr.bf16.mxu0 %v7370_v1 }
 0xfb8   :  { %v2876_v37 = vpop.f32.mrb[26].mxu0 }
 0xfb9   :  { %v6675_v29 = vpop.f32.mrb[27].mxu0 }
 0xfba   :  { %v6875_v29 = vld [vmem:[%s8337_s30] sm:$0xff]  }
 0xfbc   :  { %v2952_v30 = vpop.f32.mrb[46].mxu1 }
 0xfbd   :  { %v6680_v31 = vpop.f32.mrb[47].mxu1 }
 0xfbe   :  { %v6877_v31 = vld [vmem:[%s8337_s30 + $0x10] sm:$0xff]  }
 0xfc4   :  { %v3104_v33 = vpop.f32.mrb[48].mxu1 }
 0xfc5   :  { %v6690_v34 = vpop.f32.mrb[49].mxu1 }
 0xfc6   :  { %v6879_v34 = vld [vmem:[%s8337_s30 + $0x20] sm:$0xff]  }
 0xfcc   :  { %v3271_v36 = vpop.f32.mrb[50].mxu1 }
 0xfcd   :  { %v6840_v38 = vpack.i.bf16 %v3271_v36, %v2952_v30  ;;  %v6700_v39 = vpop.f32.mrb[51].mxu1  ;;  %v6876_v30 = vld [vmem:[%s8337_s30 + $0x8] sm:$0xff]  }
 0xfcf   :  { %6841 = vrot.lane.b32.xlu1 %v6840_v38, %s7383_s1 }
 0xfd0   :  { %v3423_v40 = vpop.f32.mrb[52].mxu1 }
 0xfd1   :  { %v6850_v41 = vpack.i.bf16 %v3423_v40, %v3104_v33  ;;  %v3028_v42 = vpop.f32.mrb[28].mxu0  ;;  %v6710_v43 = vpop.f32.mrb[53].mxu1  ;;  %v6878_v33 = vld [vmem:[%s8337_s30 + $0x18] sm:$0xff]  }
 0xfd2   :  { %v6685_v44 = vpop.f32.mrb[29].mxu0 }
 0xfd3   :  { %6851 = vrot.lane.b32.xlu1 %v6850_v41, %s7384_s2  ;;  %v6095_v44 = vld [vmem:[%s8338_s7] ss:$0 sm:$0xff] }
 0xfd5   :  { %v3195_v45 = vpop.f32.mrb[30].mxu0 }
 0xfd6   :  { %v6695_v46 = vpop.f32.mrb[31].mxu0 }
 0xfd9   :  { %v3347_v47 = vpop.f32.mrb[32].mxu0 }
 0xfda   :  { %v6845_v48 = vpack.i.bf16 %v3347_v47, %v3028_v42  ;;  %v6705_v25 = vpop.f32.mrb[33].mxu0 }
 0xfdc   :  { %6846 = vrot.lane.b32.xlu0 %v6845_v48, %s7368_s16  ;;  %v6096_v48 = vld [vmem:[%s8339_s10] ss:$0 sm:$0xff]  ;;  %s8343_s16 = sld [smem:[#allocation20_spill]] }
0x1041   :  { %v6842_v49 = vpop.permute.xlu1 %6841 }
0x1042   :  { %v6844_v27 = vunpack.i.h.bf16 %v6842_v49  ;;  %v6843_v50 = vunpack.i.l.bf16 %v6842_v49 }
0x1044   :  { %v3120_v58 = vsel %vm324_vm6, %v2876_v37, %v6843_v50  ;;  %v3439_v59 = vsel %vm324_vm6, %v3195_v45, %v6844_v27  ;;  %v6874_v37 = vld [vmem:[%s8336_s24 + $0x8] sm:$0xff]   ;;  %vm5959_vm6 = vcmask 33792  }
0x1045   :  { %v6852_v51 = vpop.permute.xlu1 %6851  ;;  %6722 = vmatpush3.bf16.msra.mxu1 %v6874_v37  ;;  %v6886_v37 = vld [vmem:[%s8342_s0 + $0x30] ss:$24 sps:$4 sm:$0xff]  }
0x1046   :  { %v6854_v60 = vunpack.i.h.bf16 %v6852_v51  ;;  %v6853_v61 = vunpack.i.l.bf16 %v6852_v51  ;;  %v6881_v51 = vld [vmem:[%s8337_s30 + $0x30] sm:$0xff]  }
0x104e   :  { %v6847_v52 = vpop.permute.xlu0 %6846 }
0x104f   :  { %v6849_v55 = vunpack.i.h.bf16 %v6847_v52  ;;  %v6848_v57 = vunpack.i.l.bf16 %v6847_v52  ;;  %v6882_v52 = vld [vmem:[%s8337_s30 + $0x38] sm:$0xff]  }
0x1051   :  { %v3440_v62 = vsel %vm1355_vm7, %v3439_v59, %v6849_v55  ;;  %v3121_v56 = vsel %vm1355_vm7, %v3120_v58, %v6848_v57  ;;  %v6097_v55 = vld [vmem:[%s8340_s11] ss:$0 sm:$0xff] }
0x1052   :  { %v3441_v63 = vsel %vm1357_vm8, %v3440_v62, %v6854_v60  ;;  %v3122_v2 = vsel %vm1357_vm8, %v3121_v56, %v6853_v61 }
0x1053   :  { %v3442_v3 = vpack.c.bf16 %v3441_v63, %v3122_v2 }
0x1055   :  { %6716 = vmatmul.mubr.msk.bf16.vlgmr.msra.gmra.mrb[36].mxu0 %vm270_vm5, %v3442_v3  ;;  %v6101_v3 = vld [vmem:[%s8341_s15] ss:$0 sm:$0xff] }
0x1056   :  { %6743 = vmatprep.mubr.msk.bf16.mxu0 %vm7371_vm1, %v7370_v1  ;;  %6728 = vmatpush3.bf16.msra.mxu0 %v6875_v29  ;;  %v6891_v29 = vld [vmem:[%s8342_s0 + $0xc] ss:$24 sps:$4 sm:$0xff]  }
0x1057   :  { %6729 = vmatprep.subr.bf16.mxu0 %v7370_v1 }
0x105a   :  { %6730 = vmatpush3.bf16.msra.mxu0 %v6876_v30 }
0x105b   :  { %6731 = vmatprep.subr.bf16.mxu0 %v7370_v1 }
0x105e   :  { %6732 = vmatpush3.bf16.msra.mxu0 %v6877_v31 }
0x105f   :  { %6733 = vmatprep.subr.bf16.mxu0 %v7370_v1 }
0x1062   :  { %6734 = vmatpush3.bf16.msra.mxu0 %v6878_v33 }
0x1063   :  { %6735 = vmatprep.subr.bf16.mxu0 %v7370_v1 }
0x1066   :  { %6736 = vmatpush3.bf16.msra.mxu0 %v6879_v34 }
0x1067   :  { %6737 = vmatprep.subr.bf16.mxu0 %v7370_v1 }
0x106a   :  { %6738 = vmatpush3.bf16.msra.mxu0 %v6880_v35 }
0x106b   :  { %6739 = vmatprep.subr.bf16.mxu0 %v7370_v1 }
0x106e   :  { %6740 = vmatpush3.bf16.msra.mxu0 %v6881_v51 }
0x106f   :  { %6741 = vmatprep.subr.bf16.mxu0 %v7370_v1 }
0x1072   :  { %6742 = vmatpush3.bf16.msra.mxu0 %v6882_v52 }
0x1128   :  { %v3503_v5 = vpop.f32.mrb[36].mxu0 }
0x1129   :  { %v3504_v6 = vadd.f32 %v6091_v20, %v3503_v5  ;;  %v6717_v7 = vpop.f32.mrb[37].mxu0 }
0x112a   :  { %v3506_v8 = vpop.f32.mrb[38].mxu0 }
0x112b   :  { %v3507_v11 = vadd.f32 %v6091_v20, %v3506_v8  ;;  %v6718_v12 = vpop.f32.mrb[39].mxu0  ;;  %v3510_v13 = vadd.f32 %v3504_v6, %v7856_v9 }
0x112d   :  { %v3514_v14 = vsel %vm270_vm5, %v3510_v13, 0.0  ;;  %v3511_v16 = vadd.f32 %v3507_v11, %v7858_v10 }
0x112e   :  { %3515 = vadd.xlane.f32.xlu0 %v3514_v14 }
0x112f   :  { %v3517_v17 = vsel %vm270_vm5, %v3511_v16, 0.0 }
0x1130   :  { %3518 = vadd.xlane.f32.xlu1 %v3517_v17 }
0x11bb   :  { %v3516_v18 = vpop.xlane.xlu0 %3515 }
0x11bc   :  { %v3520_v19 = vmul.f32 0.03125, %v3516_v18 }
0x11bd   :  { %v3519_v21 = vpop.xlane.xlu1 %3518 }
0x11be   :  { %v3522_v22 = vsub.f32 %v3510_v13, %v3520_v19  ;;  %v3521_v23 = vmul.f32 0.03125, %v3519_v21 }
0x11c0   :  { %v3523_v15 = vsub.f32 %v3511_v16, %v3521_v23  ;;  %v3524_v24 = vmul.f32 %v3522_v22, %v3522_v22 }
0x11c2   :  { %v3526_v9 = vsel %vm270_vm5, %v3524_v24, 0.0  ;;  %v3525_v26 = vmul.f32 %v3523_v15, %v3523_v15 }
0x11c3   :  { %3527 = vadd.xlane.f32.xlu0 %v3526_v9 }
0x11c4   :  { %v3529_v10 = vsel %vm270_vm5, %v3525_v26, 0.0  ;;  %v6883_v26 = vld [vmem:[%s8342_s0] ss:$24 sps:$4 sm:$0xff]  }
0x11c7   :  { %3530 = vadd.xlane.f32.xlu0 %v3529_v10  ;;  %v6885_v10 = vld [vmem:[%s8342_s0 + $0x4] ss:$24 sps:$4 sm:$0xff]  }
0x11c8   :  { %3911 = vmatprep.subr.bf16.mxu1 %v6885_v10 }
0x1250   :  { %v3528_v36 = vpop.xlane.xlu0 %3527 }
0x1251   :  { %v3532_v38 = vmul.f32 0.03125, %v3528_v36 }
0x1253   :  { %v3534_v39 = vadd.f32 1e-05, %v3532_v38 }
0x1254   :  { %v3531_v40 = vpop.xlane.xlu0 %3530 }
0x1255   :  { %7269 = vrsqrt.f32 %v3534_v39  ;;  %v3533_v41 = vmul.f32 0.03125, %v3531_v40  ;;  %v6110_v39 = vld [vmem:[%s8343_s16] ss:$0 sm:$0xff] }
0x1257   :  { %v3535_v42 = vadd.f32 1e-05, %v3533_v41 }
0x1259   :  { %7271 = vrsqrt.f32 %v3535_v42  ;;  %v6111_v42 = vld [vmem:[%s8344_s5] ss:$0 sm:$0xff] }
0x125f   :  { %v7270_v43 = vpop.eup %7269 }
0x1260   :  { %v3538_v32 = vmul.f32 %v7270_v43, %v3522_v22 }
0x1262   :  { %v3546_v46 = vmul.f32 %v6095_v44, %v3538_v32 }
0x1263   :  { %v7272_v45 = vpop.eup %7271 }
0x1264   :  { %v3539_v47 = vmul.f32 %v7272_v45, %v3523_v15  ;;  %v3554_v49 = vadd.f32 %v6096_v48, %v3546_v46 }
0x1266   :  { %v3547_v25 = vmul.f32 %v6095_v44, %v3539_v47 }
0x1268   :  { %v3555_v27 = vadd.f32 %v6096_v48, %v3547_v25 }
0x126a   :  { %v3556_v50 = vpack.c.bf16 %v3555_v27, %v3554_v49 }
0x126c   :  { %6724 = vmatmul.mubr.msk.bf16.vlgmr.msra.gmra.mrb[56].mxu1 %vm270_vm5, %v3556_v50 }
0x126d   :  { %3943 = vmatprep.mubr.bf16.mxu1 %v7369_v0  ;;  %3912 = vmatpush1.bf16.msra.mxu1 %v6883_v26 }
0x126e   :  { %3913 = vmatprep.subr.bf16.mxu1 %v6888_v28 }
0x1271   :  { %3914 = vmatpush1.bf16.msra.mxu1 %v6886_v37  ;;  %v8113_v37 = vsub.s32 4, %v7695_v53 }
0x1272   :  { %3952 = vmatprep.subr.bf16.mxu1 %v6891_v29 }
0x133f   :  { %v3617_v57 = vpop.f32.mrb[56].mxu1 }
0x1340   :  { %v3618_v58 = vadd.f32 %v6097_v55, %v3617_v57  ;;  %v6725_v59 = vpop.f32.mrb[57].mxu1 }
0x1341   :  { %v3620_v60 = vpop.f32.mrb[58].mxu1 }
0x1342   :  { %v3621_v61 = vadd.f32 %v6097_v55, %v3620_v60  ;;  %v6726_v62 = vpop.f32.mrb[59].mxu1  ;;  %v3624_v56 = vmax.f32 %v3618_v58, 0.0 }
0x1344   :  { %v3625_v63 = vmax.f32 %v3621_v61, 0.0 }
0x1346   :  { %v3626_v2 = vpack.c.bf16 %v3625_v63, %v3624_v56 }
0x1348   :  { %6744 = vmatmul.mubr.bf16.vlgmr.msra.gmra.mrb[40].mxu0 %v3626_v2  ;;  %v6889_v2 = vld [vmem:[%s8342_s0 + $0x8] ss:$24 sps:$4 sm:$0xff]  }
0x141b   :  { %v3732_v20 = vpop.f32.mrb[40].mxu0 }
0x141c   :  { %v3733_v5 = vadd.f32 %v6101_v3, %v3732_v20  ;;  %v6745_v6 = vpop.f32.mrb[41].mxu0  ;;  %v6894_v20 = vld [vmem:[%s8342_s0 + $0x3c] ss:$24 sps:$4 sm:$0xff]  }
0x141d   :  { %v3735_v7 = vpop.f32.mrb[42].mxu0  ;;  %v6897_v6 = vld [vmem:[%s8342_s0 + $0x14] ss:$24 sps:$4 sm:$0xff]  }
0x141e   :  { %v3736_v8 = vadd.f32 %v6101_v3, %v3735_v7  ;;  %v6746_v1 = vpop.f32.mrb[43].mxu0  ;;  %v3739_v11 = vadd.f32 %v3733_v5, %v3554_v49  ;;  %v6892_v5 = vld [vmem:[%s8342_s0 + $0x38] ss:$24 sps:$4 sm:$0xff]  }
0x141f   :  { %v6895_v7 = vld [vmem:[%s8342_s0 + $0x10] ss:$24 sps:$4 sm:$0xff]   ;;  %v6898_v1 = vld [vmem:[%s8342_s0 + $0x40] ss:$24 sps:$4 sm:$0xff]  }
0x1420   :  { %v3740_v12 = vadd.f32 %v3736_v8, %v3555_v27  ;;  %v3743_v13 = vsel %vm270_vm5, %v3739_v11, 0.0  ;;  %v6900_v8 = vld [vmem:[%s8342_s0 + $0x44] ss:$24 sps:$4 sm:$0xff]  }
0x1421   :  { %3744 = vadd.xlane.f32.xlu1 %v3743_v13 }
0x1422   :  { %v3746_v14 = vsel %vm270_vm5, %v3740_v12, 0.0 }
0x1423   :  { %3747 = vadd.xlane.f32.xlu0 %v3746_v14 }
0x14ae   :  { %v3745_v16 = vpop.xlane.xlu1 %3744 }
0x14af   :  { %v3749_v17 = vmul.f32 0.03125, %v3745_v16 }
0x14b0   :  { %v3748_v18 = vpop.xlane.xlu0 %3747 }
0x14b1   :  { %v3751_v19 = vsub.f32 %v3739_v11, %v3749_v17  ;;  %v3750_v21 = vmul.f32 0.03125, %v3748_v18  ;;  %v3816_v11 = vld [vmem:[%s8345_s13] sm:$0x3f]  ;;  %v8095_v17 = vsub.s32 2, %v7695_v53 }
0x14b2   :  { %v3821_v13 = vrot.slane %v3816_v11, %v7698_v54  ;;  %v3825_v14 = vrot.slane %v3816_v11, %v7709_v4 }
0x14b3   :  { %v3752_v22 = vsub.f32 %v3740_v12, %v3750_v21  ;;  %v3753_v23 = vmul.f32 %v3751_v19, %v3751_v19  ;;  %v8098_v21 = vsub.s32 3, %v7695_v53 }
0x14b5   :  { %v3755_v15 = vsel %vm270_vm5, %v3753_v23, 0.0  ;;  %v3754_v24 = vmul.f32 %v3752_v22, %v3752_v22  ;;  %v3829_v23 = vrot.slane %v3816_v11, %v8095_v17 }
0x14b6   :  { %3756 = vadd.xlane.f32.xlu1 %v3755_v15  ;;  %v3833_v15 = vrot.slane %v3816_v11, %v8098_v21 }
0x14b7   :  { %v3758_v9 = vsel %vm270_vm5, %v3754_v24, 0.0 }
0x14b8   :  { %3759 = vadd.xlane.f32.xlu0 %v3758_v9 }
0x1543   :  { %v3757_v30 = vpop.xlane.xlu1 %3756 }
0x1544   :  { %v3761_v31 = vmul.f32 0.03125, %v3757_v30  ;;  %v8116_v30 = vsub.s32 5, %v7695_v53 }
0x1545   :  { %v3760_v33 = vpop.xlane.xlu0 %3759 }
0x1546   :  { %v3763_v34 = vadd.f32 1e-05, %v3761_v31  ;;  %v3762_v35 = vmul.f32 0.03125, %v3760_v33 }
0x1548   :  { %7273 = vrsqrt.f32 %v3763_v34  ;;  %v3764_v36 = vadd.f32 1e-05, %v3762_v35 }
0x154a   :  { %7275 = vrsqrt.f32 %v3764_v36  ;;  %v3837_v36 = vrot.slane %v3816_v11, %v8113_v37 }
0x1552   :  { %v7274_v38 = vpop.eup %7273 }
0x1553   :  { %v3767_v40 = vmul.f32 %v7274_v38, %v3751_v19 }
0x1554   :  { %v7276_v41 = vpop.eup %7275 }
0x1555   :  { %v3775_v43 = vmul.f32 %v6110_v39, %v3767_v40  ;;  %v3768_v32 = vmul.f32 %v7276_v41, %v3752_v22 }
0x1557   :  { %v3783_v44 = vadd.f32 %v6111_v42, %v3775_v43  ;;  %v3776_v45 = vmul.f32 %v6110_v39, %v3768_v32  ;;  %v3841_v39 = vrot.slane %v3816_v11, %v8116_v30  ;;  %v6931_v11 = vld [vmem:[#allocation2 + $0xa0] ss:$16 sps:$4 sm:$0xff]  }
0x1559   :  { %v3785_v46 = vsel %vm270_vm5, %v3783_v44, 0.0  ;;  %v3784_v47 = vadd.f32 %v6111_v42, %v3776_v45 }
0x155a   :  { %v3786_v48 = vrot.slane %v3785_v46, 4 }
0x155b   :  { %v3794_v25 = vsel %vm270_vm5, %v3784_v47, 0.0 }
0x155c   :  { %v3787_v49 = vadd.f32 %v3786_v48, %v3785_v46  ;;  %v3795_v27 = vrot.slane %v3794_v25, 4 }
0x155e   :  { %v3796_v50 = vadd.f32 %v3795_v27, %v3794_v25  ;;  %v3788_v51 = vrot.slane %v3787_v49, 2  ;;  %v6903_v27 = vld [vmem:[#allocation2 + $0x4] ss:$16 sps:$4 sm:$0xff]  }
0x1560   :  { %v3789_v52 = vadd.f32 %v3788_v51, %v3787_v49  ;;  %v3797_v55 = vrot.slane %v3796_v50, 2  ;;  %v6901_v49 = vld [vmem:[#allocation2] ss:$16 sps:$4 sm:$0xff]   ;;  %v6906_v51 = vld [vmem:[#allocation2 + $0xc] ss:$16 sps:$4 sm:$0xff]  }
0x1561   :  { %5390 = vmatprep.subr.bf16.mxu0 %v6906_v51 }
0x1562   :  { %v3790_v57 = vrot.slane %v3789_v52, 1  ;;  %v3798_v58 = vadd.f32 %v3797_v55, %v3796_v50  ;;  %v6904_v50 = vld [vmem:[#allocation2 + $0x8] ss:$16 sps:$4 sm:$0xff]   ;;  %v6912_v55 = vld [vmem:[#allocation2 + $0x2c] ss:$16 sps:$4 sm:$0xff]  }
0x1563   :  { %5391 = vmatpush1.bf16.msra.mxu0 %v6904_v50 }
0x1564   :  { %v3791_v59 = vadd.f32 %v3790_v57, %v3789_v52  ;;  %v3799_v60 = vrot.slane %v3798_v58, 1  ;;  %v6909_v52 = vld [vmem:[#allocation2 + $0x24] ss:$16 sps:$4 sm:$0xff]   ;;  %v6907_v57 = vld [vmem:[#allocation2 + $0x20] ss:$16 sps:$4 sm:$0xff]   ;;  %5392 = vmatprep.subr.bf16.mxu0 %v6912_v55 }
0x1566   :  { %v3800_v61 = vadd.f32 %v3799_v60, %v3798_v58  ;;  %v3793_v62 = vmul.f32 0.125, %v3791_v59  ;;  %v6910_v58 = vld [vmem:[#allocation2 + $0x28] ss:$16 sps:$4 sm:$0xff]   ;;  %v6915_v59 = vld [vmem:[#allocation2 + $0x44] ss:$16 sps:$4 sm:$0xff]  }
0x1567   :  { %v6918_v60 = vld [vmem:[#allocation2 + $0x4c] ss:$16 sps:$4 sm:$0xff]   ;;  %5393 = vmatpush1.bf16.msra.mxu0 %v6910_v58  ;;  %v6963_v58 = vld [vmem:[#allocation2 + $0x144] ss:$16 sps:$4 sm:$0xff]  }
0x1568   :  { %v3801_v56 = vmul.f32 0.125, %v3800_v61  ;;  %v6913_v61 = vld [vmem:[#allocation2 + $0x40] ss:$16 sps:$4 sm:$0xff]   ;;  %5394 = vmatprep.subr.bf16.mxu0 %v6918_v60 }
0x1569   :  { %v6961_v60 = vld [vmem:[#allocation2 + $0x140] ss:$16 sps:$4 sm:$0xff]  }
0x156a   :  { %v3802_v63 = vsel %vm200_vm0, %v3793_v62, %v3801_v56  ;;  %v6916_v62 = vld [vmem:[#allocation2 + $0x48] ss:$16 sps:$4 sm:$0xff]   ;;  %v6921_v56 = vld [vmem:[#allocation2 + $0x64] ss:$16 sps:$4 sm:$0xff]   ;;  %vm5263_vm0 = vcmask 523264  }
0x156b   :  { %v3803_v3 = vpack.c.bf16 %v3802_v63, %v3802_v63  ;;  %v6924_v63 = vld [vmem:[#allocation2 + $0x6c] ss:$16 sps:$4 sm:$0xff]   ;;  %5395 = vmatpush1.bf16.msra.mxu0 %v6916_v62  ;;  %v6967_v62 = vld [vmem:[#allocation2 + $0x160] ss:$16 sps:$4 sm:$0xff]  }
0x156c   :  { %5396 = vmatprep.subr.bf16.mxu0 %v6924_v63  ;;  %v6970_v63 = vld [vmem:[#allocation2 + $0x168] ss:$16 sps:$4 sm:$0xff]  }
0x156d   :  { %6124 = vmatmul.mubr.msk.bf16.vlgmr.msra.gmra.mrb[60].mxu1 %vm270_vm5, %v3803_v3 }
0x156e   :  { %3953 = vmatpush1.bf16.msra.mxu1 %v6889_v2  ;;  %3984 = vmatprep.mubr.bf16.mxu1 %v7369_v0  ;;  %v6919_v2 = vld [vmem:[#allocation2 + $0x60] ss:$16 sps:$4 sm:$0xff]  }
0x156f   :  { %3954 = vmatprep.subr.bf16.mxu1 %v6894_v20  ;;  %v6927_v20 = vld [vmem:[#allocation2 + $0x84] ss:$16 sps:$4 sm:$0xff]  }
0x1572   :  { %3955 = vmatpush1.bf16.msra.mxu1 %v6892_v5  ;;  %v6930_v5 = vld [vmem:[#allocation2 + $0x8c] ss:$16 sps:$4 sm:$0xff]  }
0x1573   :  { %3993 = vmatprep.subr.bf16.mxu1 %v6897_v6  ;;  %v6925_v6 = vld [vmem:[#allocation2 + $0x80] ss:$16 sps:$4 sm:$0xff]  }
0x1575   :  { %6125 = vmatmul.mubr.msk.bf16.vlgmr.msra.gmra.mrb[64].mxu1 %vm270_vm5, %v3803_v3 }
0x1576   :  { %3994 = vmatpush1.bf16.msra.mxu1 %v6895_v7  ;;  %4025 = vmatprep.mubr.bf16.mxu1 %v7369_v0  ;;  %v6928_v7 = vld [vmem:[#allocation2 + $0x88] ss:$16 sps:$4 sm:$0xff]  }
0x1577   :  { %3995 = vmatprep.subr.bf16.mxu1 %v6900_v8  ;;  %v6933_v8 = vld [vmem:[#allocation2 + $0xa4] ss:$16 sps:$4 sm:$0xff]  }
0x157a   :  { %3996 = vmatpush1.bf16.msra.mxu1 %v6898_v1  ;;  %v6936_v1 = vld [vmem:[#allocation2 + $0xac] ss:$16 sps:$4 sm:$0xff]  }
0x157b   :  { %5267 = vmatprep.subr.bf16.mxu1 %v6903_v27 }
0x157d   :  { %6126 = vmatmul.mubr.msk.bf16.vlgmr.msra.gmra.mrb[68].mxu1 %vm270_vm5, %v3803_v3  ;;  %v6922_v3 = vld [vmem:[#allocation2 + $0x68] ss:$16 sps:$4 sm:$0xff]  }
0x157e   :  { %5268 = vmatpush1.bf16.msra.mxu1 %v6901_v49  ;;  %5397 = vmatpush1.bf16.msra.mxu0 %v6922_v3  ;;  %v6975_v3 = vld [vmem:[#allocation2 + $0x184] ss:$16 sps:$4 sm:$0xff]  }
0x157f   :  { %5269 = vmatprep.subr.bf16.mxu1 %v6909_v52  ;;  %5398 = vmatprep.subr.bf16.mxu0 %v6930_v5  ;;  %v6973_v5 = vld [vmem:[#allocation2 + $0x180] ss:$16 sps:$4 sm:$0xff]  }
0x1582   :  { %5270 = vmatpush1.bf16.msra.mxu1 %v6907_v57  ;;  %5399 = vmatpush1.bf16.msra.mxu0 %v6928_v7  ;;  %v6981_v7 = vld [vmem:[#allocation2 + $0x1a4] ss:$16 sps:$4 sm:$0xff]  }
0x1583   :  { %5271 = vmatprep.subr.bf16.mxu1 %v6915_v59  ;;  %5400 = vmatprep.subr.bf16.mxu0 %v6936_v1  ;;  %v6966_v59 = vld [vmem:[#allocation2 + $0x14c] ss:$16 sps:$4 sm:$0xff]   ;;  %v6979_v1 = vld [vmem:[#allocation2 + $0x1a0] ss:$16 sps:$4 sm:$0xff]  }
0x1586   :  { %5272 = vmatpush1.bf16.msra.mxu1 %v6913_v61  ;;  %v6964_v61 = vld [vmem:[#allocation2 + $0x148] ss:$16 sps:$4 sm:$0xff]  }
0x1587   :  { %5273 = vmatprep.subr.bf16.mxu1 %v6921_v56  ;;  %v6969_v56 = vld [vmem:[#allocation2 + $0x164] ss:$16 sps:$4 sm:$0xff]  }
0x158a   :  { %5274 = vmatpush1.bf16.msra.mxu1 %v6919_v2  ;;  %v6972_v2 = vld [vmem:[#allocation2 + $0x16c] ss:$16 sps:$4 sm:$0xff]  }
0x158b   :  { %5275 = vmatprep.subr.bf16.mxu1 %v6927_v20  ;;  %v6978_v20 = vld [vmem:[#allocation2 + $0x18c] ss:$16 sps:$4 sm:$0xff]  }
0x158e   :  { %5276 = vmatpush1.bf16.msra.mxu1 %v6925_v6  ;;  %v6976_v6 = vld [vmem:[#allocation2 + $0x188] ss:$16 sps:$4 sm:$0xff]  }
0x158f   :  { %5277 = vmatprep.subr.bf16.mxu1 %v6933_v8  ;;  %v6984_v8 = vld [vmem:[#allocation2 + $0x1ac] ss:$16 sps:$4 sm:$0xff]  }
0x1592   :  { %5278 = vmatpush1.bf16.msra.mxu1 %v6931_v11  ;;  %v6982_v11 = vld [vmem:[#allocation2 + $0x1a8] ss:$16 sps:$4 sm:$0xff]  }
0x1640   :  { %v3945_v12 = vpop.f32.mrb[60].mxu1 }
0x1641   :  { %v3947_v16 = vpop.f32.mrb[61].mxu1  ;;  %v8100_v0 = vadd.f32 %v3945_v12, %v3821_v13  ;;  %v6934_v12 = vld [vmem:[#allocation2 + $0xa8] ss:$16 sps:$4 sm:$0xff]   ;;  %v6939_v13 = vld [vmem:[#allocation2 + $0xc4] ss:$16 sps:$4 sm:$0xff]  }
0x1642   :  { %v3949_v18 = vpop.f32.mrb[62].mxu1  ;;  %v8102_v22 = vadd.f32 %v3947_v16, %v3825_v14  ;;  %v6942_v14 = vld [vmem:[#allocation2 + $0xcc] ss:$16 sps:$4 sm:$0xff]   ;;  %v6937_v16 = vld [vmem:[#allocation2 + $0xc0] ss:$16 sps:$4 sm:$0xff]   ;;  %5401 = vmatpush1.bf16.msra.mxu0 %v6934_v12  ;;  %5279 = vmatprep.subr.bf16.mxu1 %v6939_v13 }
0x1643   :  { %v3950_v19 = vpop.f32.mrb[63].mxu1  ;;  %v4037_v9 = vsel %vm4036_vm9, %v8100_v0, 0.0  ;;  %v6940_v18 = vld [vmem:[#allocation2 + $0xc8] ss:$16 sps:$4 sm:$0xff]   ;;  %5402 = vmatprep.subr.bf16.mxu0 %v6942_v14  ;;  %5280 = vmatpush1.bf16.msra.mxu1 %v6937_v16  ;;  %v6987_v12 = vld [vmem:[#allocation2 + $0x1c4] ss:$16 sps:$4 sm:$0xff]  }
0x1644   :  { %v4038_v26 = vsel %vm4036_vm9, %v8102_v22, 0.0  ;;  %v6945_v19 = vld [vmem:[#allocation2 + $0xe4] ss:$16 sps:$4 sm:$0xff]   ;;  %v6990_v13 = vld [vmem:[#allocation2 + $0x1cc] ss:$16 sps:$4 sm:$0xff]  }
0x1645   :  { %v4039_v35 = vadd.f32 %v4038_v26, %v4037_v9  ;;  %5281 = vmatprep.subr.bf16.mxu1 %v6945_v19  ;;  %v6951_v9 = vld [vmem:[#allocation2 + $0x104] ss:$16 sps:$4 sm:$0xff]   ;;  %v6954_v26 = vld [vmem:[#allocation2 + $0x10c] ss:$16 sps:$4 sm:$0xff]   ;;  %v6985_v14 = vld [vmem:[#allocation2 + $0x1c0] ss:$16 sps:$4 sm:$0xff]  }
0x1646   :  { %5403 = vmatpush1.bf16.msra.mxu0 %v6940_v18  ;;  %v6988_v16 = vld [vmem:[#allocation2 + $0x1c8] ss:$16 sps:$4 sm:$0xff]   ;;  %v6993_v18 = vld [vmem:[#allocation2 + $0x1e4] ss:$16 sps:$4 sm:$0xff]   ;;  %v6996_v19 = vld [vmem:[#allocation2 + $0x1ec] ss:$16 sps:$4 sm:$0xff]  }
0x1648   :  { %v3986_v24 = vpop.f32.mrb[64].mxu1 }
0x1649   :  { %v8110_v10 = vadd.f32 %v3986_v24, %v3829_v23  ;;  %v3988_v28 = vpop.f32.mrb[65].mxu1  ;;  %v6948_v23 = vld [vmem:[#allocation2 + $0xec] ss:$16 sps:$4 sm:$0xff]   ;;  %v6946_v24 = vld [vmem:[#allocation2 + $0xe8] ss:$16 sps:$4 sm:$0xff]  }
0x164a   :  { %v3990_v29 = vpop.f32.mrb[66].mxu1  ;;  %v8120_v33 = vadd.f32 %v3988_v28, %v3833_v15  ;;  %v6943_v15 = vld [vmem:[#allocation2 + $0xe0] ss:$16 sps:$4 sm:$0xff]   ;;  %5404 = vmatprep.subr.bf16.mxu0 %v6948_v23 }
0x164b   :  { %v4040_v31 = vsel %vm4036_vm9, %v8110_v10, 0.0  ;;  %v3991_v34 = vpop.f32.mrb[67].mxu1  ;;  %5282 = vmatpush1.bf16.msra.mxu1 %v6943_v15  ;;  %v6949_v28 = vld [vmem:[#allocation2 + $0x100] ss:$16 sps:$4 sm:$0xff]   ;;  %5405 = vmatpush1.bf16.msra.mxu0 %v6946_v24  ;;  %v6952_v29 = vld [vmem:[#allocation2 + $0x108] ss:$16 sps:$4 sm:$0xff]  }
0x164c   :  { %v4041_v38 = vadd.f32 %v4040_v31, %v4039_v35  ;;  %v4042_v40 = vsel %vm4036_vm9, %v8120_v33, 0.0  ;;  %5283 = vmatprep.subr.bf16.mxu1 %v6951_v9  ;;  %v6957_v31 = vld [vmem:[#allocation2 + $0x124] ss:$16 sps:$4 sm:$0xff]   ;;  %5406 = vmatprep.subr.bf16.mxu0 %v6954_v26  ;;  %v6960_v34 = vld [vmem:[#allocation2 + $0x12c] ss:$16 sps:$4 sm:$0xff]  }
0x164d   :  { %v6955_v35 = vld [vmem:[#allocation2 + $0x120] ss:$16 sps:$4 sm:$0xff]   ;;  %v6994_v15 = vld [vmem:[#allocation2 + $0x1e8] ss:$16 sps:$4 sm:$0xff]   ;;  %v6999_v24 = vld [vmem:[#allocation2 + $0x204] ss:$16 sps:$4 sm:$0xff]  }
0x164e   :  { %v4043_v43 = vadd.f32 %v4042_v40, %v4041_v38  ;;  %v6991_v23 = vld [vmem:[#allocation2 + $0x1e0] ss:$16 sps:$4 sm:$0xff]   ;;  %v7002_v9 = vld [vmem:[#allocation2 + $0x20c] ss:$16 sps:$4 sm:$0xff]  }
0x164f   :  { %5284 = vmatpush1.bf16.msra.mxu1 %v6949_v28  ;;  %5407 = vmatpush1.bf16.msra.mxu0 %v6952_v29 }
0x1650   :  { %v4027_v41 = vpop.f32.mrb[68].mxu1  ;;  %5285 = vmatprep.subr.bf16.mxu1 %v6957_v31  ;;  %5408 = vmatprep.subr.bf16.mxu0 %v6960_v34  ;;  %v8171_v31 = vld [vmem:[%s8346_s17] sm:$0x3f] }
0x1651   :  { %v8126_v42 = vadd.f32 %v4027_v41, %v3837_v36  ;;  %v4029_v53 = vpop.f32.mrb[69].mxu1  ;;  %v6958_v36 = vld [vmem:[#allocation2 + $0x128] ss:$16 sps:$4 sm:$0xff]   ;;  %v8174_v34 = vld [vmem:[%s8347_s21] sm:$0x3f] }
0x1652   :  { %v8128_v32 = vadd.f32 %v4029_v53, %v3841_v39  ;;  %v4031_v44 = vpop.f32.mrb[70].mxu1 }
0x1653   :  { %v4044_v45 = vsel %vm4036_vm9, %v8126_v42, 0.0  ;;  %v4032_v46 = vpop.f32.mrb[71].mxu1  ;;  %5286 = vmatpush1.bf16.msra.mxu1 %v6955_v35  ;;  %5409 = vmatpush1.bf16.msra.mxu0 %v6958_v36  ;;  %v4095_v35 = vrot.slane %v8171_v31, %v7709_v4  ;;  %v4091_v36 = vrot.slane %v8171_v31, %v7698_v54 }
0x1654   :  { %v4045_v47 = vadd.f32 %v4044_v45, %v4043_v43  ;;  %v4047_v48 = vsel %vm4046_vm10, %v8128_v32, 0.0  ;;  %5287 = vmatprep.subr.bf16.mxu1 %v6963_v58  ;;  %5410 = vmatprep.subr.bf16.mxu0 %v6966_v59 }
0x1656   :  { %v4048_v25 = vadd.f32 %v4047_v48, %v4045_v47 }
0x1657   :  { %5288 = vmatpush1.bf16.msra.mxu1 %v6961_v60  ;;  %5411 = vmatpush1.bf16.msra.mxu0 %v6964_v61 }
0x1658   :  { %4049 = vadd.xlane.f32.xlu1 %v4048_v25  ;;  %5289 = vmatprep.subr.bf16.mxu1 %v6969_v56  ;;  %v7000_v56 = vld [vmem:[#allocation2 + $0x208] ss:$16 sps:$4 sm:$0xff]  }
0x1659   :  { %5412 = vmatprep.subr.bf16.mxu0 %v6972_v2 }
0x165b   :  { %5290 = vmatpush1.bf16.msra.mxu1 %v6967_v62  ;;  %5413 = vmatpush1.bf16.msra.mxu0 %v6970_v63  ;;  %v6997_v62 = vld [vmem:[#allocation2 + $0x200] ss:$16 sps:$4 sm:$0xff]  }
0x165c   :  { %5291 = vmatprep.subr.bf16.mxu1 %v6975_v3  ;;  %5414 = vmatprep.subr.bf16.mxu0 %v6978_v20  ;;  %v7005_v3 = vld [vmem:[#allocation2 + $0x224] ss:$16 sps:$4 sm:$0xff]   ;;  %v7008_v20 = vld [vmem:[#allocation2 + $0x22c] ss:$16 sps:$4 sm:$0xff]  }
0x165f   :  { %5292 = vmatpush1.bf16.msra.mxu1 %v6973_v5  ;;  %5415 = vmatpush1.bf16.msra.mxu0 %v6976_v6  ;;  %v7003_v6 = vld [vmem:[#allocation2 + $0x220] ss:$16 sps:$4 sm:$0xff]  }
0x1660   :  { %5293 = vmatprep.subr.bf16.mxu1 %v6981_v7  ;;  %5416 = vmatprep.subr.bf16.mxu0 %v6984_v8  ;;  %v7006_v7 = vld [vmem:[#allocation2 + $0x228] ss:$16 sps:$4 sm:$0xff]   ;;  %v7011_v8 = vld [vmem:[#allocation2 + $0x244] ss:$16 sps:$4 sm:$0xff]  }
0x1663   :  { %5294 = vmatpush1.bf16.msra.mxu1 %v6979_v1  ;;  %5417 = vmatpush1.bf16.msra.mxu0 %v6982_v11  ;;  %v7014_v1 = vld [vmem:[#allocation2 + $0x24c] ss:$16 sps:$4 sm:$0xff]   ;;  %v7009_v11 = vld [vmem:[#allocation2 + $0x240] ss:$16 sps:$4 sm:$0xff]  }
0x1664   :  { %5295 = vmatprep.subr.bf16.mxu1 %v6987_v12  ;;  %5418 = vmatprep.subr.bf16.mxu0 %v6990_v13  ;;  %v7012_v12 = vld [vmem:[#allocation2 + $0x248] ss:$16 sps:$4 sm:$0xff]   ;;  %v7017_v13 = vld [vmem:[#allocation2 + $0x264] ss:$16 sps:$4 sm:$0xff]  }
0x1667   :  { %5296 = vmatpush1.bf16.msra.mxu1 %v6985_v14  ;;  %5419 = vmatpush1.bf16.msra.mxu0 %v6988_v16  ;;  %v7020_v14 = vld [vmem:[#allocation2 + $0x26c] ss:$16 sps:$4 sm:$0xff]   ;;  %v7015_v16 = vld [vmem:[#allocation2 + $0x260] ss:$16 sps:$4 sm:$0xff]  }
0x1668   :  { %5297 = vmatprep.subr.bf16.mxu1 %v6993_v18  ;;  %5420 = vmatprep.subr.bf16.mxu0 %v6996_v19  ;;  %v7018_v18 = vld [vmem:[#allocation2 + $0x268] ss:$16 sps:$4 sm:$0xff]   ;;  %v7023_v19 = vld [vmem:[#allocation2 + $0x284] ss:$16 sps:$4 sm:$0xff]  }
0x166b   :  { %5298 = vmatpush1.bf16.msra.mxu1 %v6991_v23  ;;  %5421 = vmatpush1.bf16.msra.mxu0 %v6994_v15  ;;  %v7026_v23 = vld [vmem:[#allocation2 + $0x28c] ss:$16 sps:$4 sm:$0xff]   ;;  %v7021_v15 = vld [vmem:[#allocation2 + $0x280] ss:$16 sps:$4 sm:$0xff]  }
0x166c   :  { %5308 = vmatprep.subr.bf16.mxu1 %v6999_v24  ;;  %5431 = vmatprep.subr.bf16.mxu0 %v7002_v9  ;;  %v7024_v24 = vld [vmem:[#allocation2 + $0x288] ss:$16 sps:$4 sm:$0xff]   ;;  %v7029_v9 = vld [vmem:[#allocation2 + $0x2a4] ss:$16 sps:$4 sm:$0xff]  }
0x16e5   :  { %v4050_v38 = vpop.xlane.xlu1 %4049 }
0x16e6   :  { %v4052_v39 = vmul.f32 0.0014204546, %v4050_v38  ;;  %v4103_v38 = vrot.slane %v8171_v31, %v8098_v21 }
0x16e8   :  { %v8135_v40 = vsub.f32 %v8100_v0, %v4052_v39  ;;  %v8138_v41 = vsub.f32 %v8102_v22, %v4052_v39  ;;  %v8141_v53 = vsub.f32 %v8110_v10, %v4052_v39  ;;  %v8144_v43 = vsub.f32 %v8120_v33, %v4052_v39 }
0x16e9   :  { %v8147_v44 = vsub.f32 %v8126_v42, %v4052_v39  ;;  %v8156_v22 = vsub.f32 %v8128_v32, %v4052_v39 }
0x16ea   :  { %v4059_v45 = vmul.f32 %v8135_v40, %v8135_v40  ;;  %v4060_v46 = vmul.f32 %v8138_v41, %v8138_v41  ;;  %v4061_v0 = vmul.f32 %v8141_v53, %v8141_v53  ;;  %v4062_v10 = vmul.f32 %v8144_v43, %v8144_v43 }
0x16eb   :  { %v4063_v48 = vmul.f32 %v8147_v44, %v8147_v44  ;;  %v4064_v27 = vmul.f32 %v8156_v22, %v8156_v22 }
0x16ec   :  { %v4065_v33 = vsel %vm4036_vm9, %v4059_v45, 0.0  ;;  %v4066_v42 = vsel %vm4036_vm9, %v4060_v46, 0.0  ;;  %v4068_v25 = vsel %vm4036_vm9, %v4061_v0, 0.0  ;;  %v4070_v32 = vsel %vm4036_vm9, %v4062_v10, 0.0 }
0x16ed   :  { %v4067_v47 = vadd.f32 %v4066_v42, %v4065_v33  ;;  %v4072_v51 = vsel %vm4036_vm9, %v4063_v48, 0.0  ;;  %v4074_v55 = vsel %vm4046_vm10, %v4064_v27, 0.0  ;;  %v4107_v45 = vrot.slane %v8171_v31, %v8113_v37 }
0x16ee   :  { %v4111_v46 = vrot.slane %v8171_v31, %v8116_v30  ;;  %v4132_v0 = vrot.slane %v8174_v34, %v7709_v4  ;;  %v4128_v10 = vrot.slane %v8174_v34, %v7698_v54  ;;  %v4140_v48 = vrot.slane %v8174_v34, %v8098_v21 }
0x16ef   :  { %v4069_v49 = vadd.f32 %v4068_v25, %v4067_v47  ;;  %v4144_v25 = vrot.slane %v8174_v34, %v8113_v37 }
0x16f1   :  { %v4071_v50 = vadd.f32 %v4070_v32, %v4069_v49  ;;  %v4148_v49 = vrot.slane %v8174_v34, %v8116_v30 }
0x16f3   :  { %v4073_v52 = vadd.f32 %v4072_v51, %v4071_v50 }
0x16f5   :  { %v4075_v57 = vadd.f32 %v4074_v55, %v4073_v52 }
0x16f7   :  { %4076 = vadd.xlane.f32.xlu0 %v4075_v57 }
0x1784   :  { %v4077_v26 = vpop.xlane.xlu0 %4076 }
0x1785   :  { %v4078_v28 = vmul.f32 0.0014204546, %v4077_v26  ;;  %v7032_v26 = vld [vmem:[#allocation2 + $0x2ac] ss:$16 sps:$4 sm:$0xff]  }
0x1787   :  { %v4079_v29 = vadd.f32 1e-05, %v4078_v28  ;;  %v7027_v28 = vld [vmem:[#allocation2 + $0x2a0] ss:$16 sps:$4 sm:$0xff]  }
0x1789   :  { %7277 = vrsqrt.f32 %v4079_v29  ;;  %v7030_v29 = vld [vmem:[#allocation2 + $0x2a8] ss:$16 sps:$4 sm:$0xff]  }
0x1793   :  { %v8182_v39 = vpop.eup %7277 }
0x1794   :  { %v4082_v33 = vmul.f32 %v8182_v39, %v8138_v41  ;;  %v4081_v42 = vmul.f32 %v8182_v39, %v8135_v40  ;;  %v4084_v47 = vmul.f32 %v8182_v39, %v8144_v43  ;;  %v4086_v27 = vmul.f32 %v8182_v39, %v8156_v22 }
0x1795   :  { %v4085_v41 = vmul.f32 %v8182_v39, %v8147_v44 }
0x1796   :  { %v4119_v32 = vmul.f32 %v4095_v35, %v4082_v33  ;;  %v4118_v40 = vmul.f32 %v4091_v36, %v4081_v42  ;;  %v4121_v50 = vmul.f32 %v4103_v38, %v4084_v47  ;;  %v4123_v51 = vmul.f32 %v4111_v46, %v4086_v27  ;;  %v7035_v35 = vld [vmem:[#allocation2 + $0x2c4] ss:$16 sps:$4 sm:$0xff]   ;;  %v7038_v36 = vld [vmem:[#allocation2 + $0x2cc] ss:$16 sps:$4 sm:$0xff]   ;;  %v7033_v38 = vld [vmem:[#allocation2 + $0x2c0] ss:$16 sps:$4 sm:$0xff]  }
0x1797   :  { %v4122_v43 = vmul.f32 %v4107_v45, %v4085_v41  ;;  %v7036_v45 = vld [vmem:[#allocation2 + $0x2c8] ss:$16 sps:$4 sm:$0xff]   ;;  %v7041_v46 = vld [vmem:[#allocation2 + $0x2e4] ss:$16 sps:$4 sm:$0xff]   ;;  %v7050_v47 = vld [vmem:[#allocation2 + $0x30c] ss:$16 sps:$4 sm:$0xff]  }
0x1798   :  { %v4156_v52 = vadd.f32 %v4132_v0, %v4119_v32  ;;  %v4155_v55 = vadd.f32 %v4128_v10, %v4118_v40  ;;  %v4158_v57 = vadd.f32 %v4140_v48, %v4121_v50  ;;  %v8208_v58 = vadd.f32 %v4148_v49, %v4123_v51  ;;  %v7044_v0 = vld [vmem:[#allocation2 + $0x2ec] ss:$16 sps:$4 sm:$0xff]   ;;  %v7039_v10 = vld [vmem:[#allocation2 + $0x2e0] ss:$16 sps:$4 sm:$0xff]   ;;  %v7042_v33 = vld [vmem:[#allocation2 + $0x2e8] ss:$16 sps:$4 sm:$0xff]  }
0x1799   :  { %v8210_v37 = vadd.f32 %v4144_v25, %v4122_v43  ;;  %v7047_v42 = vld [vmem:[#allocation2 + $0x304] ss:$16 sps:$4 sm:$0xff]   ;;  %v7045_v48 = vld [vmem:[#allocation2 + $0x300] ss:$16 sps:$4 sm:$0xff]   ;;  %v7048_v25 = vld [vmem:[#allocation2 + $0x308] ss:$16 sps:$4 sm:$0xff]  }
0x179a   :  { %vm4162_vm11 = vcmp.ge.f32.partialorder %v4156_v52, 0.0  ;;  %v4168_v30 = vmul.f32 0.01, %v4156_v52  ;;  %vm4161_vm12 = vcmp.ge.f32.partialorder %v4155_v55, 0.0  ;;  %v4167_v59 = vmul.f32 0.01, %v4155_v55 }
0x179b   :  { %vm4164_vm13 = vcmp.ge.f32.partialorder %v4158_v57, 0.0  ;;  %v4170_v22 = vmul.f32 0.01, %v4158_v57  ;;  %v7053_v49 = vld [vmem:[#allocation2 + $0x324] ss:$16 sps:$4 sm:$0xff]   ;;  %vm4166_vm15 = vcmp.ge.f32.partialorder %v8208_v58, 0.0 }
0x179c   :  { %v4174_v60 = vsel %vm4162_vm11, %v4156_v52, %v4168_v30  ;;  %v4173_v44 = vsel %vm4161_vm12, %v4155_v55, %v4167_v59  ;;  %v7056_v27 = vld [vmem:[#allocation2 + $0x32c] ss:$16 sps:$4 sm:$0xff]   ;;  %v7051_v41 = vld [vmem:[#allocation2 + $0x320] ss:$16 sps:$4 sm:$0xff]   ;;  %v7054_v32 = vld [vmem:[#allocation2 + $0x328] ss:$16 sps:$4 sm:$0xff]  }
0x179d   :  { %v4180_v61 = vpack.c.bf16 %v4174_v60, %v4174_v60  ;;  %v4179_v63 = vpack.c.bf16 %v4173_v44, %v4173_v44  ;;  %v4176_v2 = vsel %vm4164_vm13, %v4158_v57, %v4170_v22  ;;  %v7059_v40 = vld [vmem:[#allocation2 + $0x344] ss:$16 sps:$4 sm:$0xff]   ;;  %v7062_v50 = vld [vmem:[#allocation2 + $0x34c] ss:$16 sps:$4 sm:$0xff]   ;;  %v7057_v51 = vld [vmem:[#allocation2 + $0x340] ss:$16 sps:$4 sm:$0xff]   ;;  %v4083_v60 = vmul.f32 %v8182_v39, %v8141_v53 }
0x179e   :  { %v4182_v5 = vpack.c.bf16 %v4176_v2, %v4176_v2  ;;  %v7060_v43 = vld [vmem:[#allocation2 + $0x348] ss:$16 sps:$4 sm:$0xff]   ;;  %v7065_v52 = vld [vmem:[#allocation2 + $0x364] ss:$16 sps:$4 sm:$0xff]   ;;  %v7068_v55 = vld [vmem:[#allocation2 + $0x36c] ss:$16 sps:$4 sm:$0xff]   ;;  %v4099_v44 = vrot.slane %v8171_v31, %v8095_v17 }
0x179f   :  { %5299 = vmatprep.mubr.bf16.mxu1 %v4180_v61  ;;  %5422 = vmatprep.mubr.bf16.mxu0 %v4180_v61  ;;  %v7063_v57 = vld [vmem:[#allocation2 + $0x360] ss:$16 sps:$4 sm:$0xff]   ;;  %v7066_v30 = vld [vmem:[#allocation2 + $0x368] ss:$16 sps:$4 sm:$0xff]   ;;  %v7071_v59 = vld [vmem:[#allocation2 + $0x384] ss:$16 sps:$4 sm:$0xff]  }
0x17a0   :  { %5300 = vmatmul.mubr.bf16.vlgmr.msra.gmra.mrb[72].mxu1 %v4179_v63  ;;  %5423 = vmatmul.mubr.bf16.vlgmr.msra.gmra.mrb[44].mxu0 %v4179_v63  ;;  %v7074_v22 = vld [vmem:[#allocation2 + $0x38c] ss:$16 sps:$4 sm:$0xff]   ;;  %v7069_v61 = vld [vmem:[#allocation2 + $0x380] ss:$16 sps:$4 sm:$0xff]   ;;  %v4120_v2 = vmul.f32 %v4099_v44, %v4083_v60  ;;  %v7083_v53 = vld [vmem:[#allocation2 + $0x3c4] ss:$16 sps:$4 sm:$0xff]  }
0x17a1   :  { %5309 = vmatpush1.bf16.msra.mxu1 %v6997_v62  ;;  %5432 = vmatpush1.bf16.msra.mxu0 %v7000_v56  ;;  %v7072_v62 = vld [vmem:[#allocation2 + $0x388] ss:$16 sps:$4 sm:$0xff]   ;;  %v7077_v56 = vld [vmem:[#allocation2 + $0x3a4] ss:$16 sps:$4 sm:$0xff]   ;;  %v7080_v63 = vld [vmem:[#allocation2 + $0x3ac] ss:$16 sps:$4 sm:$0xff]  }
0x17a2   :  { %5340 = vmatprep.mubr.bf16.mxu1 %v4182_v5  ;;  %5463 = vmatprep.mubr.bf16.mxu0 %v4182_v5  ;;  %v7078_v5 = vld [vmem:[#allocation2 + $0x3a8] ss:$16 sps:$4 sm:$0xff]   ;;  %v7086_v31 = vld [vmem:[#allocation2 + $0x3cc] ss:$16 sps:$4 sm:$0xff]   ;;  %v7141_v60 = vld [vmem:[#allocation2 + $0x500] ss:$16 sps:$4 sm:$0xff]  }
0x17a3   :  { %5310 = vmatprep.subr.bf16.mxu1 %v7005_v3  ;;  %5433 = vmatprep.subr.bf16.mxu0 %v7008_v20  ;;  %v4136_v3 = vrot.slane %v8174_v34, %v8095_v17  ;;  %v7075_v20 = vld [vmem:[#allocation2 + $0x3a0] ss:$16 sps:$4 sm:$0xff]   ;;  %v4172_v34 = vmul.f32 0.01, %v8208_v58  ;;  %v7144_v44 = vld [vmem:[#allocation2 + $0x508] ss:$16 sps:$4 sm:$0xff]  }
0x17a4   :  { %vm4165_vm1 = vcmp.ge.f32.partialorder %v8210_v37, 0.0 }
0x17a5   :  { %5311 = vmatpush1.bf16.msra.mxu1 %v7003_v6  ;;  %5434 = vmatpush1.bf16.msra.mxu0 %v7006_v7  ;;  %v4157_v39 = vadd.f32 %v4136_v3, %v4120_v2  ;;  %v7081_v6 = vld [vmem:[#allocation2 + $0x3c0] ss:$16 sps:$4 sm:$0xff]   ;;  %v7084_v7 = vld [vmem:[#allocation2 + $0x3c8] ss:$16 sps:$4 sm:$0xff]   ;;  %v7155_v2 = vld [vmem:[#allocation2 + $0x544] ss:$16 sps:$4 sm:$0xff]  }
0x17a6   :  { %5312 = vmatprep.subr.bf16.mxu1 %v7011_v8  ;;  %5435 = vmatprep.subr.bf16.mxu0 %v7014_v1  ;;  %v7089_v8 = vld [vmem:[#allocation2 + $0x3e4] ss:$16 sps:$4 sm:$0xff]   ;;  %v7092_v1 = vld [vmem:[#allocation2 + $0x3ec] ss:$16 sps:$4 sm:$0xff]  }
0x17a7   :  { %vm4163_vm14 = vcmp.ge.f32.partialorder %v4157_v39, 0.0  ;;  %v7158_v3 = vld [vmem:[#allocation2 + $0x54c] ss:$16 sps:$4 sm:$0xff]  }
0x17a9   :  { %5313 = vmatpush1.bf16.msra.mxu1 %v7009_v11  ;;  %5436 = vmatpush1.bf16.msra.mxu0 %v7012_v12  ;;  %v4169_v11 = vmul.f32 0.01, %v4157_v39  ;;  %v7087_v12 = vld [vmem:[#allocation2 + $0x3e0] ss:$16 sps:$4 sm:$0xff]  }
0x17aa   :  { %5314 = vmatprep.subr.bf16.mxu1 %v7017_v13  ;;  %5437 = vmatprep.subr.bf16.mxu0 %v7020_v14  ;;  %v7090_v13 = vld [vmem:[#allocation2 + $0x3e8] ss:$16 sps:$4 sm:$0xff]   ;;  %v7095_v14 = vld [vmem:[#allocation2 + $0x404] ss:$16 sps:$4 sm:$0xff]  }
0x17ad   :  { %5315 = vmatpush1.bf16.msra.mxu1 %v7015_v16  ;;  %5438 = vmatpush1.bf16.msra.mxu0 %v7018_v18  ;;  %v7098_v16 = vld [vmem:[#allocation2 + $0x40c] ss:$16 sps:$4 sm:$0xff]   ;;  %v4175_v18 = vsel %vm4163_vm14, %v4157_v39, %v4169_v11  ;;  %v4171_v39 = vmul.f32 0.01, %v8210_v37  ;;  %v4361_v11 = vld [vmem:[%s8348_s6] sm:$0xf] }
0x17ae   :  { %5316 = vmatprep.subr.bf16.mxu1 %v7023_v19  ;;  %5439 = vmatprep.subr.bf16.mxu0 %v7026_v23  ;;  %v4178_v19 = vsel %vm4166_vm15, %v8208_v58, %v4172_v34  ;;  %v7093_v23 = vld [vmem:[#allocation2 + $0x400] ss:$16 sps:$4 sm:$0xff]   ;;  %v7107_v58 = vld [vmem:[#allocation2 + $0x444] ss:$16 sps:$4 sm:$0xff]   ;;  %v4366_v34 = vrot.slane %v4361_v11, %v7698_v54 }
0x17b1   :  { %5317 = vmatpush1.bf16.msra.mxu1 %v7021_v15  ;;  %5440 = vmatpush1.bf16.msra.mxu0 %v7024_v24  ;;  %v4181_v15 = vpack.c.bf16 %v4175_v18, %v4175_v18  ;;  %v7096_v24 = vld [vmem:[#allocation2 + $0x408] ss:$16 sps:$4 sm:$0xff]  }
0x17b2   :  { %5318 = vmatprep.subr.bf16.mxu1 %v7029_v9  ;;  %5441 = vmatprep.subr.bf16.mxu0 %v7032_v26  ;;  %v4184_v9 = vpack.c.bf16 %v4178_v19, %v4178_v19  ;;  %v7101_v26 = vld [vmem:[#allocation2 + $0x424] ss:$16 sps:$4 sm:$0xff]  }
0x17b5   :  { %5319 = vmatpush1.bf16.msra.mxu1 %v7027_v28  ;;  %5442 = vmatpush1.bf16.msra.mxu0 %v7030_v29  ;;  %v7104_v28 = vld [vmem:[#allocation2 + $0x42c] ss:$16 sps:$4 sm:$0xff]   ;;  %v7099_v29 = vld [vmem:[#allocation2 + $0x420] ss:$16 sps:$4 sm:$0xff]  }
0x17b6   :  { %5320 = vmatprep.subr.bf16.mxu1 %v7035_v35  ;;  %5443 = vmatprep.subr.bf16.mxu0 %v7038_v36  ;;  %v7102_v35 = vld [vmem:[#allocation2 + $0x428] ss:$16 sps:$4 sm:$0xff]   ;;  %v7110_v36 = vld [vmem:[#allocation2 + $0x44c] ss:$16 sps:$4 sm:$0xff]  }
0x17b9   :  { %5321 = vmatpush1.bf16.msra.mxu1 %v7033_v38  ;;  %5444 = vmatpush1.bf16.msra.mxu0 %v7036_v45  ;;  %v7105_v38 = vld [vmem:[#allocation2 + $0x440] ss:$16 sps:$4 sm:$0xff]   ;;  %v7108_v45 = vld [vmem:[#allocation2 + $0x448] ss:$16 sps:$4 sm:$0xff]  }
0x17ba   :  { %5322 = vmatprep.subr.bf16.mxu1 %v7041_v46  ;;  %5445 = vmatprep.subr.bf16.mxu0 %v7044_v0  ;;  %v7113_v46 = vld [vmem:[#allocation2 + $0x464] ss:$16 sps:$4 sm:$0xff]   ;;  %v7116_v0 = vld [vmem:[#allocation2 + $0x46c] ss:$16 sps:$4 sm:$0xff]  }
0x17bd   :  { %5323 = vmatpush1.bf16.msra.mxu1 %v7039_v10  ;;  %5446 = vmatpush1.bf16.msra.mxu0 %v7042_v33  ;;  %v7111_v10 = vld [vmem:[#allocation2 + $0x460] ss:$16 sps:$4 sm:$0xff]   ;;  %v7114_v33 = vld [vmem:[#allocation2 + $0x468] ss:$16 sps:$4 sm:$0xff]  }
0x17be   :  { %5324 = vmatprep.subr.bf16.mxu1 %v7047_v42  ;;  %5447 = vmatprep.subr.bf16.mxu0 %v7050_v47  ;;  %v7119_v42 = vld [vmem:[#allocation2 + $0x484] ss:$16 sps:$4 sm:$0xff]   ;;  %v7122_v47 = vld [vmem:[#allocation2 + $0x48c] ss:$16 sps:$4 sm:$0xff]  }
0x17c1   :  { %5325 = vmatpush1.bf16.msra.mxu1 %v7045_v48  ;;  %5448 = vmatpush1.bf16.msra.mxu0 %v7048_v25  ;;  %v7117_v48 = vld [vmem:[#allocation2 + $0x480] ss:$16 sps:$4 sm:$0xff]   ;;  %v7120_v25 = vld [vmem:[#allocation2 + $0x488] ss:$16 sps:$4 sm:$0xff]  }
0x17c2   :  { %5326 = vmatprep.subr.bf16.mxu1 %v7053_v49  ;;  %5449 = vmatprep.subr.bf16.mxu0 %v7056_v27  ;;  %v7125_v49 = vld [vmem:[#allocation2 + $0x4a4] ss:$16 sps:$4 sm:$0xff]   ;;  %v7128_v27 = vld [vmem:[#allocation2 + $0x4ac] ss:$16 sps:$4 sm:$0xff]  }
0x17c5   :  { %5327 = vmatpush1.bf16.msra.mxu1 %v7051_v41  ;;  %5450 = vmatpush1.bf16.msra.mxu0 %v7054_v32  ;;  %v7123_v41 = vld [vmem:[#allocation2 + $0x4a0] ss:$16 sps:$4 sm:$0xff]   ;;  %v7126_v32 = vld [vmem:[#allocation2 + $0x4a8] ss:$16 sps:$4 sm:$0xff]  }
0x17c6   :  { %5328 = vmatprep.subr.bf16.mxu1 %v7059_v40  ;;  %5451 = vmatprep.subr.bf16.mxu0 %v7062_v50  ;;  %v7131_v40 = vld [vmem:[#allocation2 + $0x4c4] ss:$16 sps:$4 sm:$0xff]   ;;  %v7134_v50 = vld [vmem:[#allocation2 + $0x4cc] ss:$16 sps:$4 sm:$0xff]  }
0x17c9   :  { %5329 = vmatpush1.bf16.msra.mxu1 %v7057_v51  ;;  %5452 = vmatpush1.bf16.msra.mxu0 %v7060_v43  ;;  %v7129_v51 = vld [vmem:[#allocation2 + $0x4c0] ss:$16 sps:$4 sm:$0xff]   ;;  %v7132_v43 = vld [vmem:[#allocation2 + $0x4c8] ss:$16 sps:$4 sm:$0xff]  }
0x17ca   :  { %5330 = vmatprep.subr.bf16.mxu1 %v7065_v52  ;;  %5453 = vmatprep.subr.bf16.mxu0 %v7068_v55  ;;  %v7137_v52 = vld [vmem:[#allocation2 + $0x4e4] ss:$16 sps:$4 sm:$0xff]   ;;  %v7140_v55 = vld [vmem:[#allocation2 + $0x4ec] ss:$16 sps:$4 sm:$0xff]  }
0x17cd   :  { %5331 = vmatpush1.bf16.msra.mxu1 %v7063_v57  ;;  %5454 = vmatpush1.bf16.msra.mxu0 %v7066_v30  ;;  %v7135_v57 = vld [vmem:[#allocation2 + $0x4e0] ss:$16 sps:$4 sm:$0xff]   ;;  %v7138_v30 = vld [vmem:[#allocation2 + $0x4e8] ss:$16 sps:$4 sm:$0xff]  }
0x17ce   :  { %5332 = vmatprep.subr.bf16.mxu1 %v7071_v59  ;;  %5455 = vmatprep.subr.bf16.mxu0 %v7074_v22  ;;  %v7143_v59 = vld [vmem:[#allocation2 + $0x504] ss:$16 sps:$4 sm:$0xff]   ;;  %v7146_v22 = vld [vmem:[#allocation2 + $0x50c] ss:$16 sps:$4 sm:$0xff]  }
0x17d1   :  { %5333 = vmatpush1.bf16.msra.mxu1 %v7069_v61  ;;  %5456 = vmatpush1.bf16.msra.mxu0 %v7072_v62  ;;  %v7149_v61 = vld [vmem:[#allocation2 + $0x524] ss:$16 sps:$4 sm:$0xff]   ;;  %v7152_v62 = vld [vmem:[#allocation2 + $0x52c] ss:$16 sps:$4 sm:$0xff]  }
0x17d2   :  { %5334 = vmatprep.subr.bf16.mxu1 %v7077_v56  ;;  %5457 = vmatprep.subr.bf16.mxu0 %v7080_v63  ;;  %v7147_v56 = vld [vmem:[#allocation2 + $0x520] ss:$16 sps:$4 sm:$0xff]   ;;  %v7150_v63 = vld [vmem:[#allocation2 + $0x528] ss:$16 sps:$4 sm:$0xff]  }
0x17d5   :  { %5335 = vmatpush1.bf16.msra.mxu1 %v7075_v20  ;;  %5458 = vmatpush1.bf16.msra.mxu0 %v7078_v5  ;;  %v7153_v20 = vld [vmem:[#allocation2 + $0x540] ss:$16 sps:$4 sm:$0xff]   ;;  %v7156_v5 = vld [vmem:[#allocation2 + $0x548] ss:$16 sps:$4 sm:$0xff]  }
0x17d6   :  { %5336 = vmatprep.subr.bf16.mxu1 %v7083_v53  ;;  %5459 = vmatprep.subr.bf16.mxu0 %v7086_v31  ;;  %v7161_v53 = vld [vmem:[#allocation2 + $0x564] ss:$16 sps:$4 sm:$0xff]   ;;  %v7164_v31 = vld [vmem:[#allocation2 + $0x56c] ss:$16 sps:$4 sm:$0xff]  }
0x17d9   :  { %5337 = vmatpush1.bf16.msra.mxu1 %v7081_v6  ;;  %5460 = vmatpush1.bf16.msra.mxu0 %v7084_v7  ;;  %v7159_v6 = vld [vmem:[#allocation2 + $0x560] ss:$16 sps:$4 sm:$0xff]   ;;  %v7162_v7 = vld [vmem:[#allocation2 + $0x568] ss:$16 sps:$4 sm:$0xff]  }
0x17da   :  { %5338 = vmatprep.subr.bf16.mxu1 %v7089_v8  ;;  %5461 = vmatprep.subr.bf16.mxu0 %v7092_v1  ;;  %v4177_v8 = vsel %vm4165_vm1, %v8210_v37, %v4171_v39  ;;  %v7179_v39 = vld [vmem:[%s7569_s20 + $0x18] sm:$0xff]  }
0x17db   :  { %v4183_v1 = vpack.c.bf16 %v4177_v8, %v4177_v8  ;;  %v7182_v8 = vld [vmem:[%s7569_s20 + $0xe0] sm:$0xff]  }
0x17dd   :  { %5339 = vmatpush1.bf16.msra.mxu1 %v7087_v12  ;;  %5462 = vmatpush1.bf16.msra.mxu0 %v7090_v13  ;;  %v4374_v12 = vrot.slane %v4361_v11, %v8095_v17  ;;  %v4370_v13 = vrot.slane %v4361_v11, %v7709_v4 }
0x17de   :  { %5349 = vmatprep.subr.bf16.mxu1 %v7095_v14  ;;  %5472 = vmatprep.subr.bf16.mxu0 %v7098_v16  ;;  %v4378_v16 = vrot.slane %v4361_v11, %v8098_v21  ;;  %v7184_v11 = vld [vmem:[%s7569_s20 + $0xa0] sm:$0xff]  }
0x17e0   :  { %5341 = vmatmul.mubr.bf16.vlgmr.msra.gmra.mrb[72].mxu1 %v4181_v15  ;;  %5464 = vmatmul.mubr.bf16.vlgmr.msra.gmra.mrb[44].mxu0 %v4181_v15 }
0x17e1   :  { %5350 = vmatpush1.bf16.msra.mxu1 %v7093_v23  ;;  %6303 = vmatprep.mubr.msk.bf16.mxu1 %vm5263_vm0, %v4184_v9 }
0x17e2   :  { %5473 = vmatpush1.bf16.msra.mxu0 %v7096_v24  ;;  %6304 = vmatprep.mubr.msk.bf16.mxu0 %vm5263_vm0, %v4184_v9 }
0x17e3   :  { %5351 = vmatprep.subr.bf16.mxu1 %v7101_v26  ;;  %5474 = vmatprep.subr.bf16.mxu0 %v7104_v28 }
0x17e5   :  { %5352 = vmatpush1.bf16.msra.mxu1 %v7099_v29 }
0x17e6   :  { %5475 = vmatpush1.bf16.msra.mxu0 %v7102_v35  ;;  %5353 = vmatprep.subr.bf16.mxu1 %v7107_v58 }
0x17e7   :  { %5476 = vmatprep.subr.bf16.mxu0 %v7110_v36 }
0x17e9   :  { %5354 = vmatpush1.bf16.msra.mxu1 %v7105_v38 }
0x17ea   :  { %5477 = vmatpush1.bf16.msra.mxu0 %v7108_v45  ;;  %5355 = vmatprep.subr.bf16.mxu1 %v7113_v46 }
0x17eb   :  { %5478 = vmatprep.subr.bf16.mxu0 %v7116_v0 }
0x17ed   :  { %5356 = vmatpush1.bf16.msra.mxu1 %v7111_v10 }
0x17ee   :  { %5479 = vmatpush1.bf16.msra.mxu0 %v7114_v33  ;;  %5357 = vmatprep.subr.bf16.mxu1 %v7119_v42  ;;  %v7165_v33 = vld [vmem:[%s7569_s20 + $0x40] sm:$0xff]  }
0x17ef   :  { %5480 = vmatprep.subr.bf16.mxu0 %v7122_v47  ;;  %v7166_v42 = vld [vmem:[%s7569_s20 + $0xc0] sm:$0xff]  }
0x17f0   :  { %v7167_v47 = vld [vmem:[%s7569_s20] sm:$0xff]  }
0x17f1   :  { %5358 = vmatpush1.bf16.msra.mxu1 %v7117_v48  ;;  %v7168_v48 = vld [vmem:[%s7569_s20 + $0x80] sm:$0xff]  }
0x17f2   :  { %5481 = vmatpush1.bf16.msra.mxu0 %v7120_v25  ;;  %5359 = vmatprep.subr.bf16.mxu1 %v7125_v49  ;;  %v7169_v25 = vld [vmem:[%s7569_s20 + $0x48] sm:$0xff]  }
0x17f3   :  { %5482 = vmatprep.subr.bf16.mxu0 %v7128_v27  ;;  %v7170_v49 = vld [vmem:[%s7569_s20 + $0xc8] sm:$0xff]  }
0x17f5   :  { %5360 = vmatpush1.bf16.msra.mxu1 %v7123_v41 }
0x17f6   :  { %5483 = vmatpush1.bf16.msra.mxu0 %v7126_v32  ;;  %5361 = vmatprep.subr.bf16.mxu1 %v7131_v40 }
0x17f7   :  { %5484 = vmatprep.subr.bf16.mxu0 %v7134_v50 }
0x17f9   :  { %5362 = vmatpush1.bf16.msra.mxu1 %v7129_v51 }
0x17fa   :  { %5485 = vmatpush1.bf16.msra.mxu0 %v7132_v43  ;;  %5363 = vmatprep.subr.bf16.mxu1 %v7137_v52 }
0x17fb   :  { %5486 = vmatprep.subr.bf16.mxu0 %v7140_v55 }
0x17fd   :  { %5364 = vmatpush1.bf16.msra.mxu1 %v7135_v57 }
0x17fe   :  { %5487 = vmatpush1.bf16.msra.mxu0 %v7138_v30  ;;  %5365 = vmatprep.subr.bf16.mxu1 %v7143_v59 }
0x17ff   :  { %5488 = vmatprep.subr.bf16.mxu0 %v7146_v22 }
0x1801   :  { %5366 = vmatpush1.bf16.msra.mxu1 %v7141_v60 }
0x1802   :  { %5489 = vmatpush1.bf16.msra.mxu0 %v7144_v44  ;;  %5367 = vmatprep.subr.bf16.mxu1 %v7149_v61 }
0x1803   :  { %5490 = vmatprep.subr.bf16.mxu0 %v7152_v62 }
0x1805   :  { %5368 = vmatpush1.bf16.msra.mxu1 %v7147_v56  ;;  %v7171_v56 = vld [vmem:[%s7569_s20 + $0x8] sm:$0xff]  }
0x1806   :  { %5491 = vmatpush1.bf16.msra.mxu0 %v7150_v63  ;;  %5369 = vmatprep.subr.bf16.mxu1 %v7155_v2  ;;  %v7172_v63 = vld [vmem:[%s7569_s20 + $0x88] sm:$0xff]   ;;  %v7173_v2 = vld [vmem:[%s7569_s20 + $0x50] sm:$0xff]  }
0x1807   :  { %5492 = vmatprep.subr.bf16.mxu0 %v7158_v3  ;;  %v7174_v3 = vld [vmem:[%s7569_s20 + $0xd0] sm:$0xff]  }
0x1809   :  { %5370 = vmatpush1.bf16.msra.mxu1 %v7153_v20  ;;  %v7175_v20 = vld [vmem:[%s7569_s20 + $0x10] sm:$0xff]  }
0x180a   :  { %5493 = vmatpush1.bf16.msra.mxu0 %v7156_v5  ;;  %5371 = vmatprep.subr.bf16.mxu1 %v7161_v53  ;;  %v7176_v5 = vld [vmem:[%s7569_s20 + $0x90] sm:$0xff]   ;;  %v7177_v53 = vld [vmem:[%s7569_s20 + $0x58] sm:$0xff]  }
0x180b   :  { %5494 = vmatprep.subr.bf16.mxu0 %v7164_v31  ;;  %v7178_v31 = vld [vmem:[%s7569_s20 + $0xd8] sm:$0xff]  }
0x180d   :  { %5372 = vmatpush1.bf16.msra.mxu1 %v7159_v6  ;;  %v7180_v6 = vld [vmem:[%s7569_s20 + $0x98] sm:$0xff]  }
0x180e   :  { %5495 = vmatpush1.bf16.msra.mxu0 %v7162_v7  ;;  %6443 = vmatprep.subr.bf16.mxu1 %v7165_v33  ;;  %v7181_v7 = vld [vmem:[%s7569_s20 + $0x60] sm:$0xff]  }
0x180f   :  { %6465 = vmatprep.subr.bf16.mxu0 %v7166_v42 }
0x1810   :  { %5382 = vmatmul.mubr.bf16.vlgmr.msra.gmra.mrb[72].mxu1 %v4183_v1 }
0x1811   :  { %5505 = vmatmul.mubr.bf16.vlgmr.msra.gmra.mrb[44].mxu0 %v4183_v1  ;;  %6444 = vmatpush3.bf16.msra.mxu1 %v7167_v47  ;;  %v7183_v1 = vld [vmem:[%s7569_s20 + $0x20] sm:$0xff]  }
0x1812   :  { %6466 = vmatpush3.bf16.msra.mxu0 %v7168_v48  ;;  %6445 = vmatprep.subr.bf16.mxu1 %v7169_v25 }
0x1813   :  { %6467 = vmatprep.subr.bf16.mxu0 %v7170_v49 }
0x1815   :  { %6446 = vmatpush3.bf16.msra.mxu1 %v7171_v56 }
0x1816   :  { %6468 = vmatpush3.bf16.msra.mxu0 %v7172_v63  ;;  %6447 = vmatprep.subr.bf16.mxu1 %v7173_v2  ;;  %v6305_v2 = vld [vmem:[%s7574_s27] ss:$0 sm:$0xff] }
0x1817   :  { %6469 = vmatprep.subr.bf16.mxu0 %v7174_v3 }
0x1819   :  { %6448 = vmatpush3.bf16.msra.mxu1 %v7175_v20 }
0x181a   :  { %6470 = vmatpush3.bf16.msra.mxu0 %v7176_v5  ;;  %6449 = vmatprep.subr.bf16.mxu1 %v7177_v53 }
0x181b   :  { %6471 = vmatprep.subr.bf16.mxu0 %v7178_v31 }
0x181d   :  { %6450 = vmatpush3.bf16.msra.mxu1 %v7179_v39 }
0x181e   :  { %6472 = vmatpush3.bf16.msra.mxu0 %v7180_v6  ;;  %6451 = vmatprep.subr.bf16.mxu1 %v7181_v7 }
0x181f   :  { %6473 = vmatprep.subr.bf16.mxu0 %v7182_v8 }
0x1821   :  { %6452 = vmatpush3.bf16.msra.mxu1 %v7183_v1 }
0x1822   :  { %6474 = vmatpush3.bf16.msra.mxu0 %v7184_v11 }
0x18e3   :  { %v5383_v14 = vpop.f32.mrb[72].mxu1 }
0x18e4   :  { %v6747_v18 = vadd.f32 %v5383_v14, %v4366_v34  ;;  %v5506_v19 = vpop.f32.mrb[44].mxu0  ;;  %v5385_v23 = vpop.f32.mrb[73].mxu1  ;;  %v7185_v34 = vld [vmem:[%s7569_s20 + $0x68] sm:$0xff]  }
0x18e5   :  { %v6749_v15 = vadd.f32 %v5506_v19, %v4374_v12  ;;  %v6748_v37 = vadd.f32 %v5385_v23, %v4370_v13  ;;  %v5508_v24 = vpop.f32.mrb[45].mxu0  ;;  %v5387_v9 = vpop.f32.mrb[74].mxu1  ;;  %v7186_v12 = vld [vmem:[%s7569_s20 + $0xe8] sm:$0xff]   ;;  %6453 = vmatprep.subr.bf16.mxu1 %v7185_v34  ;;  %v7191_v19 = vld [vmem:[%s7569_s20 + $0x30] sm:$0xff]  }
0x18e6   :  { %v5515_v26 = vsel %vm4036_vm9, %v6747_v18, 0.0  ;;  %v5510_v28 = vpop.f32.mrb[46].mxu0  ;;  %v5388_v29 = vpop.f32.mrb[75].mxu1  ;;  %v6750_v58 = vadd.f32 %v5508_v24, %v4378_v16  ;;  %v7187_v13 = vld [vmem:[%s7569_s20 + $0x28] sm:$0xff]   ;;  %6475 = vmatprep.subr.bf16.mxu0 %v7186_v12  ;;  %v7189_v16 = vld [vmem:[%s7569_s20 + $0x70] sm:$0xff]   ;;  %v7195_v24 = vld [vmem:[%s7569_s20 + $0x38] sm:$0xff]  }
0x18e7   :  { %v5516_v35 = vsel %vm4036_vm9, %v6748_v37, 0.0  ;;  %v5511_v36 = vpop.f32.mrb[47].mxu0  ;;  %v5518_v45 = vsel %vm4036_vm9, %v6749_v15, 0.0  ;;  %v7188_v14 = vld [vmem:[%s7569_s20 + $0xa8] sm:$0xff]   ;;  %6454 = vmatpush3.bf16.msra.mxu1 %v7187_v13  ;;  %v7192_v23 = vld [vmem:[%s7569_s20 + $0xb0] sm:$0xff]   ;;  %v7196_v9 = vld [vmem:[%s7569_s20 + $0xb8] sm:$0xff]  }
0x18e8   :  { %v5517_v38 = vadd.f32 %v5516_v35, %v5515_v26  ;;  %v5520_v0 = vsel %vm4036_vm9, %v6750_v58, 0.0  ;;  %6476 = vmatpush3.bf16.msra.mxu0 %v7188_v14  ;;  %6455 = vmatprep.subr.bf16.mxu1 %v7189_v16  ;;  %v5513_v35 = vld [vmem:[%s8349_s18] sm:$0xf] }
0x18e9   :  { %v5558_v36 = vrot.slane %v5513_v35, %v7709_v4 }
0x18ea   :  { %v5519_v46 = vadd.f32 %v5518_v45, %v5517_v38  ;;  %v5566_v38 = vrot.slane %v5513_v35, %v8098_v21  ;;  %v5554_v45 = vrot.slane %v5513_v35, %v7698_v54 }
0x18eb   :  { %6456 = vmatpush3.bf16.msra.mxu1 %v7191_v19 }
0x18ec   :  { %v5521_v10 = vadd.f32 %v5520_v0, %v5519_v46  ;;  %v5562_v46 = vrot.slane %v5513_v35, %v8095_v17 }
0x18ee   :  { %5522 = vadd.xlane.f32.xlu1 %v5521_v10 }
0x197b   :  { %v5523_v27 = vpop.xlane.xlu1 %5522 }
0x197c   :  { %v5525_v41 = vmul.f32 0.001953125, %v5523_v27 }
0x197e   :  { %v8239_v32 = vsub.f32 %v6747_v18, %v5525_v41  ;;  %v8241_v40 = vsub.f32 %v6748_v37, %v5525_v41  ;;  %v8243_v50 = vsub.f32 %v6749_v15, %v5525_v41  ;;  %v8245_v51 = vsub.f32 %v6750_v58, %v5525_v41  ;;  %v7190_v18 = vld [vmem:[%s7569_s20 + $0xf0] sm:$0xff]   ;;  %v7193_v15 = vld [vmem:[%s7569_s20 + $0x78] sm:$0xff]   ;;  %v5514_v58 = vld [vmem:[%s7564_s12] sm:$0xf]  ;;  %s7385_s12 = smov [#allocation5]  }
0x197f   :  { %6477 = vmatprep.subr.bf16.mxu0 %v7190_v18  ;;  %v7194_v37 = vld [vmem:[%s7569_s20 + $0xf8] sm:$0xff]   ;;  %6457 = vmatprep.subr.bf16.mxu1 %v7193_v15  ;;  %v5583_v10 = vrot.slane %v5514_v58, %v7709_v4  ;;  %v5591_v33 = vrot.slane %v5514_v58, %v8098_v21  ;;  %v5579_v42 = vrot.slane %v5514_v58, %v7698_v54  ;;  %s5967_s20 = sshll.u32 %s7385_s12, 4  ;;  %s5968_s20 = int_to_ptr.vmem [resolvable:$true] %s5967_s20 }
0x1980   :  { %v5530_v43 = vmul.f32 %v8239_v32, %v8239_v32  ;;  %v5531_v52 = vmul.f32 %v8241_v40, %v8241_v40  ;;  %v5532_v55 = vmul.f32 %v8243_v50, %v8243_v50  ;;  %v5533_v57 = vmul.f32 %v8245_v51, %v8245_v51  ;;  %6478 = vmatpush3.bf16.msra.mxu0 %v7192_v23  ;;  %s7303_s22 = scalar_lea.vmem %s5968_s20, 32  ;;  %p7308_p9 = scmp.lt.s32.totalorder %s5968_s20, %s5968_s20 }
0x1981   :  { %6479 = vmatprep.subr.bf16.mxu0 %v7194_v37  ;;  %6458 = vmatpush3.bf16.msra.mxu1 %v7195_v24  ;;  %v5587_v47 = vrot.slane %v5514_v58, %v8095_v17  ;;  %p7304_p8 = scmp.ne.s32.totalorder %s5968_s20, %s7303_s22  ;;  %p7309_p10 = scmp.lt.s32.totalorder %s7303_s22, %s7303_s22 }
0x1982   :  { %v5534_v30 = vsel %vm4036_vm9, %v5530_v43, 0.0  ;;  %v5535_v59 = vsel %vm4036_vm9, %v5531_v52, 0.0  ;;  %v5537_v60 = vsel %vm4036_vm9, %v5532_v55, 0.0  ;;  %v5539_v61 = vsel %vm4036_vm9, %v5533_v57, 0.0 }
0x1983   :  { %v5536_v22 = vadd.f32 %v5535_v59, %v5534_v30  ;;  %p7310_p11 = por %p7309_p10, %p7308_p9 }
0x1984   :  { %6480 = vmatpush3.bf16.msra.mxu0 %v7196_v9 }
0x1985   :  { %v5538_v44 = vadd.f32 %v5537_v60, %v5536_v22  ;;  %p7311_p12 = pnand %p7310_p11, %p7304_p8 }
0x1987   :  { %v5540_v62 = vadd.f32 %v5539_v61, %v5538_v44 }
0x1989   :  { %5541 = vadd.xlane.f32.xlu0 %v5540_v62 }
0x1a16   :  { %v5542_v26 = vpop.xlane.xlu0 %5541 }
0x1a17   :  { %v5543_v28 = vmul.f32 0.001953125, %v5542_v26 }
0x1a19   :  { %v5544_v29 = vadd.f32 1e-05, %v5543_v28 }
0x1a1b   :  { %7279 = vrsqrt.f32 %v5544_v29 }
0x1a25   :  { %v7280_v0 = vpop.eup %7279 }
0x1a26   :  { %v5547_v48 = vmul.f32 %v7280_v0, %v8241_v40  ;;  %v5549_v25 = vmul.f32 %v7280_v0, %v8245_v51  ;;  %v5546_v49 = vmul.f32 %v7280_v0, %v8239_v32  ;;  %v5548_v27 = vmul.f32 %v7280_v0, %v8243_v50 }
0x1a28   :  { %v5572_v41 = vmul.f32 %v5558_v36, %v5547_v48  ;;  %v5574_v43 = vmul.f32 %v5566_v38, %v5549_v25  ;;  %v5571_v52 = vmul.f32 %v5554_v45, %v5546_v49  ;;  %v5573_v55 = vmul.f32 %v5562_v46, %v5548_v27 }
0x1a2a   :  { %v5597_v57 = vadd.f32 %v5583_v10, %v5572_v41  ;;  %v5599_v4 = vadd.f32 %v5591_v33, %v5574_v43  ;;  %v5596_v30 = vadd.f32 %v5579_v42, %v5571_v52  ;;  %v5598_v21 = vadd.f32 %v5587_v47, %v5573_v55 }
0x1a2c   :  { %vm5601_vm2 = vcmp.ge.f32.partialorder %v5597_v57, 0.0  ;;  %v5605_v54 = vmul.f32 0.01, %v5597_v57  ;;  %vm5603_vm3 = vcmp.ge.f32.partialorder %v5599_v4, 0.0  ;;  %v5607_v17 = vmul.f32 0.01, %v5599_v4 }
0x1a2d   :  { %vm5600_vm4 = vcmp.ge.f32.partialorder %v5596_v30, 0.0  ;;  %v5604_v40 = vmul.f32 0.01, %v5596_v30  ;;  %vm5602_vm5 = vcmp.ge.f32.partialorder %v5598_v21, 0.0  ;;  %v5606_v51 = vmul.f32 0.01, %v5598_v21 }
0x1a2e   :  { %v5609_v32 = vsel %vm5601_vm2, %v5597_v57, %v5605_v54  ;;  %v5611_v59 = vsel %vm5603_vm3, %v5599_v4, %v5607_v17 }
0x1a2f   :  { %v5613_v50 = vpack.c.bf16 %v5609_v32, %v5609_v32  ;;  %v5615_v22 = vpack.c.bf16 %v5611_v59, %v5611_v59  ;;  %v5608_v60 = vsel %vm5600_vm4, %v5596_v30, %v5604_v40  ;;  %v5610_v44 = vsel %vm5602_vm5, %v5598_v21, %v5606_v51 }
0x1a30   :  { %v5612_v61 = vpack.c.bf16 %v5608_v60, %v5608_v60  ;;  %v5614_v62 = vpack.c.bf16 %v5610_v44, %v5610_v44 }
0x1a31   :  { %5911 = vmatprep.mubr.bf16.mxu1 %v5613_v50  ;;  %5951 = vmatprep.mubr.bf16.mxu0 %v5615_v22 }
0x1a32   :  { %5912 = vmatmul.mubr.bf16.vlgmr.msra.gmra.mrb[76].mxu1 %v5612_v61  ;;  %5952 = vmatmul.mubr.bf16.vlgmr.msra.gmra.mrb[48].mxu0 %v5614_v62 }
0x1b05   :  { %v6459_v56 = vpop.f32.mrb[76].mxu1  ;;  %v6481_v63 = vpop.f32.mrb[48].mxu0 }
0x1b06   :  { %v6460_v3 = vpop.f32.mrb[77].mxu1  ;;  %v6482_v20 = vpop.f32.mrb[49].mxu0 }
0x1b07   :  { %v6461_v5 = vadd.f32 %v6460_v3, %v6459_v56  ;;  %v6483_v53 = vadd.f32 %v6482_v20, %v6481_v63  ;;  %v6462_v31 = vpop.f32.mrb[78].mxu1  ;;  %v6484_v39 = vpop.f32.mrb[50].mxu0 }
0x1b08   :  { %v6463_v6 = vpop.f32.mrb[79].mxu1  ;;  %v6485_v7 = vpop.f32.mrb[51].mxu0 }
0x1b09   :  { %v5914_v8 = vadd.f32 %v6461_v5, %v6305_v2 }
0x1b0b   :  { %v5954_v1 = vadd.f32 %v6483_v53, %v5914_v8 }
0x1b0d   :  { %5960 = vst.msk [vmem:[#allocation5] sm:$0x3] %vm5959_vm6, %v5954_v1 }
0x1b0e   :  { %7314 = shalt.err (!%p7311_p12)
}
0x1b0f   :  { %s7315_s27 = scalar_lea.hbm %s7579_s4, 32 }
0x1b10   :  { %p7316_p13 = scmp.ne.s32.totalorder %s7579_s4, %s7315_s27  ;;  %p7319_p0 = scmp.lt.u32.totalorder %s7315_s27, %s7579_s4 }
0x1b12   :  { %p7321_p1 = pnand %p7319_p0, %p7316_p13 }
0x1b14   :  { %7324 = shalt.err (!%p7321_p1)
}
0x1b15   :  { %5970 = dma.vmem_to_hbm [thread:$0]  %s5968_s20, 32, %s7579_s4, [#allocation4]  }
0x1b16   :  { %7327 = dma.done.wait [#allocation4], 32  }
0x1b17   :  { %7328 = vsyncadd [#allocation4], 4294967264 }
0x1b18   :  { %5974 = vsyncpa [#allocation3], 1 }
0x1b19   :  { %5975 = vsyncpa [#allocation4], 1 }

</bundles_post_ra>
